<compile_context>
chip_gen: v7x
topology: tpu7x:2x2x1
jax: 0.10.0
libtpu: 0.0.40
codegen_flags: <defaults>
</compile_context>

<pallas_src>
import numpy as np
import jax
import jax.numpy as jnp
from jax import lax
from jax.experimental import pallas as pl
from jax.experimental.pallas import tpu as pltpu

# ----------------------------- configuration --------------------------------
B = 2            # batch size
E = 32           # embedding_size
NHEAD = 8        # nn.TransformerEncoderLayer(nhead=8)
HD = E // NHEAD  # head dim
S = 8            # max_len (max sentences per item)
T = 16           # tokens per sentence (synthetic sbert sequence length)
FF = 2048        # nn.TransformerEncoderLayer default dim_feedforward
NL = 4           # num_labels
EH = E // 2      # classifier1 output size
VOCAB = 100
LN_EPS = 1e-5
NEG = -1e30      # stands in for float('-inf') in the additive attention masks

R = B * S        # folded sentence rows (16)
HR = NHEAD * R   # lane-blocked score width (128 -> lane dense)
LANES = 128

# f32 "small" slab row layout (biases / LN / classifiers / positional encoding)
ROW_FC_B, ROW_INP_B, ROW_OUTP_B = 0, 1, 2
ROW_LN1_W, ROW_LN1_B, ROW_LN2_W, ROW_LN2_B = 3, 4, 5, 6
ROW_FF2_B, ROW_C1_B, ROW_C2_B = 7, 8, 9
ROW_C1_W = 16                     # (E, EH)   rows 16:48
ROW_C2_W = ROW_C1_W + E           # (EH, NL)  rows 48:64
ROW_PE = ROW_C2_W + EH            # (R, E)    rows 64:80
SMALL_ROWS = ROW_PE + R           # 80

# bf16 small-weight slab row layout
ROWW_FC, ROWW_INP, ROWW_OUTP = 0, E, 2 * E
WBF_ROWS = 3 * E                  # 96
FF1_ROWS = 48                     # ff1_w rows 0:32, ff1_b row 32, zero pad to 48


# ------------------------------- kernel -------------------------------------
def splitbert_kernel(count_ref,                         # scalar prefetch (SMEM)
                     tok_ref, am_ref, wbf_ref, ff1_ref, ff2_ref, small_ref,
                     out_ref):
    f32 = jnp.float32
    bf16 = jnp.bfloat16

    # ------------- count-derived masks (built from SMEM scalars) ------------
    row = lax.broadcasted_iota(jnp.int32, (R, 1), 0)
    item_row = jnp.zeros((R, 1), jnp.int32)
    cnt_row = jnp.zeros((R, 1), jnp.int32)
    for b in range(B):                                   # B=2, static unroll
        in_b = (row >= b * S) & (row < (b + 1) * S)
        item_row = jnp.where(in_b, b, item_row)
        cnt_row = jnp.where(in_b, count_ref[b], cnt_row)
    sent_row = row - item_row * S
    keep_row = (sent_row < cnt_row).astype(f32)          # (R, 1) real sentences

    # additive attention mask (R, R): same item & causal & key not padded
    qi = lax.broadcasted_iota(jnp.int32, (R, R), 0)
    kj = lax.broadcasted_iota(jnp.int32, (R, R), 1)
    qi_item = jnp.zeros((R, R), jnp.int32)
    kj_item = jnp.zeros((R, R), jnp.int32)
    cnt_col = jnp.zeros((R, R), jnp.int32)
    for b in range(B):
        q_in = (qi >= b * S) & (qi < (b + 1) * S)
        k_in = (kj >= b * S) & (kj < (b + 1) * S)
        qi_item = jnp.where(q_in, b, qi_item)
        kj_item = jnp.where(k_in, b, kj_item)
        cnt_col = jnp.where(k_in, count_ref[b], cnt_col)
    qi_s = qi - qi_item * S
    kj_s = kj - kj_item * S
    ok = (qi_item == kj_item) & (kj_s <= qi_s) & (kj_s < cnt_col)
    addmask = jnp.where(ok, 0.0, NEG).astype(f32)        # (R, R)

    # ------------- masked mean pooling over tokens as one MXU matmul ---------
    rr = lax.broadcasted_iota(jnp.int32, (R, R * T), 0)
    cc = lax.broadcasted_iota(jnp.int32, (R, R * T), 1)
    in_blk = (cc >= rr * T) & (cc < rr * T + T)          # block-diagonal tokens
    w_pool = jnp.where(in_blk, am_ref[...], 0.0)         # (R, R*T)
    sum_mask = jnp.maximum(jnp.sum(w_pool, axis=1, keepdims=True), 1e-9)
    w_pool = w_pool * (keep_row / sum_mask)              # fold mean + row zeroing
    pooled = jnp.dot(w_pool, tok_ref[...],
                     preferred_element_type=f32)         # (R, E)

    # ------------- fc_layer + positional encoding ----------------------------
    fc_w = wbf_ref[ROWW_FC:ROWW_FC + E, 0:E]             # bf16 (E, E)
    fc_b = small_ref[ROW_FC_B:ROW_FC_B + 1, 0:E]
    pe = small_ref[ROW_PE:ROW_PE + R, 0:E]
    x = jnp.dot(pooled.astype(bf16), fc_w, preferred_element_type=f32) + fc_b
    x = x + pe                                           # (R, E) f32

    # ------------- multi-head self-attention, all heads in one pass ----------
    inp_w = wbf_ref[ROWW_INP:ROWW_INP + E, 0:3 * E]      # bf16 (E, 3E)
    inp_b = small_ref[ROW_INP_B:ROW_INP_B + 1, 0:3 * E]
    qkv = jnp.dot(x.astype(bf16), inp_w, preferred_element_type=f32) + inp_b
    scale = 1.0 / float(np.sqrt(HD))
    q = qkv[:, 0:E] * scale
    k = qkv[:, E:2 * E]
    v = qkv[:, 2 * E:3 * E]

    # head-block mask: row h*R+j belongs to head h, column e belongs to head e//HD
    rbig = lax.broadcasted_iota(jnp.int32, (HR, E), 0)
    ebig = lax.broadcasted_iota(jnp.int32, (HR, E), 1)
    headmask = jnp.zeros((HR, E), f32)
    for h in range(NHEAD):                               # static unroll, 8 wheres
        sel = ((rbig >= h * R) & (rbig < (h + 1) * R) &
               (ebig >= h * HD) & (ebig < (h + 1) * HD))
        headmask = jnp.where(sel, 1.0, headmask)
    k_big = jnp.concatenate([k] * NHEAD, axis=0) * headmask   # (HR, E)
    v_big = jnp.concatenate([v] * NHEAD, axis=0) * headmask   # (HR, E)

    # scores[i, h*R + j] = scale * <q_h[i], k_h[j]>  (single A·Bᵀ matmul)
    scores = lax.dot_general(q, k_big, (((1,), (1,)), ((), ())),
                             preferred_element_type=f32)      # (R, HR) = (16,128)
    scores = scores + jnp.concatenate([addmask] * NHEAD, axis=1)

    # per-head softmax; the shared row max is softmax-invariant inside each head
    m = jnp.max(scores, axis=-1, keepdims=True)
    p = jnp.exp(scores - m)                                   # masked entries -> 0
    ci = lax.broadcasted_iota(jnp.int32, (HR, HR), 0)
    cj = lax.broadcasted_iota(jnp.int32, (HR, HR), 1)
    mseg = jnp.zeros((HR, HR), f32)                           # block-diagonal ones
    for h in range(NHEAD):
        blk = ((ci >= h * R) & (ci < (h + 1) * R) &
               (cj >= h * R) & (cj < (h + 1) * R))
        mseg = jnp.where(blk, 1.0, mseg)
    denom = jnp.dot(p, mseg, preferred_element_type=f32)      # per-head row sums
    denom = jnp.maximum(denom, 1e-30)                         # guard (no-op here)
    p = p / denom

    attn_cat = jnp.dot(p, v_big, preferred_element_type=f32)  # (R, E), heads concat
    outp_w = wbf_ref[ROWW_OUTP:ROWW_OUTP + E, 0:E]            # bf16 (E, E)
    outp_b = small_ref[ROW_OUTP_B:ROW_OUTP_B + 1, 0:E]
    attn = jnp.dot(attn_cat.astype(bf16), outp_w,
                   preferred_element_type=f32) + outp_b

    def layer_norm(y, w, bias):
        mu = jnp.mean(y, axis=-1, keepdims=True)
        var = jnp.mean((y - mu) ** 2, axis=-1, keepdims=True)
        return (y - mu) * lax.rsqrt(var + LN_EPS) * w + bias

    ln1_w = small_ref[ROW_LN1_W:ROW_LN1_W + 1, 0:E]
    ln1_b = small_ref[ROW_LN1_B:ROW_LN1_B + 1, 0:E]
    ln2_w = small_ref[ROW_LN2_W:ROW_LN2_W + 1, 0:E]
    ln2_b = small_ref[ROW_LN2_B:ROW_LN2_B + 1, 0:E]
    x = layer_norm(x + attn, ln1_w, ln1_b)

    # ------------- feed-forward (bf16 weights, f32 accumulation) -------------
    ff1_w = ff1_ref[0:E, :]                                   # bf16 (E, FF)
    ff1_b = ff1_ref[E:E + 1, :].astype(f32)                   # (1, FF)
    hmid = jnp.dot(x.astype(bf16), ff1_w, preferred_element_type=f32) + ff1_b
    hmid = jnp.maximum(hmid, 0.0)
    ff2_b = small_ref[ROW_FF2_B:ROW_FF2_B + 1, 0:E]
    ff = jnp.dot(hmid.astype(bf16), ff2_ref[...],
                 preferred_element_type=f32) + ff2_b
    x = layer_norm(x + ff, ln2_w, ln2_b)                      # (R, E)

    # ------------- mean over the first `count` sentences, per item -----------
    bi = lax.broadcasted_iota(jnp.int32, (B, R), 0)
    rj = lax.broadcasted_iota(jnp.int32, (B, R), 1)
    cnt_b = jnp.zeros((B, R), jnp.int32)
    for b in range(B):
        cnt_b = jnp.where(bi == b, count_ref[b], cnt_b)
    in_item = (rj >= bi * S) & (rj < (bi + 1) * S)
    sent = rj - bi * S
    keep = in_item & (sent < cnt_b)
    mean_w = keep.astype(f32) / jnp.maximum(cnt_b.astype(f32), 1.0)  # clamp count>=1
    enc = jnp.dot(mean_w, x, preferred_element_type=f32)      # (B, E)

    # ------------- classifiers + single lane-dense packed output -------------
    c1_w = small_ref[ROW_C1_W:ROW_C1_W + E, 0:EH]
    c1_b = small_ref[ROW_C1_B:ROW_C1_B + 1, 0:EH]
    c2_w = small_ref[ROW_C2_W:ROW_C2_W + EH, 0:NL]
    c2_b = small_ref[ROW_C2_B:ROW_C2_B + 1, 0:NL]
    h1 = jnp.dot(enc, c1_w, preferred_element_type=f32) + c1_b      # (B, EH)
    logit = jnp.dot(h1, c2_w, preferred_element_type=f32) + c2_b    # (B, NL)
    pad = jnp.zeros((B, LANES - NL - EH), f32)
    out_ref[...] = jnp.concatenate([logit, h1, pad], axis=-1)       # (B, 128)


# ------------------------------- wrapper -------------------------------------
def splitbert_forward(tok_emb, attn_mask, sentence_count, pe, params):
    tok_flat = tok_emb.reshape(R * T, E).astype(jnp.float32)        # (B*S*T, E)
    am_flat = attn_mask.reshape(1, R * T).astype(jnp.float32)       # (1, B*S*T)
    pe_tiled = jnp.concatenate([pe] * B, axis=0)                    # (R, E)

    # bf16 slab for the small matmul weights (fc / in_proj / out_proj)
    wbf = jnp.zeros((WBF_ROWS, LANES), jnp.float32)
    wbf = wbf.at[ROWW_FC:ROWW_FC + E, :E].set(params['fc_w'])
    wbf = wbf.at[ROWW_INP:ROWW_INP + E, :3 * E].set(params['inp_w'])
    wbf = wbf.at[ROWW_OUTP:ROWW_OUTP + E, :E].set(params['outp_w'])
    wbf = wbf.astype(jnp.bfloat16)

    # bf16 FF slabs
    ff1 = jnp.zeros((FF1_ROWS, FF), jnp.float32)
    ff1 = ff1.at[:E, :].set(params['ff1_w'])
    ff1 = ff1.at[E, :].set(params['ff1_b'][0])
    ff1 = ff1.astype(jnp.bfloat16)                                  # (48, FF)
    ff2 = params['ff2_w'].astype(jnp.bfloat16)                      # (FF, E)

    # f32 slab: biases, LayerNorm params, classifiers, positional encoding
    small = jnp.zeros((SMALL_ROWS, LANES), jnp.float32)
    small = small.at[ROW_FC_B, :E].set(params['fc_b'][0])
    small = small.at[ROW_INP_B, :3 * E].set(params['inp_b'][0])
    small = small.at[ROW_OUTP_B, :E].set(params['outp_b'][0])
    small = small.at[ROW_LN1_W, :E].set(params['ln1_w'][0])
    small = small.at[ROW_LN1_B, :E].set(params['ln1_b'][0])
    small = small.at[ROW_LN2_W, :E].set(params['ln2_w'][0])
    small = small.at[ROW_LN2_B, :E].set(params['ln2_b'][0])
    small = small.at[ROW_FF2_B, :E].set(params['ff2_b'][0])
    small = small.at[ROW_C1_B, :EH].set(params['c1_b'][0])
    small = small.at[ROW_C2_B, :NL].set(params['c2_b'][0])
    small = small.at[ROW_C1_W:ROW_C1_W + E, :EH].set(params['c1_w'])
    small = small.at[ROW_C2_W:ROW_C2_W + EH, :NL].set(params['c2_w'])
    small = small.at[ROW_PE:ROW_PE + R, :E].set(pe_tiled)

    def spec(shape):
        return pl.BlockSpec(shape, lambda i, cnt: (0,) * len(shape))

    grid_spec = pltpu.PrefetchScalarGridSpec(
        num_scalar_prefetch=1,
        grid=(1,),                       # whole batch folded into one step
        in_specs=[spec(tok_flat.shape), spec(am_flat.shape), spec(wbf.shape),
                  spec(ff1.shape), spec(ff2.shape), spec(small.shape)],
        out_specs=spec((B, LANES)),
    )

    packed = pl.pallas_call(
        splitbert_kernel,
        out_shape=jax.ShapeDtypeStruct((B, LANES), jnp.float32),
        grid_spec=grid_spec,
        compiler_params=pltpu.CompilerParams(dimension_semantics=("arbitrary",)),
    )(sentence_count, tok_flat, am_flat, wbf, ff1, ff2, small)

    logits = packed[:, :NL]
    hidden = packed[:, NL:NL + EH]
    return logits, hidden


# ----------------------------- param / input setup ---------------------------
def make_params(key):
    ks = jax.random.split(key, 14)

    def init(k, shape, scale=0.05):
        return (scale * jax.random.normal(k, shape)).astype(jnp.float32)

    return dict(
        fc_w=init(ks[0], (E, E)),        fc_b=init(ks[1], (1, E)),
        inp_w=init(ks[2], (E, 3 * E)),   inp_b=init(ks[3], (1, 3 * E)),
        outp_w=init(ks[4], (E, E)),      outp_b=init(ks[5], (1, E)),
        ln1_w=jnp.ones((1, E), jnp.float32), ln1_b=jnp.zeros((1, E), jnp.float32),
        ff1_w=init(ks[6], (E, FF)),      ff1_b=init(ks[7], (1, FF)),
        ff2_w=init(ks[8], (FF, E)),      ff2_b=init(ks[9], (1, E)),
        ln2_w=jnp.ones((1, E), jnp.float32), ln2_b=jnp.zeros((1, E), jnp.float32),
        c1_w=init(ks[10], (E, EH)),      c1_b=init(ks[11], (1, EH)),
        c2_w=init(ks[12], (EH, NL)),     c2_b=init(ks[13], (1, NL)),
    )


def positional_encoding(max_len, d_model):
    pe = np.zeros((max_len, d_model), dtype=np.float32)
    position = np.arange(0, max_len, dtype=np.float32)[:, None]
    div_term = np.exp(np.arange(0, d_model, 2).astype(np.float32)
                      * (-np.log(10000.0) / d_model))
    pe[:, 0::2] = np.sin(position * div_term)
    pe[:, 1::2] = np.cos(position * div_term)
    return jnp.asarray(pe)


if __name__ == "__main__":
    key = jax.random.PRNGKey(0)
    k_tab, k_ids, k_par = jax.random.split(key, 3)

    # TODO(synk): pretrained 'all-MiniLM-L6-v2' backbone replaced by a
    # deterministic embedding-table lookup producing per-token embeddings.
    emb_table = (0.1 * jax.random.normal(k_tab, (VOCAB, E))).astype(jnp.float32)
    input_ids = jax.random.randint(k_ids, (B, S, T), 0, VOCAB)
    tok_emb = emb_table[input_ids]                               # (B, S, T, E)

    # per-sentence token lengths -> attention mask (float, like .float() in ref)
    tok_lens = ((np.arange(B)[:, None] + 3 * np.arange(S)[None, :]) % (T - 2)) + 2
    attn_mask = (np.arange(T)[None, None, :] < tok_lens[:, :, None]).astype(np.float32)
    attn_mask = jnp.asarray(attn_mask)                           # (B, S, T)

    sentence_count = jnp.array([3, 5], dtype=jnp.int32)          # (B,)
    labels = jnp.array([1, 2], dtype=jnp.int32)                  # (B,)

    pe = positional_encoding(S, E)                               # (S, E)
    params = make_params(k_par)

    logits, hidden_states = splitbert_forward(tok_emb, attn_mask,
                                              sentence_count, pe, params)

    # CrossEntropyLoss(logits.squeeze(), labels.squeeze()) -- tiny, done in glue
    logz = jax.nn.logsumexp(logits, axis=-1)
    picked = jnp.take_along_axis(logits, labels[:, None], axis=-1)[:, 0]
    loss = jnp.mean(logz - picked)

    jax.block_until_ready((logits, hidden_states, loss))
    assert logits.shape == (B, NL) and hidden_states.shape == (B, EH)
    assert bool(jnp.all(jnp.isfinite(logits))) and bool(jnp.isfinite(loss))
    print("KERNEL_OK")
</pallas_src>

<mosaic_0001>
module attributes {stable_mosaic.version = 11 : i64} {
  func.func @splitbert_kernel(%arg0: i32, %arg1: memref<2xi32, #tpu.memory_space<smem>>, %arg2: memref<256x32xf32, #tpu.memory_space<vmem>>, %arg3: memref<1x256xf32, #tpu.memory_space<vmem>>, %arg4: memref<96x128xbf16, #tpu.memory_space<vmem>>, %arg5: memref<48x2048xbf16, #tpu.memory_space<vmem>>, %arg6: memref<2048x32xbf16, #tpu.memory_space<vmem>>, %arg7: memref<80x128xf32, #tpu.memory_space<vmem>>, %arg8: memref<2x128xf32, #tpu.memory_space<vmem>>) attributes {dimension_semantics = [#tpu.dimension_semantics<arbitrary>], iteration_bounds = array<i64: 1>, scalar_prefetch = 1 : i64, scratch_operands = 0 : i64, tpu.core_type = #tpu.core_type<tc>, window_params = [{pipeline_mode = #tpu.pipeline_mode<synchronous>, transform_indices = @transform_0, window_bounds = array<i64: 256, 32>}, {pipeline_mode = #tpu.pipeline_mode<synchronous>, transform_indices = @transform_1, window_bounds = array<i64: 1, 256>}, {pipeline_mode = #tpu.pipeline_mode<synchronous>, transform_indices = @transform_2, window_bounds = array<i64: 96, 128>}, {pipeline_mode = #tpu.pipeline_mode<synchronous>, transform_indices = @transform_3, window_bounds = array<i64: 48, 2048>}, {pipeline_mode = #tpu.pipeline_mode<synchronous>, transform_indices = @transform_4, window_bounds = array<i64: 2048, 32>}, {pipeline_mode = #tpu.pipeline_mode<synchronous>, transform_indices = @transform_5, window_bounds = array<i64: 80, 128>}, {pipeline_mode = #tpu.pipeline_mode<synchronous>, transform_indices = @transform_6, window_bounds = array<i64: 2, 128>}]} {
    %0 = tpu.iota {dimensions = array<i32: 0>} : vector<16x1xi32>
    %c0_i32 = arith.constant 0 : i32
    %1 = vector.broadcast %c0_i32 : i32 to vector<16x1xi32>
    %c0_i32_0 = arith.constant 0 : i32
    %2 = vector.broadcast %c0_i32_0 : i32 to vector<16x1xi32>
    %c0_i32_1 = arith.constant 0 : i32
    %3 = vector.broadcast %c0_i32_1 : i32 to vector<16x1xi32>
    %4 = arith.cmpi sge, %0, %3 : vector<16x1xi32>
    %c8_i32 = arith.constant 8 : i32
    %5 = vector.broadcast %c8_i32 : i32 to vector<16x1xi32>
    %6 = arith.cmpi slt, %0, %5 : vector<16x1xi32>
    %7 = arith.andi %4, %6 : vector<16x1xi1>
    %c0_i32_2 = arith.constant 0 : i32
    %8 = vector.broadcast %c0_i32_2 : i32 to vector<16x1xi32>
    %9 = arith.select %7, %8, %1 : vector<16x1xi1>, vector<16x1xi32>
    %c0 = arith.constant 0 : index
    %10 = memref.load %arg1[%c0] : memref<2xi32, #tpu.memory_space<smem>>
    %11 = vector.broadcast %10 : i32 to vector<16x1xi32>
    %12 = arith.select %7, %11, %2 : vector<16x1xi1>, vector<16x1xi32>
    %c8_i32_3 = arith.constant 8 : i32
    %13 = vector.broadcast %c8_i32_3 : i32 to vector<16x1xi32>
    %14 = arith.cmpi sge, %0, %13 : vector<16x1xi32>
    %c16_i32 = arith.constant 16 : i32
    %15 = vector.broadcast %c16_i32 : i32 to vector<16x1xi32>
    %16 = arith.cmpi slt, %0, %15 : vector<16x1xi32>
    %17 = arith.andi %14, %16 : vector<16x1xi1>
    %c1_i32 = arith.constant 1 : i32
    %18 = vector.broadcast %c1_i32 : i32 to vector<16x1xi32>
    %19 = arith.select %17, %18, %9 : vector<16x1xi1>, vector<16x1xi32>
    %c1 = arith.constant 1 : index
    %20 = memref.load %arg1[%c1] : memref<2xi32, #tpu.memory_space<smem>>
    %21 = vector.broadcast %20 : i32 to vector<16x1xi32>
    %22 = arith.select %17, %21, %12 : vector<16x1xi1>, vector<16x1xi32>
    %c8_i32_4 = arith.constant 8 : i32
    %23 = vector.broadcast %c8_i32_4 : i32 to vector<16x1xi32>
    %24 = arith.muli %19, %23 : vector<16x1xi32>
    %25 = arith.subi %0, %24 : vector<16x1xi32>
    %26 = arith.cmpi slt, %25, %22 : vector<16x1xi32>
    %27 = arith.extui %26 : vector<16x1xi1> to vector<16x1xi32>
    %28 = arith.sitofp %27 : vector<16x1xi32> to vector<16x1xf32>
    %29 = tpu.iota {dimensions = array<i32: 0>} : vector<16x16xi32>
    %30 = tpu.iota {dimensions = array<i32: 1>} : vector<16x16xi32>
    %c0_i32_5 = arith.constant 0 : i32
    %31 = vector.broadcast %c0_i32_5 : i32 to vector<16x16xi32>
    %c0_i32_6 = arith.constant 0 : i32
    %32 = vector.broadcast %c0_i32_6 : i32 to vector<16x16xi32>
    %c0_i32_7 = arith.constant 0 : i32
    %33 = vector.broadcast %c0_i32_7 : i32 to vector<16x16xi32>
    %c0_i32_8 = arith.constant 0 : i32
    %34 = vector.broadcast %c0_i32_8 : i32 to vector<16x16xi32>
    %35 = arith.cmpi sge, %29, %34 : vector<16x16xi32>
    %c8_i32_9 = arith.constant 8 : i32
    %36 = vector.broadcast %c8_i32_9 : i32 to vector<16x16xi32>
    %37 = arith.cmpi slt, %29, %36 : vector<16x16xi32>
    %38 = arith.andi %35, %37 : vector<16x16xi1>
    %c0_i32_10 = arith.constant 0 : i32
    %39 = vector.broadcast %c0_i32_10 : i32 to vector<16x16xi32>
    %40 = arith.cmpi sge, %30, %39 : vector<16x16xi32>
    %c8_i32_11 = arith.constant 8 : i32
    %41 = vector.broadcast %c8_i32_11 : i32 to vector<16x16xi32>
    %42 = arith.cmpi slt, %30, %41 : vector<16x16xi32>
    %43 = arith.andi %40, %42 : vector<16x16xi1>
    %c0_i32_12 = arith.constant 0 : i32
    %44 = vector.broadcast %c0_i32_12 : i32 to vector<16x16xi32>
    %45 = arith.select %38, %44, %31 : vector<16x16xi1>, vector<16x16xi32>
    %c0_i32_13 = arith.constant 0 : i32
    %46 = vector.broadcast %c0_i32_13 : i32 to vector<16x16xi32>
    %47 = arith.select %43, %46, %32 : vector<16x16xi1>, vector<16x16xi32>
    %c0_14 = arith.constant 0 : index
    %48 = memref.load %arg1[%c0_14] : memref<2xi32, #tpu.memory_space<smem>>
    %49 = vector.broadcast %48 : i32 to vector<16x16xi32>
    %50 = arith.select %43, %49, %33 : vector<16x16xi1>, vector<16x16xi32>
    %c8_i32_15 = arith.constant 8 : i32
    %51 = vector.broadcast %c8_i32_15 : i32 to vector<16x16xi32>
    %52 = arith.cmpi sge, %29, %51 : vector<16x16xi32>
    %c16_i32_16 = arith.constant 16 : i32
    %53 = vector.broadcast %c16_i32_16 : i32 to vector<16x16xi32>
    %54 = arith.cmpi slt, %29, %53 : vector<16x16xi32>
    %55 = arith.andi %52, %54 : vector<16x16xi1>
    %c8_i32_17 = arith.constant 8 : i32
    %56 = vector.broadcast %c8_i32_17 : i32 to vector<16x16xi32>
    %57 = arith.cmpi sge, %30, %56 : vector<16x16xi32>
    %c16_i32_18 = arith.constant 16 : i32
    %58 = vector.broadcast %c16_i32_18 : i32 to vector<16x16xi32>
    %59 = arith.cmpi slt, %30, %58 : vector<16x16xi32>
    %60 = arith.andi %57, %59 : vector<16x16xi1>
    %c1_i32_19 = arith.constant 1 : i32
    %61 = vector.broadcast %c1_i32_19 : i32 to vector<16x16xi32>
    %62 = arith.select %55, %61, %45 : vector<16x16xi1>, vector<16x16xi32>
    %c1_i32_20 = arith.constant 1 : i32
    %63 = vector.broadcast %c1_i32_20 : i32 to vector<16x16xi32>
    %64 = arith.select %60, %63, %47 : vector<16x16xi1>, vector<16x16xi32>
    %c1_21 = arith.constant 1 : index
    %65 = memref.load %arg1[%c1_21] : memref<2xi32, #tpu.memory_space<smem>>
    %66 = vector.broadcast %65 : i32 to vector<16x16xi32>
    %67 = arith.select %60, %66, %50 : vector<16x16xi1>, vector<16x16xi32>
    %c8_i32_22 = arith.constant 8 : i32
    %68 = vector.broadcast %c8_i32_22 : i32 to vector<16x16xi32>
    %69 = arith.muli %62, %68 : vector<16x16xi32>
    %70 = arith.subi %29, %69 : vector<16x16xi32>
    %c8_i32_23 = arith.constant 8 : i32
    %71 = vector.broadcast %c8_i32_23 : i32 to vector<16x16xi32>
    %72 = arith.muli %64, %71 : vector<16x16xi32>
    %73 = arith.subi %30, %72 : vector<16x16xi32>
    %74 = arith.cmpi eq, %62, %64 : vector<16x16xi32>
    %75 = arith.cmpi sle, %73, %70 : vector<16x16xi32>
    %76 = arith.andi %74, %75 : vector<16x16xi1>
    %77 = arith.cmpi slt, %73, %67 : vector<16x16xi32>
    %78 = arith.andi %76, %77 : vector<16x16xi1>
    %cst = arith.constant 0.000000e+00 : f32
    %cst_24 = arith.constant -1.000000e+30 : f32
    %79 = vector.broadcast %cst : f32 to vector<16x16xf32>
    %80 = vector.broadcast %cst_24 : f32 to vector<16x16xf32>
    %81 = arith.select %78, %79, %80 : vector<16x16xi1>, vector<16x16xf32>
    %82 = tpu.iota {dimensions = array<i32: 0>} : vector<16x256xi32>
    %83 = tpu.iota {dimensions = array<i32: 1>} : vector<16x256xi32>
    %c16_i32_25 = arith.constant 16 : i32
    %84 = vector.broadcast %c16_i32_25 : i32 to vector<16x256xi32>
    %85 = arith.muli %82, %84 : vector<16x256xi32>
    %86 = arith.cmpi sge, %83, %85 : vector<16x256xi32>
    %c16_i32_26 = arith.constant 16 : i32
    %87 = vector.broadcast %c16_i32_26 : i32 to vector<16x256xi32>
    %88 = arith.muli %82, %87 : vector<16x256xi32>
    %c16_i32_27 = arith.constant 16 : i32
    %89 = vector.broadcast %c16_i32_27 : i32 to vector<16x256xi32>
    %90 = arith.addi %88, %89 : vector<16x256xi32>
    %91 = arith.cmpi slt, %83, %90 : vector<16x256xi32>
    %92 = arith.andi %86, %91 : vector<16x256xi1>
    %c0_28 = arith.constant 0 : index
    %c0_29 = arith.constant 0 : index
    %93 = vector.load %arg3[%c0_28, %c0_29] : memref<1x256xf32, #tpu.memory_space<vmem>>, vector<1x256xf32>
    %cst_30 = arith.constant 0.000000e+00 : f32
    %94 = vector.shape_cast %93 : vector<1x256xf32> to vector<1x256xf32>
    %95 = vector.broadcast %94 : vector<1x256xf32> to vector<16x256xf32>
    %96 = vector.broadcast %cst_30 : f32 to vector<16x256xf32>
    %97 = arith.select %92, %95, %96 : vector<16x256xi1>, vector<16x256xf32>
    %cst_31 = arith.constant dense<0.000000e+00> : vector<16xf32>
    %98 = vector.multi_reduction <add>, %97, %cst_31 [1] : vector<16x256xf32> to vector<16xf32>
    %99 = vector.shape_cast %98 : vector<16xf32> to vector<16x1xf32>
    %cst_32 = arith.constant 9.99999971E-10 : f32
    %100 = vector.broadcast %cst_32 : f32 to vector<16x1xf32>
    %101 = arith.maximumf %99, %100 : vector<16x1xf32>
    %102 = arith.divf %28, %101 : vector<16x1xf32>
    %103 = vector.broadcast %102 : vector<16x1xf32> to vector<16x256xf32>
    %104 = arith.mulf %97, %103 : vector<16x256xf32>
    %c0_33 = arith.constant 0 : index
    %c0_34 = arith.constant 0 : index
    %105 = vector.load %arg2[%c0_33, %c0_34] : memref<256x32xf32, #tpu.memory_space<vmem>>, vector<256x32xf32>
    %cst_35 = arith.constant dense<0.000000e+00> : vector<16x32xf32>
    %106 = tpu.matmul %104, %105, %cst_35 {dimension_numbers = #tpu.dot_dimension_numbers<[1], [0], [0], [1], [0, 0, 1, 1], [], []>} : vector<16x256xf32>, vector<256x32xf32>, vector<16x32xf32> -> vector<16x32xf32>
    %c0_36 = arith.constant 0 : index
    %c0_37 = arith.constant 0 : index
    %107 = vector.load %arg4[%c0_36, %c0_37] : memref<96x128xbf16, #tpu.memory_space<vmem>>, vector<32x32xbf16>
    %c0_38 = arith.constant 0 : index
    %c0_39 = arith.constant 0 : index
    %108 = vector.load %arg7[%c0_38, %c0_39] : memref<80x128xf32, #tpu.memory_space<vmem>>, vector<1x32xf32>
    %c64 = arith.constant 64 : index
    %c0_40 = arith.constant 0 : index
    %109 = vector.load %arg7[%c64, %c0_40] : memref<80x128xf32, #tpu.memory_space<vmem>>, vector<16x32xf32>
    %110 = arith.truncf %106 : vector<16x32xf32> to vector<16x32xbf16>
    %cst_41 = arith.constant dense<0.000000e+00> : vector<16x32xf32>
    %111 = tpu.matmul %110, %107, %cst_41 {dimension_numbers = #tpu.dot_dimension_numbers<[1], [0], [0], [1], [0, 0, 1, 1], [], []>} : vector<16x32xbf16>, vector<32x32xbf16>, vector<16x32xf32> -> vector<16x32xf32>
    %112 = vector.broadcast %108 : vector<1x32xf32> to vector<16x32xf32>
    %113 = arith.addf %111, %112 : vector<16x32xf32>
    %114 = arith.addf %113, %109 : vector<16x32xf32>
    %c32 = arith.constant 32 : index
    %c0_42 = arith.constant 0 : index
    %115 = vector.load %arg4[%c32, %c0_42] : memref<96x128xbf16, #tpu.memory_space<vmem>>, vector<32x96xbf16>
    %c1_43 = arith.constant 1 : index
    %c0_44 = arith.constant 0 : index
    %116 = vector.load %arg7[%c1_43, %c0_44] : memref<80x128xf32, #tpu.memory_space<vmem>>, vector<1x96xf32>
    %117 = arith.truncf %114 : vector<16x32xf32> to vector<16x32xbf16>
    %cst_45 = arith.constant dense<0.000000e+00> : vector<16x96xf32>
    %118 = tpu.matmul %117, %115, %cst_45 {dimension_numbers = #tpu.dot_dimension_numbers<[1], [0], [0], [1], [0, 0, 1, 1], [], []>} : vector<16x32xbf16>, vector<32x96xbf16>, vector<16x96xf32> -> vector<16x96xf32>
    %119 = vector.broadcast %116 : vector<1x96xf32> to vector<16x96xf32>
    %120 = arith.addf %118, %119 : vector<16x96xf32>
    %121 = vector.extract_strided_slice %120 {offsets = [0, 0], sizes = [16, 32], strides = [1, 1]} : vector<16x96xf32> to vector<16x32xf32>
    %cst_46 = arith.constant 5.000000e-01 : f32
    %122 = vector.broadcast %cst_46 : f32 to vector<16x32xf32>
    %123 = arith.mulf %121, %122 : vector<16x32xf32>
    %124 = vector.extract_strided_slice %120 {offsets = [0, 32], sizes = [16, 32], strides = [1, 1]} : vector<16x96xf32> to vector<16x32xf32>
    %125 = vector.extract_strided_slice %120 {offsets = [0, 64], sizes = [16, 32], strides = [1, 1]} : vector<16x96xf32> to vector<16x32xf32>
    %126 = tpu.iota {dimensions = array<i32: 0>} : vector<128x32xi32>
    %127 = tpu.iota {dimensions = array<i32: 1>} : vector<128x32xi32>
    %cst_47 = arith.constant 0.000000e+00 : f32
    %128 = vector.broadcast %cst_47 : f32 to vector<128x32xf32>
    %c0_i32_48 = arith.constant 0 : i32
    %129 = vector.broadcast %c0_i32_48 : i32 to vector<128x32xi32>
    %130 = arith.cmpi sge, %126, %129 : vector<128x32xi32>
    %c16_i32_49 = arith.constant 16 : i32
    %131 = vector.broadcast %c16_i32_49 : i32 to vector<128x32xi32>
    %132 = arith.cmpi slt, %126, %131 : vector<128x32xi32>
    %133 = arith.andi %130, %132 : vector<128x32xi1>
    %c0_i32_50 = arith.constant 0 : i32
    %134 = vector.broadcast %c0_i32_50 : i32 to vector<128x32xi32>
    %135 = arith.cmpi sge, %127, %134 : vector<128x32xi32>
    %136 = arith.andi %133, %135 : vector<128x32xi1>
    %c4_i32 = arith.constant 4 : i32
    %137 = vector.broadcast %c4_i32 : i32 to vector<128x32xi32>
    %138 = arith.cmpi slt, %127, %137 : vector<128x32xi32>
    %139 = arith.andi %136, %138 : vector<128x32xi1>
    %cst_51 = arith.constant 1.000000e+00 : f32
    %140 = vector.broadcast %cst_51 : f32 to vector<128x32xf32>
    %141 = arith.select %139, %140, %128 : vector<128x32xi1>, vector<128x32xf32>
    %c16_i32_52 = arith.constant 16 : i32
    %142 = vector.broadcast %c16_i32_52 : i32 to vector<128x32xi32>
    %143 = arith.cmpi sge, %126, %142 : vector<128x32xi32>
    %c32_i32 = arith.constant 32 : i32
    %144 = vector.broadcast %c32_i32 : i32 to vector<128x32xi32>
    %145 = arith.cmpi slt, %126, %144 : vector<128x32xi32>
    %146 = arith.andi %143, %145 : vector<128x32xi1>
    %c4_i32_53 = arith.constant 4 : i32
    %147 = vector.broadcast %c4_i32_53 : i32 to vector<128x32xi32>
    %148 = arith.cmpi sge, %127, %147 : vector<128x32xi32>
    %149 = arith.andi %146, %148 : vector<128x32xi1>
    %c8_i32_54 = arith.constant 8 : i32
    %150 = vector.broadcast %c8_i32_54 : i32 to vector<128x32xi32>
    %151 = arith.cmpi slt, %127, %150 : vector<128x32xi32>
    %152 = arith.andi %149, %151 : vector<128x32xi1>
    %cst_55 = arith.constant 1.000000e+00 : f32
    %153 = vector.broadcast %cst_55 : f32 to vector<128x32xf32>
    %154 = arith.select %152, %153, %141 : vector<128x32xi1>, vector<128x32xf32>
    %c32_i32_56 = arith.constant 32 : i32
    %155 = vector.broadcast %c32_i32_56 : i32 to vector<128x32xi32>
    %156 = arith.cmpi sge, %126, %155 : vector<128x32xi32>
    %c48_i32 = arith.constant 48 : i32
    %157 = vector.broadcast %c48_i32 : i32 to vector<128x32xi32>
    %158 = arith.cmpi slt, %126, %157 : vector<128x32xi32>
    %159 = arith.andi %156, %158 : vector<128x32xi1>
    %c8_i32_57 = arith.constant 8 : i32
    %160 = vector.broadcast %c8_i32_57 : i32 to vector<128x32xi32>
    %161 = arith.cmpi sge, %127, %160 : vector<128x32xi32>
    %162 = arith.andi %159, %161 : vector<128x32xi1>
    %c12_i32 = arith.constant 12 : i32
    %163 = vector.broadcast %c12_i32 : i32 to vector<128x32xi32>
    %164 = arith.cmpi slt, %127, %163 : vector<128x32xi32>
    %165 = arith.andi %162, %164 : vector<128x32xi1>
    %cst_58 = arith.constant 1.000000e+00 : f32
    %166 = vector.broadcast %cst_58 : f32 to vector<128x32xf32>
    %167 = arith.select %165, %166, %154 : vector<128x32xi1>, vector<128x32xf32>
    %c48_i32_59 = arith.constant 48 : i32
    %168 = vector.broadcast %c48_i32_59 : i32 to vector<128x32xi32>
    %169 = arith.cmpi sge, %126, %168 : vector<128x32xi32>
    %c64_i32 = arith.constant 64 : i32
    %170 = vector.broadcast %c64_i32 : i32 to vector<128x32xi32>
    %171 = arith.cmpi slt, %126, %170 : vector<128x32xi32>
    %172 = arith.andi %169, %171 : vector<128x32xi1>
    %c12_i32_60 = arith.constant 12 : i32
    %173 = vector.broadcast %c12_i32_60 : i32 to vector<128x32xi32>
    %174 = arith.cmpi sge, %127, %173 : vector<128x32xi32>
    %175 = arith.andi %172, %174 : vector<128x32xi1>
    %c16_i32_61 = arith.constant 16 : i32
    %176 = vector.broadcast %c16_i32_61 : i32 to vector<128x32xi32>
    %177 = arith.cmpi slt, %127, %176 : vector<128x32xi32>
    %178 = arith.andi %175, %177 : vector<128x32xi1>
    %cst_62 = arith.constant 1.000000e+00 : f32
    %179 = vector.broadcast %cst_62 : f32 to vector<128x32xf32>
    %180 = arith.select %178, %179, %167 : vector<128x32xi1>, vector<128x32xf32>
    %c64_i32_63 = arith.constant 64 : i32
    %181 = vector.broadcast %c64_i32_63 : i32 to vector<128x32xi32>
    %182 = arith.cmpi sge, %126, %181 : vector<128x32xi32>
    %c80_i32 = arith.constant 80 : i32
    %183 = vector.broadcast %c80_i32 : i32 to vector<128x32xi32>
    %184 = arith.cmpi slt, %126, %183 : vector<128x32xi32>
    %185 = arith.andi %182, %184 : vector<128x32xi1>
    %c16_i32_64 = arith.constant 16 : i32
    %186 = vector.broadcast %c16_i32_64 : i32 to vector<128x32xi32>
    %187 = arith.cmpi sge, %127, %186 : vector<128x32xi32>
    %188 = arith.andi %185, %187 : vector<128x32xi1>
    %c20_i32 = arith.constant 20 : i32
    %189 = vector.broadcast %c20_i32 : i32 to vector<128x32xi32>
    %190 = arith.cmpi slt, %127, %189 : vector<128x32xi32>
    %191 = arith.andi %188, %190 : vector<128x32xi1>
    %cst_65 = arith.constant 1.000000e+00 : f32
    %192 = vector.broadcast %cst_65 : f32 to vector<128x32xf32>
    %193 = arith.select %191, %192, %180 : vector<128x32xi1>, vector<128x32xf32>
    %c80_i32_66 = arith.constant 80 : i32
    %194 = vector.broadcast %c80_i32_66 : i32 to vector<128x32xi32>
    %195 = arith.cmpi sge, %126, %194 : vector<128x32xi32>
    %c96_i32 = arith.constant 96 : i32
    %196 = vector.broadcast %c96_i32 : i32 to vector<128x32xi32>
    %197 = arith.cmpi slt, %126, %196 : vector<128x32xi32>
    %198 = arith.andi %195, %197 : vector<128x32xi1>
    %c20_i32_67 = arith.constant 20 : i32
    %199 = vector.broadcast %c20_i32_67 : i32 to vector<128x32xi32>
    %200 = arith.cmpi sge, %127, %199 : vector<128x32xi32>
    %201 = arith.andi %198, %200 : vector<128x32xi1>
    %c24_i32 = arith.constant 24 : i32
    %202 = vector.broadcast %c24_i32 : i32 to vector<128x32xi32>
    %203 = arith.cmpi slt, %127, %202 : vector<128x32xi32>
    %204 = arith.andi %201, %203 : vector<128x32xi1>
    %cst_68 = arith.constant 1.000000e+00 : f32
    %205 = vector.broadcast %cst_68 : f32 to vector<128x32xf32>
    %206 = arith.select %204, %205, %193 : vector<128x32xi1>, vector<128x32xf32>
    %c96_i32_69 = arith.constant 96 : i32
    %207 = vector.broadcast %c96_i32_69 : i32 to vector<128x32xi32>
    %208 = arith.cmpi sge, %126, %207 : vector<128x32xi32>
    %c112_i32 = arith.constant 112 : i32
    %209 = vector.broadcast %c112_i32 : i32 to vector<128x32xi32>
    %210 = arith.cmpi slt, %126, %209 : vector<128x32xi32>
    %211 = arith.andi %208, %210 : vector<128x32xi1>
    %c24_i32_70 = arith.constant 24 : i32
    %212 = vector.broadcast %c24_i32_70 : i32 to vector<128x32xi32>
    %213 = arith.cmpi sge, %127, %212 : vector<128x32xi32>
    %214 = arith.andi %211, %213 : vector<128x32xi1>
    %c28_i32 = arith.constant 28 : i32
    %215 = vector.broadcast %c28_i32 : i32 to vector<128x32xi32>
    %216 = arith.cmpi slt, %127, %215 : vector<128x32xi32>
    %217 = arith.andi %214, %216 : vector<128x32xi1>
    %cst_71 = arith.constant 1.000000e+00 : f32
    %218 = vector.broadcast %cst_71 : f32 to vector<128x32xf32>
    %219 = arith.select %217, %218, %206 : vector<128x32xi1>, vector<128x32xf32>
    %c112_i32_72 = arith.constant 112 : i32
    %220 = vector.broadcast %c112_i32_72 : i32 to vector<128x32xi32>
    %221 = arith.cmpi sge, %126, %220 : vector<128x32xi32>
    %c128_i32 = arith.constant 128 : i32
    %222 = vector.broadcast %c128_i32 : i32 to vector<128x32xi32>
    %223 = arith.cmpi slt, %126, %222 : vector<128x32xi32>
    %224 = arith.andi %221, %223 : vector<128x32xi1>
    %c28_i32_73 = arith.constant 28 : i32
    %225 = vector.broadcast %c28_i32_73 : i32 to vector<128x32xi32>
    %226 = arith.cmpi sge, %127, %225 : vector<128x32xi32>
    %227 = arith.andi %224, %226 : vector<128x32xi1>
    %c32_i32_74 = arith.constant 32 : i32
    %228 = vector.broadcast %c32_i32_74 : i32 to vector<128x32xi32>
    %229 = arith.cmpi slt, %127, %228 : vector<128x32xi32>
    %230 = arith.andi %227, %229 : vector<128x32xi1>
    %cst_75 = arith.constant 1.000000e+00 : f32
    %231 = vector.broadcast %cst_75 : f32 to vector<128x32xf32>
    %232 = arith.select %230, %231, %219 : vector<128x32xi1>, vector<128x32xf32>
    %233 = tpu.concatenate %124, %124, %124, %124, %124, %124, %124, %124 in 0 : vector<16x32xf32>, vector<16x32xf32>, vector<16x32xf32>, vector<16x32xf32>, vector<16x32xf32>, vector<16x32xf32>, vector<16x32xf32>, vector<16x32xf32> -> vector<128x32xf32>
    %234 = arith.mulf %233, %232 : vector<128x32xf32>
    %235 = tpu.concatenate %125, %125, %125, %125, %125, %125, %125, %125 in 0 : vector<16x32xf32>, vector<16x32xf32>, vector<16x32xf32>, vector<16x32xf32>, vector<16x32xf32>, vector<16x32xf32>, vector<16x32xf32>, vector<16x32xf32> -> vector<128x32xf32>
    %236 = arith.mulf %235, %232 : vector<128x32xf32>
    %cst_76 = arith.constant dense<0.000000e+00> : vector<16x128xf32>
    %237 = tpu.matmul %123, %234, %cst_76 {dimension_numbers = #tpu.dot_dimension_numbers<[1], [1], [0], [0], [0, 0, 1, 0], [], []>} : vector<16x32xf32>, vector<128x32xf32>, vector<16x128xf32> -> vector<16x128xf32>
    %238 = tpu.concatenate %81, %81, %81, %81, %81, %81, %81, %81 in 1 : vector<16x16xf32>, vector<16x16xf32>, vector<16x16xf32>, vector<16x16xf32>, vector<16x16xf32>, vector<16x16xf32>, vector<16x16xf32>, vector<16x16xf32> -> vector<16x128xf32>
    %239 = arith.addf %237, %238 : vector<16x128xf32>
    %cst_77 = arith.constant dense<0xFF800000> : vector<16xf32>
    %240 = vector.multi_reduction <maximumf>, %239, %cst_77 [1] : vector<16x128xf32> to vector<16xf32>
    %241 = vector.shape_cast %240 : vector<16xf32> to vector<16x1xf32>
    %242 = vector.broadcast %241 : vector<16x1xf32> to vector<16x128xf32>
    %243 = arith.subf %239, %242 : vector<16x128xf32>
    %244 = math.exp %243 : vector<16x128xf32>
    %245 = tpu.iota {dimensions = array<i32: 0>} : vector<128x128xi32>
    %246 = tpu.iota {dimensions = array<i32: 1>} : vector<128x128xi32>
    %cst_78 = arith.constant 0.000000e+00 : f32
    %247 = vector.broadcast %cst_78 : f32 to vector<128x128xf32>
    %c0_i32_79 = arith.constant 0 : i32
    %248 = vector.broadcast %c0_i32_79 : i32 to vector<128x128xi32>
    %249 = arith.cmpi sge, %245, %248 : vector<128x128xi32>
    %c16_i32_80 = arith.constant 16 : i32
    %250 = vector.broadcast %c16_i32_80 : i32 to vector<128x128xi32>
    %251 = arith.cmpi slt, %245, %250 : vector<128x128xi32>
    %252 = arith.andi %249, %251 : vector<128x128xi1>
    %c0_i32_81 = arith.constant 0 : i32
    %253 = vector.broadcast %c0_i32_81 : i32 to vector<128x128xi32>
    %254 = arith.cmpi sge, %246, %253 : vector<128x128xi32>
    %255 = arith.andi %252, %254 : vector<128x128xi1>
    %c16_i32_82 = arith.constant 16 : i32
    %256 = vector.broadcast %c16_i32_82 : i32 to vector<128x128xi32>
    %257 = arith.cmpi slt, %246, %256 : vector<128x128xi32>
    %258 = arith.andi %255, %257 : vector<128x128xi1>
    %cst_83 = arith.constant 1.000000e+00 : f32
    %259 = vector.broadcast %cst_83 : f32 to vector<128x128xf32>
    %260 = arith.select %258, %259, %247 : vector<128x128xi1>, vector<128x128xf32>
    %c16_i32_84 = arith.constant 16 : i32
    %261 = vector.broadcast %c16_i32_84 : i32 to vector<128x128xi32>
    %262 = arith.cmpi sge, %245, %261 : vector<128x128xi32>
    %c32_i32_85 = arith.constant 32 : i32
    %263 = vector.broadcast %c32_i32_85 : i32 to vector<128x128xi32>
    %264 = arith.cmpi slt, %245, %263 : vector<128x128xi32>
    %265 = arith.andi %262, %264 : vector<128x128xi1>
    %c16_i32_86 = arith.constant 16 : i32
    %266 = vector.broadcast %c16_i32_86 : i32 to vector<128x128xi32>
    %267 = arith.cmpi sge, %246, %266 : vector<128x128xi32>
    %268 = arith.andi %265, %267 : vector<128x128xi1>
    %c32_i32_87 = arith.constant 32 : i32
    %269 = vector.broadcast %c32_i32_87 : i32 to vector<128x128xi32>
    %270 = arith.cmpi slt, %246, %269 : vector<128x128xi32>
    %271 = arith.andi %268, %270 : vector<128x128xi1>
    %cst_88 = arith.constant 1.000000e+00 : f32
    %272 = vector.broadcast %cst_88 : f32 to vector<128x128xf32>
    %273 = arith.select %271, %272, %260 : vector<128x128xi1>, vector<128x128xf32>
    %c32_i32_89 = arith.constant 32 : i32
    %274 = vector.broadcast %c32_i32_89 : i32 to vector<128x128xi32>
    %275 = arith.cmpi sge, %245, %274 : vector<128x128xi32>
    %c48_i32_90 = arith.constant 48 : i32
    %276 = vector.broadcast %c48_i32_90 : i32 to vector<128x128xi32>
    %277 = arith.cmpi slt, %245, %276 : vector<128x128xi32>
    %278 = arith.andi %275, %277 : vector<128x128xi1>
    %c32_i32_91 = arith.constant 32 : i32
    %279 = vector.broadcast %c32_i32_91 : i32 to vector<128x128xi32>
    %280 = arith.cmpi sge, %246, %279 : vector<128x128xi32>
    %281 = arith.andi %278, %280 : vector<128x128xi1>
    %c48_i32_92 = arith.constant 48 : i32
    %282 = vector.broadcast %c48_i32_92 : i32 to vector<128x128xi32>
    %283 = arith.cmpi slt, %246, %282 : vector<128x128xi32>
    %284 = arith.andi %281, %283 : vector<128x128xi1>
    %cst_93 = arith.constant 1.000000e+00 : f32
    %285 = vector.broadcast %cst_93 : f32 to vector<128x128xf32>
    %286 = arith.select %284, %285, %273 : vector<128x128xi1>, vector<128x128xf32>
    %c48_i32_94 = arith.constant 48 : i32
    %287 = vector.broadcast %c48_i32_94 : i32 to vector<128x128xi32>
    %288 = arith.cmpi sge, %245, %287 : vector<128x128xi32>
    %c64_i32_95 = arith.constant 64 : i32
    %289 = vector.broadcast %c64_i32_95 : i32 to vector<128x128xi32>
    %290 = arith.cmpi slt, %245, %289 : vector<128x128xi32>
    %291 = arith.andi %288, %290 : vector<128x128xi1>
    %c48_i32_96 = arith.constant 48 : i32
    %292 = vector.broadcast %c48_i32_96 : i32 to vector<128x128xi32>
    %293 = arith.cmpi sge, %246, %292 : vector<128x128xi32>
    %294 = arith.andi %291, %293 : vector<128x128xi1>
    %c64_i32_97 = arith.constant 64 : i32
    %295 = vector.broadcast %c64_i32_97 : i32 to vector<128x128xi32>
    %296 = arith.cmpi slt, %246, %295 : vector<128x128xi32>
    %297 = arith.andi %294, %296 : vector<128x128xi1>
    %cst_98 = arith.constant 1.000000e+00 : f32
    %298 = vector.broadcast %cst_98 : f32 to vector<128x128xf32>
    %299 = arith.select %297, %298, %286 : vector<128x128xi1>, vector<128x128xf32>
    %c64_i32_99 = arith.constant 64 : i32
    %300 = vector.broadcast %c64_i32_99 : i32 to vector<128x128xi32>
    %301 = arith.cmpi sge, %245, %300 : vector<128x128xi32>
    %c80_i32_100 = arith.constant 80 : i32
    %302 = vector.broadcast %c80_i32_100 : i32 to vector<128x128xi32>
    %303 = arith.cmpi slt, %245, %302 : vector<128x128xi32>
    %304 = arith.andi %301, %303 : vector<128x128xi1>
    %c64_i32_101 = arith.constant 64 : i32
    %305 = vector.broadcast %c64_i32_101 : i32 to vector<128x128xi32>
    %306 = arith.cmpi sge, %246, %305 : vector<128x128xi32>
    %307 = arith.andi %304, %306 : vector<128x128xi1>
    %c80_i32_102 = arith.constant 80 : i32
    %308 = vector.broadcast %c80_i32_102 : i32 to vector<128x128xi32>
    %309 = arith.cmpi slt, %246, %308 : vector<128x128xi32>
    %310 = arith.andi %307, %309 : vector<128x128xi1>
    %cst_103 = arith.constant 1.000000e+00 : f32
    %311 = vector.broadcast %cst_103 : f32 to vector<128x128xf32>
    %312 = arith.select %310, %311, %299 : vector<128x128xi1>, vector<128x128xf32>
    %c80_i32_104 = arith.constant 80 : i32
    %313 = vector.broadcast %c80_i32_104 : i32 to vector<128x128xi32>
    %314 = arith.cmpi sge, %245, %313 : vector<128x128xi32>
    %c96_i32_105 = arith.constant 96 : i32
    %315 = vector.broadcast %c96_i32_105 : i32 to vector<128x128xi32>
    %316 = arith.cmpi slt, %245, %315 : vector<128x128xi32>
    %317 = arith.andi %314, %316 : vector<128x128xi1>
    %c80_i32_106 = arith.constant 80 : i32
    %318 = vector.broadcast %c80_i32_106 : i32 to vector<128x128xi32>
    %319 = arith.cmpi sge, %246, %318 : vector<128x128xi32>
    %320 = arith.andi %317, %319 : vector<128x128xi1>
    %c96_i32_107 = arith.constant 96 : i32
    %321 = vector.broadcast %c96_i32_107 : i32 to vector<128x128xi32>
    %322 = arith.cmpi slt, %246, %321 : vector<128x128xi32>
    %323 = arith.andi %320, %322 : vector<128x128xi1>
    %cst_108 = arith.constant 1.000000e+00 : f32
    %324 = vector.broadcast %cst_108 : f32 to vector<128x128xf32>
    %325 = arith.select %323, %324, %312 : vector<128x128xi1>, vector<128x128xf32>
    %c96_i32_109 = arith.constant 96 : i32
    %326 = vector.broadcast %c96_i32_109 : i32 to vector<128x128xi32>
    %327 = arith.cmpi sge, %245, %326 : vector<128x128xi32>
    %c112_i32_110 = arith.constant 112 : i32
    %328 = vector.broadcast %c112_i32_110 : i32 to vector<128x128xi32>
    %329 = arith.cmpi slt, %245, %328 : vector<128x128xi32>
    %330 = arith.andi %327, %329 : vector<128x128xi1>
    %c96_i32_111 = arith.constant 96 : i32
    %331 = vector.broadcast %c96_i32_111 : i32 to vector<128x128xi32>
    %332 = arith.cmpi sge, %246, %331 : vector<128x128xi32>
    %333 = arith.andi %330, %332 : vector<128x128xi1>
    %c112_i32_112 = arith.constant 112 : i32
    %334 = vector.broadcast %c112_i32_112 : i32 to vector<128x128xi32>
    %335 = arith.cmpi slt, %246, %334 : vector<128x128xi32>
    %336 = arith.andi %333, %335 : vector<128x128xi1>
    %cst_113 = arith.constant 1.000000e+00 : f32
    %337 = vector.broadcast %cst_113 : f32 to vector<128x128xf32>
    %338 = arith.select %336, %337, %325 : vector<128x128xi1>, vector<128x128xf32>
    %c112_i32_114 = arith.constant 112 : i32
    %339 = vector.broadcast %c112_i32_114 : i32 to vector<128x128xi32>
    %340 = arith.cmpi sge, %245, %339 : vector<128x128xi32>
    %c128_i32_115 = arith.constant 128 : i32
    %341 = vector.broadcast %c128_i32_115 : i32 to vector<128x128xi32>
    %342 = arith.cmpi slt, %245, %341 : vector<128x128xi32>
    %343 = arith.andi %340, %342 : vector<128x128xi1>
    %c112_i32_116 = arith.constant 112 : i32
    %344 = vector.broadcast %c112_i32_116 : i32 to vector<128x128xi32>
    %345 = arith.cmpi sge, %246, %344 : vector<128x128xi32>
    %346 = arith.andi %343, %345 : vector<128x128xi1>
    %c128_i32_117 = arith.constant 128 : i32
    %347 = vector.broadcast %c128_i32_117 : i32 to vector<128x128xi32>
    %348 = arith.cmpi slt, %246, %347 : vector<128x128xi32>
    %349 = arith.andi %346, %348 : vector<128x128xi1>
    %cst_118 = arith.constant 1.000000e+00 : f32
    %350 = vector.broadcast %cst_118 : f32 to vector<128x128xf32>
    %351 = arith.select %349, %350, %338 : vector<128x128xi1>, vector<128x128xf32>
    %cst_119 = arith.constant dense<0.000000e+00> : vector<16x128xf32>
    %352 = tpu.matmul %244, %351, %cst_119 {dimension_numbers = #tpu.dot_dimension_numbers<[1], [0], [0], [1], [0, 0, 1, 1], [], []>} : vector<16x128xf32>, vector<128x128xf32>, vector<16x128xf32> -> vector<16x128xf32>
    %cst_120 = arith.constant 1.000000e-30 : f32
    %353 = vector.broadcast %cst_120 : f32 to vector<16x128xf32>
    %354 = arith.maximumf %352, %353 : vector<16x128xf32>
    %355 = arith.divf %244, %354 : vector<16x128xf32>
    %cst_121 = arith.constant dense<0.000000e+00> : vector<16x32xf32>
    %356 = tpu.matmul %355, %236, %cst_121 {dimension_numbers = #tpu.dot_dimension_numbers<[1], [0], [0], [1], [0, 0, 1, 1], [], []>} : vector<16x128xf32>, vector<128x32xf32>, vector<16x32xf32> -> vector<16x32xf32>
    %c64_122 = arith.constant 64 : index
    %c0_123 = arith.constant 0 : index
    %357 = vector.load %arg4[%c64_122, %c0_123] : memref<96x128xbf16, #tpu.memory_space<vmem>>, vector<32x32xbf16>
    %c2 = arith.constant 2 : index
    %c0_124 = arith.constant 0 : index
    %358 = vector.load %arg7[%c2, %c0_124] : memref<80x128xf32, #tpu.memory_space<vmem>>, vector<1x32xf32>
    %359 = arith.truncf %356 : vector<16x32xf32> to vector<16x32xbf16>
    %cst_125 = arith.constant dense<0.000000e+00> : vector<16x32xf32>
    %360 = tpu.matmul %359, %357, %cst_125 {dimension_numbers = #tpu.dot_dimension_numbers<[1], [0], [0], [1], [0, 0, 1, 1], [], []>} : vector<16x32xbf16>, vector<32x32xbf16>, vector<16x32xf32> -> vector<16x32xf32>
    %361 = vector.broadcast %358 : vector<1x32xf32> to vector<16x32xf32>
    %362 = arith.addf %360, %361 : vector<16x32xf32>
    %c3 = arith.constant 3 : index
    %c0_126 = arith.constant 0 : index
    %363 = vector.load %arg7[%c3, %c0_126] : memref<80x128xf32, #tpu.memory_space<vmem>>, vector<1x32xf32>
    %c4 = arith.constant 4 : index
    %c0_127 = arith.constant 0 : index
    %364 = vector.load %arg7[%c4, %c0_127] : memref<80x128xf32, #tpu.memory_space<vmem>>, vector<1x32xf32>
    %c5 = arith.constant 5 : index
    %c0_128 = arith.constant 0 : index
    %365 = vector.load %arg7[%c5, %c0_128] : memref<80x128xf32, #tpu.memory_space<vmem>>, vector<1x32xf32>
    %c6 = arith.constant 6 : index
    %c0_129 = arith.constant 0 : index
    %366 = vector.load %arg7[%c6, %c0_129] : memref<80x128xf32, #tpu.memory_space<vmem>>, vector<1x32xf32>
    %367 = arith.addf %114, %362 : vector<16x32xf32>
    %cst_130 = arith.constant dense<0.000000e+00> : vector<16xf32>
    %368 = vector.multi_reduction <add>, %367, %cst_130 [1] : vector<16x32xf32> to vector<16xf32>
    %369 = vector.shape_cast %368 : vector<16xf32> to vector<16x1xf32>
    %cst_131 = arith.constant 3.200000e+01 : f32
    %370 = vector.broadcast %cst_131 : f32 to vector<16x1xf32>
    %371 = arith.divf %369, %370 : vector<16x1xf32>
    %372 = vector.broadcast %371 : vector<16x1xf32> to vector<16x32xf32>
    %373 = arith.subf %367, %372 : vector<16x32xf32>
    %374 = arith.mulf %373, %373 : vector<16x32xf32>
    %cst_132 = arith.constant dense<0.000000e+00> : vector<16xf32>
    %375 = vector.multi_reduction <add>, %374, %cst_132 [1] : vector<16x32xf32> to vector<16xf32>
    %376 = vector.shape_cast %375 : vector<16xf32> to vector<16x1xf32>
    %cst_133 = arith.constant 3.200000e+01 : f32
    %377 = vector.broadcast %cst_133 : f32 to vector<16x1xf32>
    %378 = arith.divf %376, %377 : vector<16x1xf32>
    %379 = vector.broadcast %371 : vector<16x1xf32> to vector<16x32xf32>
    %380 = arith.subf %367, %379 : vector<16x32xf32>
    %cst_134 = arith.constant 9.99999974E-6 : f32
    %381 = vector.broadcast %cst_134 : f32 to vector<16x1xf32>
    %382 = arith.addf %378, %381 : vector<16x1xf32>
    %383 = math.rsqrt %382 : vector<16x1xf32>
    %384 = vector.broadcast %383 : vector<16x1xf32> to vector<16x32xf32>
    %385 = arith.mulf %380, %384 : vector<16x32xf32>
    %386 = vector.broadcast %363 : vector<1x32xf32> to vector<16x32xf32>
    %387 = arith.mulf %385, %386 : vector<16x32xf32>
    %388 = vector.broadcast %364 : vector<1x32xf32> to vector<16x32xf32>
    %389 = arith.addf %387, %388 : vector<16x32xf32>
    %c0_135 = arith.constant 0 : index
    %c0_136 = arith.constant 0 : index
    %390 = vector.load %arg5[%c0_135, %c0_136] : memref<48x2048xbf16, #tpu.memory_space<vmem>>, vector<32x2048xbf16>
    %c32_137 = arith.constant 32 : index
    %c0_138 = arith.constant 0 : index
    %391 = vector.load %arg5[%c32_137, %c0_138] : memref<48x2048xbf16, #tpu.memory_space<vmem>>, vector<1x2048xbf16>
    %392 = arith.extf %391 : vector<1x2048xbf16> to vector<1x2048xf32>
    %393 = arith.truncf %389 : vector<16x32xf32> to vector<16x32xbf16>
    %cst_139 = arith.constant dense<0.000000e+00> : vector<16x2048xf32>
    %394 = tpu.matmul %393, %390, %cst_139 {dimension_numbers = #tpu.dot_dimension_numbers<[1], [0], [0], [1], [0, 0, 1, 1], [], []>} : vector<16x32xbf16>, vector<32x2048xbf16>, vector<16x2048xf32> -> vector<16x2048xf32>
    %395 = vector.broadcast %392 : vector<1x2048xf32> to vector<16x2048xf32>
    %396 = arith.addf %394, %395 : vector<16x2048xf32>
    %cst_140 = arith.constant 0.000000e+00 : f32
    %397 = vector.broadcast %cst_140 : f32 to vector<16x2048xf32>
    %398 = arith.maximumf %396, %397 : vector<16x2048xf32>
    %c7 = arith.constant 7 : index
    %c0_141 = arith.constant 0 : index
    %399 = vector.load %arg7[%c7, %c0_141] : memref<80x128xf32, #tpu.memory_space<vmem>>, vector<1x32xf32>
    %400 = arith.truncf %398 : vector<16x2048xf32> to vector<16x2048xbf16>
    %c0_142 = arith.constant 0 : index
    %c0_143 = arith.constant 0 : index
    %401 = vector.load %arg6[%c0_142, %c0_143] : memref<2048x32xbf16, #tpu.memory_space<vmem>>, vector<2048x32xbf16>
    %cst_144 = arith.constant dense<0.000000e+00> : vector<16x32xf32>
    %402 = tpu.matmul %400, %401, %cst_144 {dimension_numbers = #tpu.dot_dimension_numbers<[1], [0], [0], [1], [0, 0, 1, 1], [], []>} : vector<16x2048xbf16>, vector<2048x32xbf16>, vector<16x32xf32> -> vector<16x32xf32>
    %403 = vector.broadcast %399 : vector<1x32xf32> to vector<16x32xf32>
    %404 = arith.addf %402, %403 : vector<16x32xf32>
    %405 = arith.addf %389, %404 : vector<16x32xf32>
    %cst_145 = arith.constant dense<0.000000e+00> : vector<16xf32>
    %406 = vector.multi_reduction <add>, %405, %cst_145 [1] : vector<16x32xf32> to vector<16xf32>
    %407 = vector.shape_cast %406 : vector<16xf32> to vector<16x1xf32>
    %cst_146 = arith.constant 3.200000e+01 : f32
    %408 = vector.broadcast %cst_146 : f32 to vector<16x1xf32>
    %409 = arith.divf %407, %408 : vector<16x1xf32>
    %410 = vector.broadcast %409 : vector<16x1xf32> to vector<16x32xf32>
    %411 = arith.subf %405, %410 : vector<16x32xf32>
    %412 = arith.mulf %411, %411 : vector<16x32xf32>
    %cst_147 = arith.constant dense<0.000000e+00> : vector<16xf32>
    %413 = vector.multi_reduction <add>, %412, %cst_147 [1] : vector<16x32xf32> to vector<16xf32>
    %414 = vector.shape_cast %413 : vector<16xf32> to vector<16x1xf32>
    %cst_148 = arith.constant 3.200000e+01 : f32
    %415 = vector.broadcast %cst_148 : f32 to vector<16x1xf32>
    %416 = arith.divf %414, %415 : vector<16x1xf32>
    %417 = vector.broadcast %409 : vector<16x1xf32> to vector<16x32xf32>
    %418 = arith.subf %405, %417 : vector<16x32xf32>
    %cst_149 = arith.constant 9.99999974E-6 : f32
    %419 = vector.broadcast %cst_149 : f32 to vector<16x1xf32>
    %420 = arith.addf %416, %419 : vector<16x1xf32>
    %421 = math.rsqrt %420 : vector<16x1xf32>
    %422 = vector.broadcast %421 : vector<16x1xf32> to vector<16x32xf32>
    %423 = arith.mulf %418, %422 : vector<16x32xf32>
    %424 = vector.broadcast %365 : vector<1x32xf32> to vector<16x32xf32>
    %425 = arith.mulf %423, %424 : vector<16x32xf32>
    %426 = vector.broadcast %366 : vector<1x32xf32> to vector<16x32xf32>
    %427 = arith.addf %425, %426 : vector<16x32xf32>
    %428 = tpu.iota {dimensions = array<i32: 0>} : vector<2x16xi32>
    %429 = tpu.iota {dimensions = array<i32: 1>} : vector<2x16xi32>
    %c0_i32_150 = arith.constant 0 : i32
    %430 = vector.broadcast %c0_i32_150 : i32 to vector<2x16xi32>
    %c0_i32_151 = arith.constant 0 : i32
    %431 = vector.broadcast %c0_i32_151 : i32 to vector<2x16xi32>
    %432 = arith.cmpi eq, %428, %431 : vector<2x16xi32>
    %c0_152 = arith.constant 0 : index
    %433 = memref.load %arg1[%c0_152] : memref<2xi32, #tpu.memory_space<smem>>
    %434 = vector.broadcast %433 : i32 to vector<2x16xi32>
    %435 = arith.select %432, %434, %430 : vector<2x16xi1>, vector<2x16xi32>
    %c1_i32_153 = arith.constant 1 : i32
    %436 = vector.broadcast %c1_i32_153 : i32 to vector<2x16xi32>
    %437 = arith.cmpi eq, %428, %436 : vector<2x16xi32>
    %c1_154 = arith.constant 1 : index
    %438 = memref.load %arg1[%c1_154] : memref<2xi32, #tpu.memory_space<smem>>
    %439 = vector.broadcast %438 : i32 to vector<2x16xi32>
    %440 = arith.select %437, %439, %435 : vector<2x16xi1>, vector<2x16xi32>
    %c8_i32_155 = arith.constant 8 : i32
    %441 = vector.broadcast %c8_i32_155 : i32 to vector<2x16xi32>
    %442 = arith.muli %428, %441 : vector<2x16xi32>
    %443 = arith.cmpi sge, %429, %442 : vector<2x16xi32>
    %c1_i32_156 = arith.constant 1 : i32
    %444 = vector.broadcast %c1_i32_156 : i32 to vector<2x16xi32>
    %445 = arith.addi %428, %444 : vector<2x16xi32>
    %c8_i32_157 = arith.constant 8 : i32
    %446 = vector.broadcast %c8_i32_157 : i32 to vector<2x16xi32>
    %447 = arith.muli %445, %446 : vector<2x16xi32>
    %448 = arith.cmpi slt, %429, %447 : vector<2x16xi32>
    %449 = arith.andi %443, %448 : vector<2x16xi1>
    %c8_i32_158 = arith.constant 8 : i32
    %450 = vector.broadcast %c8_i32_158 : i32 to vector<2x16xi32>
    %451 = arith.muli %428, %450 : vector<2x16xi32>
    %452 = arith.subi %429, %451 : vector<2x16xi32>
    %453 = arith.cmpi slt, %452, %440 : vector<2x16xi32>
    %454 = arith.andi %449, %453 : vector<2x16xi1>
    %455 = arith.extui %454 : vector<2x16xi1> to vector<2x16xi32>
    %456 = arith.sitofp %455 : vector<2x16xi32> to vector<2x16xf32>
    %457 = arith.sitofp %440 : vector<2x16xi32> to vector<2x16xf32>
    %cst_159 = arith.constant 1.000000e+00 : f32
    %458 = vector.broadcast %cst_159 : f32 to vector<2x16xf32>
    %459 = arith.maximumf %457, %458 : vector<2x16xf32>
    %460 = arith.divf %456, %459 : vector<2x16xf32>
    %cst_160 = arith.constant dense<0.000000e+00> : vector<2x32xf32>
    %461 = tpu.matmul %460, %427, %cst_160 {dimension_numbers = #tpu.dot_dimension_numbers<[1], [0], [0], [1], [0, 0, 1, 1], [], []>} : vector<2x16xf32>, vector<16x32xf32>, vector<2x32xf32> -> vector<2x32xf32>
    %c16 = arith.constant 16 : index
    %c0_161 = arith.constant 0 : index
    %462 = vector.load %arg7[%c16, %c0_161] : memref<80x128xf32, #tpu.memory_space<vmem>>, vector<32x16xf32>
    %c8 = arith.constant 8 : index
    %c0_162 = arith.constant 0 : index
    %463 = vector.load %arg7[%c8, %c0_162] : memref<80x128xf32, #tpu.memory_space<vmem>>, vector<1x16xf32>
    %c48 = arith.constant 48 : index
    %c0_163 = arith.constant 0 : index
    %464 = vector.load %arg7[%c48, %c0_163] : memref<80x128xf32, #tpu.memory_space<vmem>>, vector<16x4xf32>
    %c9 = arith.constant 9 : index
    %c0_164 = arith.constant 0 : index
    %465 = vector.load %arg7[%c9, %c0_164] : memref<80x128xf32, #tpu.memory_space<vmem>>, vector<1x4xf32>
    %cst_165 = arith.constant dense<0.000000e+00> : vector<2x16xf32>
    %466 = tpu.matmul %461, %462, %cst_165 {dimension_numbers = #tpu.dot_dimension_numbers<[1], [0], [0], [1], [0, 0, 1, 1], [], []>} : vector<2x32xf32>, vector<32x16xf32>, vector<2x16xf32> -> vector<2x16xf32>
    %467 = vector.broadcast %463 : vector<1x16xf32> to vector<2x16xf32>
    %468 = arith.addf %466, %467 : vector<2x16xf32>
    %cst_166 = arith.constant dense<0.000000e+00> : vector<2x4xf32>
    %469 = tpu.matmul %468, %464, %cst_166 {dimension_numbers = #tpu.dot_dimension_numbers<[1], [0], [0], [1], [0, 0, 1, 1], [], []>} : vector<2x16xf32>, vector<16x4xf32>, vector<2x4xf32> -> vector<2x4xf32>
    %470 = vector.broadcast %465 : vector<1x4xf32> to vector<2x4xf32>
    %471 = arith.addf %469, %470 : vector<2x4xf32>
    %cst_167 = arith.constant 0.000000e+00 : f32
    %472 = vector.broadcast %cst_167 : f32 to vector<2x108xf32>
    %473 = tpu.concatenate %471, %468, %472 in 1 : vector<2x4xf32>, vector<2x16xf32>, vector<2x108xf32> -> vector<2x128xf32>
    %c0_168 = arith.constant 0 : index
    %c0_169 = arith.constant 0 : index
    %474 = vector.load %arg8[%c0_168, %c0_169] : memref<2x128xf32, #tpu.memory_space<vmem>>, vector<2x128xf32>
    tpu.vector_store %arg8[%c0_168, %c0_169], %473 {strides = array<i32>} : memref<2x128xf32, #tpu.memory_space<vmem>>, vector<2x128xf32>,
    return
  }
  func.func @transform_0(%arg0: i32, %arg1: memref<2xi32, #tpu.memory_space<smem>>) -> (i32, i32) {
    %c0_i32 = arith.constant 0 : i32
    %c0_i32_0 = arith.constant 0 : i32
    %c0_i32_1 = arith.constant 0 : i32
    return %c0_i32, %c0_i32_0 : i32, i32
  }
  func.func @transform_1(%arg0: i32, %arg1: memref<2xi32, #tpu.memory_space<smem>>) -> (i32, i32) {
    %c0_i32 = arith.constant 0 : i32
    %c0_i32_0 = arith.constant 0 : i32
    %c0_i32_1 = arith.constant 0 : i32
    return %c0_i32, %c0_i32_0 : i32, i32
  }
  func.func @transform_2(%arg0: i32, %arg1: memref<2xi32, #tpu.memory_space<smem>>) -> (i32, i32) {
    %c0_i32 = arith.constant 0 : i32
    %c0_i32_0 = arith.constant 0 : i32
    %c0_i32_1 = arith.constant 0 : i32
    return %c0_i32, %c0_i32_0 : i32, i32
  }
  func.func @transform_3(%arg0: i32, %arg1: memref<2xi32, #tpu.memory_space<smem>>) -> (i32, i32) {
    %c0_i32 = arith.constant 0 : i32
    %c0_i32_0 = arith.constant 0 : i32
    %c0_i32_1 = arith.constant 0 : i32
    return %c0_i32, %c0_i32_0 : i32, i32
  }
  func.func @transform_4(%arg0: i32, %arg1: memref<2xi32, #tpu.memory_space<smem>>) -> (i32, i32) {
    %c0_i32 = arith.constant 0 : i32
    %c0_i32_0 = arith.constant 0 : i32
    %c0_i32_1 = arith.constant 0 : i32
    return %c0_i32, %c0_i32_0 : i32, i32
  }
  func.func @transform_5(%arg0: i32, %arg1: memref<2xi32, #tpu.memory_space<smem>>) -> (i32, i32) {
    %c0_i32 = arith.constant 0 : i32
    %c0_i32_0 = arith.constant 0 : i32
    %c0_i32_1 = arith.constant 0 : i32
    return %c0_i32, %c0_i32_0 : i32, i32
  }
  func.func @transform_6(%arg0: i32, %arg1: memref<2xi32, #tpu.memory_space<smem>>) -> (i32, i32) {
    %c0_i32 = arith.constant 0 : i32
    %c0_i32_0 = arith.constant 0 : i32
    %c0_i32_1 = arith.constant 0 : i32
    return %c0_i32, %c0_i32_0 : i32, i32
  }
}

</mosaic_0001>

<bundles_post_ra>
// kernel: tpu_custom_call.1
= control target key start
LH: loop header
LB: loop body
LE: loop exit
PB: predicated region body
PF: predicated region fallthrough
CT: control target
= control target key end

     0   :  { %s7040_s0 = inlined_call_operand.vmem [shape: s32[2], index: 0, kind: input, shape index: {}]   ;;  %s7041_s1 = inlined_call_operand.vmem [shape: f32[256,32], index: 1, kind: input, shape index: {}]   ;;  %s7042_s2 = inlined_call_operand.vmem [shape: f32[1,256], index: 2, kind: input, shape index: {}]   ;;  %s7043_s3 = inlined_call_operand.vmem [shape: bf16[96,128], index: 3, kind: input, shape index: {}]   ;;  %s7044_s4 = inlined_call_operand.vmem [shape: bf16[48,2048], index: 4, kind: input, shape index: {}]   ;;  %s7045_s5 = inlined_call_operand.vmem [shape: bf16[2048,32], index: 5, kind: input, shape index: {}]   ;;  %s7046_s6 = inlined_call_operand.vmem [shape: f32[80,128], index: 6, kind: input, shape index: {}]   ;;  %s7047_s7 = inlined_call_operand.hbm [shape: f32[2,128], index: 7, kind: output, shape index: {}]  }
   0x1   :  { %s12_s26 = sshll.u32 %s7040_s0, 4  ;;  %s13_s26 = int_to_ptr.vmem [resolvable:$true] %s12_s26 }
   0x2   :  { %s5777_s27 = scalar_lea.vmem %s13_s26, 16  ;;  %p5782_p1 = scmp.lt.s32.totalorder %s13_s26, %s13_s26 }
   0x3   :  { %p5778_p0 = scmp.ne.s32.totalorder %s13_s26, %s5777_s27  ;;  %p5783_p2 = scmp.lt.s32.totalorder %s5777_s27, %s5777_s27 }
   0x5   :  { %p5784_p3 = por %p5783_p2, %p5782_p1 }
   0x7   :  { %p5785_p4 = pnand %p5784_p3, %p5778_p0 }
   0x9   :  { %5788 = shalt.err (!%p5785_p4)  }
   0xa   :  { %s5815_s28 = smov [#allocation3]  }
   0xb   :  { %15 = dma.vmem_to_smem %s13_s26, 16, %s5815_s28, [#allocation2] }
   0xc   :  { %5811 = dma.done.wait [#allocation2], 16 }
   0xd   :  { %5812 = vsyncadd [#allocation2], 4294967280 }
   0xe   :  { %17 = sfence }
   0xf   :  { %v32_v0 = vlaneseq  ;;  %v156_v1 = vld [vmem:[%s7041_s1 + $0x80] sm:$0xff]  ;;  %v157_v2 = vld [vmem:[%s7041_s1 + $0x88] sm:$0xff]  ;;  %v158_v6 = vld [vmem:[%s7041_s1 + $0x90] sm:$0xff]  ;;  %v5816_v63 = vmov 0.0  }
  0x10   :  { %v5289_v3 = vpack.c.bf16 %v157_v2, %v156_v1  ;;  %v140_v4 = vld [vmem:[%s7041_s1] sm:$0xff]  ;;  %v141_v5 = vld [vmem:[%s7041_s1 + $0x8] sm:$0xff]  ;;  %v159_v10 = vld [vmem:[%s7041_s1 + $0x98] sm:$0xff]  ;;  %5135 = vmatprep.subr.bf16.mxu1 %v5816_v63 }
  0x11   :  { %v5889_v7 = vshrl.u32 %v32_v0, 7  ;;  %v5891_v8 = vand.u32 127, %v32_v0  ;;  %v5291_v9 = vpack.c.bf16 %v141_v5, %v140_v4  ;;  %v142_v11 = vld [vmem:[%s7041_s1 + $0x10] sm:$0xff]  ;;  %v143_v12 = vld [vmem:[%s7041_s1 + $0x18] sm:$0xff]  ;;  %v108_v13 = vld [vmem:[%s7042_s2] sm:$0x3]  ;;  %v5293_v14 = vpack.c.bf16 %v159_v10, %v158_v6 }
  0x12   :  { %5290 = vmatprep.subr.bf16.mxu0 %v5289_v3  ;;  %v5295_v15 = vpack.c.bf16 %v143_v12, %v142_v11  ;;  %v160_v16 = vld [vmem:[%s7041_s1 + $0xa0] sm:$0xff]  ;;  %v161_v17 = vld [vmem:[%s7041_s1 + $0xa8] sm:$0xff]  ;;  %v162_v26 = vld [vmem:[%s7041_s1 + $0xb0] sm:$0xff] }
  0x13   :  { %v91_v18 = vadd.s32 128, %v5891_v8  ;;  %v92_v19 = vmul.u32 16, %v5889_v7  ;;  %v5914_v20 = vsub.s32 0, %v5889_v7  ;;  %v116_v21 = vsub.s32 1, %v5889_v7  ;;  %5292 = vmatpush3.bf16.msra.mxu0 %v5291_v9  ;;  %v144_v24 = vld [vmem:[%s7041_s1 + $0x20] sm:$0xff]  ;;  %v145_v25 = vld [vmem:[%s7041_s1 + $0x28] sm:$0xff] }
  0x14   :  { %v5918_v22 = vadd.s32 8, %v5889_v7  ;;  %5294 = vmatprep.subr.bf16.mxu0 %v5293_v14  ;;  %v5297_v23 = vpack.c.bf16 %v161_v17, %v160_v16  ;;  %v163_v29 = vld [vmem:[%s7041_s1 + $0xb8] sm:$0xff]  ;;  %v146_v32 = vld [vmem:[%s7041_s1 + $0x30] sm:$0xff]  ;;  %v5299_v34 = vpack.c.bf16 %v145_v25, %v144_v24  ;;  %v164_v44 = vld [vmem:[%s7041_s1 + $0xc0] sm:$0xff] }
  0x15   :  { %vm94_vm0 = vcmp.ge.s32.totalorder %v5891_v8, %v92_v19  ;;  %v98_v27 = vadd.s32 16, %v92_v19  ;;  %v113_v28 = vrot.slane %v108_v13, %v5914_v20  ;;  %vm95_vm1 = vcmp.ge.s32.totalorder %v91_v18, %v92_v19  ;;  %v147_v33 = vld [vmem:[%s7041_s1 + $0x38] sm:$0xff]  ;;  %v165_v45 = vld [vmem:[%s7041_s1 + $0xc8] sm:$0xff]  ;;  %v148_v47 = vld [vmem:[%s7041_s1 + $0x40] sm:$0xff] }
  0x16   :  { %v117_v30 = vrot.slane %v108_v13, %v116_v21  ;;  %v93_v31 = vmul.u32 16, %v5918_v22  ;;  %v5301_v36 = vpack.c.bf16 %v163_v29, %v162_v26  ;;  %v5303_v40 = vpack.c.bf16 %v147_v33, %v146_v32  ;;  %v149_v48 = vld [vmem:[%s7041_s1 + $0x48] sm:$0xff]  ;;  %v166_v50 = vld [vmem:[%s7041_s1 + $0xd0] sm:$0xff]  ;;  %v167_v51 = vld [vmem:[%s7041_s1 + $0xd8] sm:$0xff] }
  0x17   :  { %vm100_vm2 = vcmp.lt.s32.totalorder %v5891_v8, %v98_v27  ;;  %vm101_vm3 = vcmp.lt.s32.totalorder %v91_v18, %v98_v27  ;;  %5296 = vmatpush3.bf16.msra.mxu0 %v5295_v15  ;;  %v5305_v46 = vpack.c.bf16 %v165_v45, %v164_v44  ;;  %v5307_v49 = vpack.c.bf16 %v149_v48, %v148_v47  ;;  %v150_v53 = vld [vmem:[%s7041_s1 + $0x50] sm:$0xff]  ;;  %v151_v54 = vld [vmem:[%s7041_s1 + $0x58] sm:$0xff]  ;;  %v168_v56 = vld [vmem:[%s7041_s1 + $0xe0] sm:$0xff] }
  0x18   :  { %vm104_vm4 = vmand %vm94_vm0, %vm100_vm2  ;;  %vm96_vm5 = vcmp.ge.s32.totalorder %v5891_v8, %v93_v31  ;;  %v99_v35 = vadd.s32 16, %v93_v31  ;;  %5298 = vmatprep.subr.bf16.mxu0 %v5297_v23  ;;  %vm97_vm7 = vcmp.ge.s32.totalorder %v91_v18, %v93_v31  ;;  %v5309_v52 = vpack.c.bf16 %v167_v51, %v166_v50  ;;  %v169_v57 = vld [vmem:[%s7041_s1 + $0xe8] sm:$0xff]  ;;  %v152_v58 = vld [vmem:[%s7041_s1 + $0x60] sm:$0xff] }
  0x19   :  { %vm105_vm6 = vmand %vm95_vm1, %vm101_vm3  ;;  %v5943_v37 = vsel %vm104_vm4, %v113_v28, 0.0  ;;  %v5311_v55 = vpack.c.bf16 %v151_v54, %v150_v53  ;;  %v5313_v59 = vpack.c.bf16 %v169_v57, %v168_v56  ;;  %v153_v60 = vld [vmem:[%s7041_s1 + $0x68] sm:$0xff]  ;;  %v170_v61 = vld [vmem:[%s7041_s1 + $0xf0] sm:$0xff] }
  0x1a   :  { %v5945_v38 = vsel %vm105_vm6, %v117_v30, 0.0  ;;  %vm102_vm8 = vcmp.lt.s32.totalorder %v5891_v8, %v99_v35  ;;  %vm103_vm9 = vcmp.lt.s32.totalorder %v91_v18, %v99_v35  ;;  %v171_v62 = vld [vmem:[%s7041_s1 + $0xf8] sm:$0xff]  ;;  %v5315_v0 = vpack.c.bf16 %v153_v60, %v152_v58  ;;  %v154_v2 = vld [vmem:[%s7041_s1 + $0x70] sm:$0xff] }
  0x1b   :  { %v124_v39 = vadd.f32 %v5945_v38, %v5943_v37  ;;  %vm106_vm10 = vmand %vm96_vm5, %vm102_vm8  ;;  %5300 = vmatpush3.bf16.msra.mxu0 %v5299_v34  ;;  %v5317_v1 = vpack.c.bf16 %v171_v62, %v170_v61  ;;  %v155_v3 = vld [vmem:[%s7041_s1 + $0x78] sm:$0xff] }
  0x1c   :  { %vm107_vm11 = vmand %vm97_vm7, %vm103_vm9  ;;  %v5950_v41 = vsel %vm106_vm10, %v113_v28, 0.0  ;;  %5302 = vmatprep.subr.bf16.mxu0 %v5301_v36  ;;  %v5319_v4 = vpack.c.bf16 %v155_v3, %v154_v2 }
  0x1d   :  { %125 = vadd.xlane.f32.xlu0 %v124_v39  ;;  %v123_v42 = vsel %vm107_vm11, %v117_v30, 0.0 }
  0x1e   :  { %v127_v43 = vadd.f32 %v123_v42, %v5950_v41 }
  0x1f   :  { %5304 = vmatpush3.bf16.msra.mxu0 %v5303_v40 }
  0x20   :  { %5306 = vmatprep.subr.bf16.mxu0 %v5305_v46 }
  0x21   :  { %128 = vadd.xlane.f32.xlu0 %v127_v43 }
  0x23   :  { %5308 = vmatpush3.bf16.msra.mxu0 %v5307_v49 }
  0x24   :  { %5310 = vmatprep.subr.bf16.mxu0 %v5309_v52 }
  0x27   :  { %5312 = vmatpush3.bf16.msra.mxu0 %v5311_v55 }
  0x28   :  { %5314 = vmatprep.subr.bf16.mxu0 %v5313_v59 }
  0x2b   :  { %5316 = vmatpush3.bf16.msra.mxu0 %v5315_v0 }
  0x2c   :  { %5318 = vmatprep.subr.bf16.mxu0 %v5317_v1 }
  0x2f   :  { %5320 = vmatpush3.bf16.msra.mxu0 %v5319_v4 }
  0x30   :  { %18 = vsyncpa [#allocation5], 0  ;;  %s41_s21 = sld [smem:[#allocation3]]  ;;  %s4615_s22 = sld [smem:[#allocation3 + $0x1]]  ;;  %v6007_v12 = vadd.s32 4294967288, %v5918_v22  ;;  %v5621_v25 = vld [vmem:[%s7043_s3] sm:$0xff]  }
  0x31   :  { %5136 = vmatpush3.bf16.msra.mxu1 %v5621_v25  ;;  %v5622_v26 = vld [vmem:[%s7043_s3 + $0x8] sm:$0xff]   ;;  %vm5817_vm14 = vmmov 0   ;;  %vm271_vm15 = vcmask 261120   ;;  %v5623_v34 = vld [vmem:[%s7043_s3 + $0x10] sm:$0xff]   ;;  %v5624_v35 = vld [vmem:[%s7043_s3 + $0x18] sm:$0xff]   ;;  %vm460_vm0 = vcmp.lt.s32.totalorder %v5891_v8, 4 }
  0x32   :  { %5137 = vmatprep.subr.bf16.mxu1 %v5816_v63  ;;  %5139 = vmatprep.mubr.msk.bf16.mxu1 %vm5817_vm14, %v5816_v63  ;;  %vm70_vm1 = vcmp.lt.s32.totalorder %v5891_v8, 8  ;;  %vm541_vm2 = vcmp.ge.s32.totalorder %v5891_v8, 4  ;;  %vm74_vm3 = vcmp.lt.s32.totalorder %v5891_v8, 16  ;;  %v477_v36 = vsel %vm460_vm0, 1.0, %v5816_v63  ;;  %s5818_s29 = smov 32   ;;  %v252_v3 = vld [vmem:[%s7046_s6 + $0x40] sm:$0xff] }
  0x33   :  { %vm560_vm4 = vmand %vm541_vm2, %vm70_vm1  ;;  %vm735_vm5 = vcmp.ge.s32.totalorder %v5891_v8, 12  ;;  %vm832_vm7 = vcmp.ge.s32.totalorder %v5891_v8, 16  ;;  %vm849_vm8 = vcmp.lt.s32.totalorder %v5891_v8, 20  ;;  %vm73_vm10 = vcmp.ge.s32.totalorder %v5891_v8, 8  ;;  %v4621_v62 = vld [vmem:[%s7046_s6] ss:$0 sm:$0xff] }
  0x34   :  { %vm758_vm6 = vmand %vm735_vm5, %vm74_vm3  ;;  %vm930_vm11 = vcmp.ge.s32.totalorder %v5891_v8, 20  ;;  %v5819_v44 = vmov 0   ;;  %vm1045_vm5 = vcmp.lt.s32.totalorder %v5891_v8, 28  ;;  %v253_v4 = vld [vmem:[%s7046_s6 + $0x48] sm:$0xff]  ;;  %s5820_s14 = smov 96   ;;  %s5822_s15 = smov 16  }
  0x35   :  { %5138 = vmatpush3.bf16.msra.mxu1 %v5622_v26  ;;  %vm858_vm9 = vmand %vm832_vm7, %vm849_vm8  ;;  %s5823_s16 = smov 48   ;;  %s5824_s17 = smov 64  }
  0x36   :  { %v6002_v11 = vstv %s41_s21  ;;  %v6009_v13 = vstv %s4615_s22  ;;  %5143 = vmatprep.subr.bf16.mxu1 %v5816_v63  ;;  %vm6065_vm0 = vmand %vm73_vm10, %vm74_vm3  ;;  %v874_v47 = vsel %vm858_vm9, 1.0, %v5816_v63  ;;  %s5825_s18 = smov 80   ;;  %s5826_s19 = smov 112  }
  0x37   :  { %vm61_vm12 = vcmp.lt.s32.totalorder %v5889_v7, %v6002_v11  ;;  %vm62_vm13 = vcmp.lt.s32.totalorder %v6007_v12, %v6009_v13  ;;  %v72_v40 = vsel %vm70_vm1, %v6002_v11, 0  ;;  %v76_v45 = vsel %vm6065_vm0, 1, %v5819_v44  ;;  %s5829_s25 = smov 4   ;;  %s5830_s27 = smov [#allocation4]  }
  0x38   :  { %v4617_v14 = vsel %vm61_vm12, 1.0, %v5816_v63  ;;  %v4618_v17 = vsel %vm62_vm13, 1.0, %v5816_v63  ;;  %vm947_vm12 = vcmp.lt.s32.totalorder %v5891_v8, 24  ;;  %vm654_vm13 = vcmp.lt.s32.totalorder %v5891_v8, 12  ;;  %s4607_s28 = sshll.u32 %s5830_s27, 4  ;;  %s4608_s28 = int_to_ptr.vmem [resolvable:$true] %s4607_s28 }
  0x39   :  { %vm659_vm1 = vmand %vm73_vm10, %vm654_vm13  ;;  %v77_v46 = vsel %vm6065_vm0, %v6009_v13, %v72_v40  ;;  %v78_v49 = vmul.u32 8, %v76_v45  ;;  %v6090_v52 = vpack.i.bf16 %v874_v47, %v874_v47  ;;  %vm1126_vm13 = vcmp.ge.s32.totalorder %v5891_v8, 28  ;;  %p5794_p6 = scmp.lt.s32.totalorder %s4608_s28, %s4608_s28 }
  0x3a   :  { %v675_v48 = vsel %vm659_vm1, 1.0, %v5816_v63  ;;  %vm958_vm2 = vmand %vm930_vm11, %vm947_vm12  ;;  %vm1143_vm1 = vcmp.lt.s32.totalorder %v5891_v8, 32 }
  0x3b   :  { %v6083_v50 = vpack.i.bf16 %v675_v48, %v675_v48  ;;  %v79_v51 = vsub.s32 %v5891_v8, %v78_v49  ;;  %v974_v53 = vsel %vm958_vm2, 1.0, %v5816_v63 }
  0x3c   :  { %v6113_v56 = vpack.i.bf16 %v974_v53, %v974_v53 }
  0x3d   :  { %5472 = vrot.lane.b32.xlu0 %v6083_v50, %s5818_s29  ;;  %vm82_vm9 = vcmp.le.s32.totalorder %v79_v51, %v5889_v7  ;;  %vm6096_vm10 = vcmp.lt.s32.totalorder %v79_v51, %v77_v46  ;;  %vm83_vm11 = vcmp.le.s32.totalorder %v79_v51, %v6007_v12 }
  0xaa   :  { %v126_v5 = vpop.xlane.xlu0 %125 }
  0xab   :  { %v130_v6 = vmax.f32 %v126_v5, 1e-09 }
  0xad   :  { %5755 = vrcp.f32 %v130_v6 }
  0xae   :  { %v129_v9 = vpop.xlane.xlu0 %128 }
  0xaf   :  { %v131_v10 = vmax.f32 %v129_v9, 1e-09 }
  0xb1   :  { %5757 = vrcp.f32 %v131_v10 }
  0xb7   :  { %v5756_v15 = vpop.eup %5755 }
  0xb8   :  { %v133_v16 = vmul.f32 %v5756_v15, %v4617_v14 }
  0xba   :  { %v137_v18 = vmul.f32 %v133_v16, %v5945_v38  ;;  %v136_v19 = vmul.f32 %v133_v16, %v5943_v37  ;;  %v6044_v37 = vpack.i.bf16 %v477_v36, %v477_v36  ;;  %v576_v38 = vsel %vm560_vm4, 1.0, %v5816_v63 }
  0xbb   :  { %v5758_v21 = vpop.eup %5757  ;;  %v6053_v39 = vpack.i.bf16 %v576_v38, %v576_v38  ;;  %vm1028_vm4 = vcmp.ge.s32.totalorder %v5891_v8, 24 }
  0xbc   :  { %236 = vmatprep.mubr.f32.mxu0 %v137_v18  ;;  %v135_v23 = vmul.f32 %v5758_v21, %v4618_v17  ;;  %5462 = vrot.lane.b32.xlu1 %v6044_v37, %s5818_s29  ;;  %vm1058_vm8 = vmand %vm1028_vm4, %vm1045_vm5  ;;  %v4625_v21 = vld [vmem:[%s7046_s6 + $0x1] ss:$0 sm:$0xff] }
  0xbd   :  { %237 = vmatmul.mubr.f32.vlgmr.msra.gmra.mrb[0].mxu0 %v136_v19  ;;  %vm6117_vm4 = vmand %vm6065_vm0, %vm83_vm11  ;;  %v1074_v58 = vsel %vm1058_vm8, 1.0, %v5816_v63 }
  0xbe   :  { %v139_v22 = vmul.f32 %v135_v23, %v123_v42  ;;  %v138_v24 = vmul.f32 %v135_v23, %v5950_v41  ;;  %v774_v41 = vsel %vm758_vm6, 1.0, %v5816_v63  ;;  %vm4846_vm6 = vmneg %vm6065_vm0  ;;  %v6130_v59 = vpack.i.bf16 %v1074_v58, %v1074_v58 }
  0xbf   :  { %v6071_v43 = vpack.i.bf16 %v774_v41, %v774_v41  ;;  %vm6101_vm12 = vmand %vm4846_vm6, %vm82_vm9  ;;  %vm1635_vm9 = vcmp.ge.s32.totalorder %v5891_v8, 32 }
  0xc0   :  { %241 = vmatprep.mubr.f32.mxu0 %v139_v22  ;;  %5467 = vrot.lane.b32.xlu1 %v6053_v39, %s5818_s29  ;;  %vm87_vm2 = vmand %vm6101_vm12, %vm6096_vm10 }
  0xc1   :  { %242 = vmatmul.mubr.f32.gmra.mrb[2].mxu0 %v138_v24  ;;  %vm88_vm5 = vmand %vm6117_vm4, %vm6096_vm10  ;;  %vm1652_vm10 = vcmp.lt.s32.totalorder %v5891_v8, 48 }
  0xc2   :  { %vm1158_vm6 = vmand %vm1126_vm13, %vm1143_vm1  ;;  %vm1685_vm13 = vcmp.ge.s32.totalorder %v5891_v8, 48 }
  0xc3   :  { %v1174_v60 = vsel %vm1158_vm6, 1.0, %v5816_v63  ;;  %vm6224_vm0 = vmpackc.low %vm271_vm15, %vm271_vm15 }
  0xc4   :  { %5477 = vrot.lane.b32.xlu1 %v6071_v43, %s5818_s29  ;;  %v6135_v61 = vpack.i.bf16 %v1174_v60, %v1174_v60  ;;  %vm5369_vm8 = vmpackc.low %vm74_vm3, %vm74_vm3 }
  0xc5   :  { %vm1605_vm11 = vmand %vm832_vm7, %vm1143_vm1  ;;  %vm1364_vm7 = vcmask 130048   ;;  %vm1369_vm1 = vcmask 392192  }
  0xc6   :  { %vm5373_vm12 = vmpackc.low %vm1605_vm11, %vm1605_vm11  ;;  %vm1735_vm11 = vcmp.ge.s32.totalorder %v5891_v8, 64 }
  0xc7   :  { %vm1657_vm3 = vmand %vm1635_vm9, %vm1652_vm10  ;;  %vm1378_vm9 = vcmask 785408   ;;  %vm1381_vm10 = vcmask 916480  }
  0xc8   :  { %5482 = vrot.lane.b32.xlu1 %v6090_v52, %s5818_s29  ;;  %vm5377_vm4 = vmpackc.low %vm1657_vm3, %vm1657_vm3  ;;  %vm1785_vm3 = vcmp.ge.s32.totalorder %v5891_v8, 80 }
  0xcc   :  { %5487 = vrot.lane.b32.xlu1 %v6113_v56, %s5818_s29 }
  0xd0   :  { %5492 = vrot.lane.b32.xlu1 %v6130_v59, %s5818_s29 }
  0xd4   :  { %5497 = vrot.lane.b32.xlu1 %v6135_v61, %s5818_s29 }
 0x12e   :  { %v5463_v15 = vpop.permute.xlu1 %5462 }
 0x12f   :  { %v5465_v23 = vunpack.i.h.bf16 %v5463_v15  ;;  %v5464_v24 = vunpack.i.l.bf16 %v5463_v15 }
 0x132   :  { %v5468_v16 = vpop.permute.xlu1 %5467 }
 0x133   :  { %v5470_v25 = vunpack.i.h.bf16 %v5468_v16  ;;  %v5469_v26 = vunpack.i.l.bf16 %v5468_v16 }
 0x136   :  { %v5478_v17 = vpop.permute.xlu1 %5477 }
 0x137   :  { %v5479_v38 = vunpack.i.l.bf16 %v5478_v17 }
 0x13a   :  { %v5483_v18 = vpop.permute.xlu1 %5482 }
 0x13b   :  { %v5485_v47 = vunpack.i.h.bf16 %v5483_v18  ;;  %v5484_v60 = vunpack.i.l.bf16 %v5483_v18 }
 0x13e   :  { %v5488_v19 = vpop.permute.xlu1 %5487 }
 0x13f   :  { %v5490_v48 = vunpack.i.h.bf16 %v5488_v19 }
 0x190   :  { %v4879_v27 = vpop.f32.mrb[0].mxu0 }
 0x191   :  { %v4880_v28 = vpop.f32.mrb[1].mxu0 }
 0x192   :  { %v4881_v29 = vadd.f32 %v4880_v28, %v4879_v27  ;;  %v5473_v27 = vpop.permute.xlu0 %5472 }
 0x193   :  { %v5474_v40 = vunpack.i.l.bf16 %v5473_v27 }
 0x194   :  { %v4882_v30 = vpop.f32.mrb[2].mxu0 }
 0x195   :  { %v4883_v31 = vpop.f32.mrb[3].mxu0 }
 0x196   :  { %v4884_v32 = vadd.f32 %v4883_v31, %v4882_v30  ;;  %v5480_v31 = vunpack.i.h.bf16 %v5478_v17 }
 0x198   :  { %v254_v33 = vpack.c.bf16 %v4884_v32, %v4881_v29  ;;  %v5493_v32 = vpop.permute.xlu1 %5492 }
 0x199   :  { %v5494_v15 = vunpack.i.l.bf16 %v5493_v32 }
 0x19a   :  { %5140 = vmatmul.mubr.msk.bf16.vlgmr.msra.gmra.mrb[0].mxu1 %vm271_vm15, %v254_v33  ;;  %v5475_v33 = vunpack.i.h.bf16 %v5473_v27 }
 0x19b   :  { %5147 = vmatprep.mubr.msk.bf16.mxu1 %vm5817_vm14, %v5816_v63  ;;  %5144 = vmatpush3.bf16.msra.mxu1 %v5623_v34 }
 0x19c   :  { %5145 = vmatprep.subr.bf16.mxu1 %v5816_v63 }
 0x19f   :  { %5146 = vmatpush3.bf16.msra.mxu1 %v5624_v35 }
 0x26d   :  { %v309_v0 = vpop.f32.mrb[0].mxu1 }
 0x26e   :  { %v310_v1 = vadd.f32 %v4621_v62, %v309_v0  ;;  %v5141_v2 = vpop.f32.mrb[1].mxu1  ;;  %v5498_v0 = vpop.permute.xlu1 %5497 }
 0x26f   :  { %v312_v5 = vpop.f32.mrb[2].mxu1  ;;  %v5499_v16 = vunpack.i.l.bf16 %v5498_v0 }
 0x270   :  { %v313_v6 = vadd.f32 %v4621_v62, %v312_v5  ;;  %v5142_v9 = vpop.f32.mrb[3].mxu1  ;;  %v6148_v10 = vadd.f32 %v310_v1, %v252_v3  ;;  %v5489_v62 = vunpack.i.l.bf16 %v5488_v19  ;;  %v5495_v3 = vunpack.i.h.bf16 %v5493_v32 }
 0x272   :  { %v6150_v12 = vadd.f32 %v313_v6, %v253_v4  ;;  %v5500_v4 = vunpack.i.h.bf16 %v5498_v0 }
 0x274   :  { %v323_v14 = vpack.c.bf16 %v6150_v12, %v6148_v10 }
 0x276   :  { %5148 = vmatmul.mubr.msk.bf16.vlgmr.msra.gmra.mrb[4].mxu1 %vm271_vm15, %v323_v14 }
 0x349   :  { %v377_v22 = vpop.f32.mrb[4].mxu1 }
 0x34a   :  { %v6158_v28 = vadd.f32 %v4625_v21, %v377_v22  ;;  %v5149_v29 = vpop.f32.mrb[5].mxu1 }
 0x34b   :  { %v380_v30 = vpop.f32.mrb[6].mxu1  ;;  %v5821_v29 = vmov -1e+30  }
 0x34c   :  { %v6160_v34 = vadd.f32 %v4625_v21, %v380_v30  ;;  %v5150_v35 = vpop.f32.mrb[7].mxu1  ;;  %v384_v36 = vmul.f32 0.5, %v6158_v28  ;;  %v1242_v41 = vmul.f32 %v5469_v26, %v6158_v28  ;;  %v1240_v45 = vmul.f32 %v5464_v24, %v6158_v28 }
 0x34d   :  { %v1246_v1 = vmul.f32 %v5479_v38, %v6158_v28  ;;  %v1244_v2 = vmul.f32 %v5474_v40, %v6158_v28  ;;  %v1250_v17 = vmul.f32 %v5489_v62, %v6158_v28  ;;  %v1248_v18 = vmul.f32 %v5484_v60, %v6158_v28 }
 0x34e   :  { %5183 = vmatprep.mubr.msk.f32.mxu1 %vm271_vm15, %v384_v36  ;;  %v1243_v42 = vmul.f32 %v5470_v25, %v6160_v34  ;;  %v1241_v46 = vmul.f32 %v5465_v23, %v6160_v34  ;;  %v1247_v53 = vmul.f32 %v5480_v31, %v6160_v34  ;;  %v1245_v58 = vmul.f32 %v5475_v33, %v6160_v34 }
 0x34f   :  { %v1251_v9 = vmul.f32 %v5490_v48, %v6160_v34  ;;  %v1249_v14 = vmul.f32 %v5485_v47, %v6160_v34  ;;  %v1255_v23 = vmul.f32 %v5500_v4, %v6160_v34  ;;  %v1253_v22 = vmul.f32 %v5495_v3, %v6160_v34 }
 0x350   :  { %v5506_v49 = vpack.i.bf16 %v1243_v42, %v1242_v41  ;;  %v5501_v51 = vpack.i.bf16 %v1241_v46, %v1240_v45  ;;  %v5516_v5 = vpack.i.bf16 %v1247_v53, %v1246_v1  ;;  %v5511_v6 = vpack.i.bf16 %v1245_v58, %v1244_v2 }
 0x351   :  { %v5526_v19 = vpack.i.bf16 %v1251_v9, %v1250_v17  ;;  %v5521_v21 = vpack.i.bf16 %v1249_v14, %v1248_v18  ;;  %v1254_v24 = vmul.f32 %v5499_v16, %v6158_v28  ;;  %v1252_v25 = vmul.f32 %v5494_v15, %v6158_v28 }
 0x352   :  { %5507 = vrot.lane.b32.xlu0 %v5506_v49, %s5820_s14  ;;  %5502 = vrot.lane.b32.xlu1 %v5501_v51, %s5820_s14  ;;  %v6193_v30 = vsel %vm87_vm2, 0.0, %v5821_v29  ;;  %v6200_v31 = vsel %vm88_vm5, 0.0, %v5821_v29  ;;  %v385_v18 = vmul.f32 0.5, %v6160_v34  ;;  %vm1702_vm2 = vcmp.lt.s32.totalorder %v5891_v8, 64 }
 0x353   :  { %v5536_v26 = vpack.i.bf16 %v1255_v23, %v1254_v24  ;;  %v5531_v27 = vpack.i.bf16 %v1253_v22, %v1252_v25  ;;  %vm1709_vm5 = vmand %vm1685_vm13, %vm1702_vm2 }
 0x354   :  { %vm5381_vm6 = vmpackc.low %vm1709_vm5, %vm1709_vm5 }
 0x356   :  { %5517 = vrot.lane.b32.xlu0 %v5516_v5, %s5820_s14  ;;  %5512 = vrot.lane.b32.xlu1 %v5511_v6, %s5820_s14 }
 0x35a   :  { %5527 = vrot.lane.b32.xlu0 %v5526_v19, %s5820_s14  ;;  %5522 = vrot.lane.b32.xlu1 %v5521_v21, %s5820_s14  ;;  %v5827_v19 = vmov 1.0|1.0  }
 0x35b   :  { %5370 = vmatprep.subr.msk.bf16.mxu0 %vm5369_vm8, %v5827_v19 }
 0x35c   :  { %5372 = vmatpush3.bf16.msk.msra.mxu0 %vm5369_vm8, %v5827_v19  ;;  %vm1375_vm8 = vcmask 654336  }
 0x35d   :  { %5374 = vmatprep.subr.msk.bf16.mxu0 %vm5373_vm12, %v5827_v19 }
 0x35e   :  { %5537 = vrot.lane.b32.xlu0 %v5536_v26, %s5820_s14  ;;  %5532 = vrot.lane.b32.xlu1 %v5531_v27, %s5820_s14 }
 0x360   :  { %5376 = vmatpush3.bf16.msk.msra.mxu0 %vm5373_vm12, %v5827_v19  ;;  %vm1752_vm12 = vcmp.lt.s32.totalorder %v5891_v8, 80 }
 0x361   :  { %5378 = vmatprep.subr.msk.bf16.mxu0 %vm5377_vm4, %v5827_v19  ;;  %vm1761_vm13 = vmand %vm1735_vm11, %vm1752_vm12  ;;  %vm4339_vm12 = vcmp.eq.s32.totalorder %v5889_v7, 0 }
 0x362   :  { %1322 = vrot.lane.b32.xlu1 %v6193_v30, %s5822_s15  ;;  %1324 = vrot.lane.b32.xlu0 %v6200_v31, %s5822_s15  ;;  %vm5385_vm2 = vmpackc.low %vm1761_vm13, %vm1761_vm13  ;;  %vm4341_vm13 = vcmp.eq.s32.totalorder %v5889_v7, 1 }
 0x364   :  { %5380 = vmatpush3.bf16.msk.msra.mxu0 %vm5377_vm4, %v5827_v19  ;;  %vm1802_vm4 = vcmp.lt.s32.totalorder %v5891_v8, 96 }
 0x365   :  { %5382 = vmatprep.subr.msk.bf16.mxu0 %vm5381_vm6, %v5827_v19  ;;  %vm1813_vm5 = vmand %vm1785_vm3, %vm1802_vm4 }
 0x366   :  { %1328 = vrot.lane.b32.xlu1 %v6193_v30, %s5818_s29  ;;  %1330 = vrot.lane.b32.xlu0 %v6200_v31, %s5818_s29 }
 0x368   :  { %5384 = vmatpush3.bf16.msk.msra.mxu0 %vm5381_vm6, %v5827_v19  ;;  %vm5389_vm6 = vmpackc.low %vm1813_vm5, %vm1813_vm5 }
 0x369   :  { %5386 = vmatprep.subr.msk.bf16.mxu0 %vm5385_vm2, %v5827_v19 }
 0x36a   :  { %1334 = vrot.lane.b32.xlu1 %v6193_v30, %s5823_s16  ;;  %1336 = vrot.lane.b32.xlu0 %v6200_v31, %s5823_s16 }
 0x36c   :  { %5388 = vmatpush3.bf16.msk.msra.mxu0 %vm5385_vm2, %v5827_v19 }
 0x36d   :  { %5390 = vmatprep.subr.msk.bf16.mxu0 %vm5389_vm6, %v5827_v19 }
 0x36e   :  { %1340 = vrot.lane.b32.xlu1 %v6193_v30, %s5824_s17  ;;  %1342 = vrot.lane.b32.xlu0 %v6200_v31, %s5824_s17 }
 0x370   :  { %5392 = vmatpush3.bf16.msk.msra.mxu0 %vm5389_vm6, %v5827_v19 }
 0x372   :  { %1346 = vrot.lane.b32.xlu1 %v6193_v30, %s5825_s18  ;;  %1348 = vrot.lane.b32.xlu0 %v6200_v31, %s5825_s18 }
 0x376   :  { %1352 = vrot.lane.b32.xlu1 %v6193_v30, %s5820_s14  ;;  %1354 = vrot.lane.b32.xlu0 %v6200_v31, %s5820_s14 }
 0x37a   :  { %1358 = vrot.lane.b32.xlu1 %v6193_v30, %s5826_s19  ;;  %1360 = vrot.lane.b32.xlu0 %v6200_v31, %s5826_s19 }
 0x3c4   :  { %v5508_v54 = vpop.permute.xlu0 %5507  ;;  %v5503_v55 = vpop.permute.xlu1 %5502 }
 0x3c5   :  { %v5510_v57 = vunpack.i.h.bf16 %v5508_v54  ;;  %v5509_v32 = vunpack.i.l.bf16 %v5508_v54  ;;  %v5505_v33 = vunpack.i.h.bf16 %v5503_v55  ;;  %v5504_v35 = vunpack.i.l.bf16 %v5503_v55 }
 0x3c7   :  { %v5321_v38 = vpack.c.bf16 %v5505_v33, %v5504_v35  ;;  %v5327_v40 = vpack.c.bf16 %v5510_v57, %v5509_v32 }
 0x3c8   :  { %v5513_v41 = vpop.permute.xlu1 %5512  ;;  %v5518_v47 = vpop.permute.xlu0 %5517 }
 0x3c9   :  { %5323 = vmatprep.subr.msk.bf16.mxu1 %vm6224_vm0, %v5321_v38  ;;  %v5515_v42 = vunpack.i.h.bf16 %v5513_v41  ;;  %v5514_v45 = vunpack.i.l.bf16 %v5513_v41  ;;  %v5520_v48 = vunpack.i.h.bf16 %v5518_v47  ;;  %v5519_v49 = vunpack.i.l.bf16 %v5518_v47 }
 0x3ca   :  { %5326 = vmatpush3.bf16.xpose.msk.msra.mxu1 %vm6224_vm0, %v5321_v38 }
 0x3cb   :  { %5329 = vmatprep.subr.msk.bf16.mxu1 %vm6224_vm0, %v5327_v40  ;;  %v5333_v46 = vpack.c.bf16 %v5515_v42, %v5514_v45  ;;  %v5339_v51 = vpack.c.bf16 %v5520_v48, %v5519_v49 }
 0x3cc   :  { %v5523_v53 = vpop.permute.xlu1 %5522  ;;  %v5528_v0 = vpop.permute.xlu0 %5527 }
 0x3cd   :  { %v5525_v58 = vunpack.i.h.bf16 %v5523_v53  ;;  %v5524_v60 = vunpack.i.l.bf16 %v5523_v53  ;;  %v5530_v1 = vunpack.i.h.bf16 %v5528_v0  ;;  %v5529_v2 = vunpack.i.l.bf16 %v5528_v0 }
 0x3cf   :  { %v5345_v62 = vpack.c.bf16 %v5525_v58, %v5524_v60  ;;  %v5351_v3 = vpack.c.bf16 %v5530_v1, %v5529_v2 }
 0x3d0   :  { %v5533_v4 = vpop.permute.xlu1 %5532  ;;  %v5538_v14 = vpop.permute.xlu0 %5537 }
 0x3d1   :  { %v5535_v5 = vunpack.i.h.bf16 %v5533_v4  ;;  %v5534_v6 = vunpack.i.l.bf16 %v5533_v4  ;;  %v5540_v15 = vunpack.i.h.bf16 %v5538_v14  ;;  %v5539_v16 = vunpack.i.l.bf16 %v5538_v14 }
 0x3d2   :  { %5332 = vmatpush3.bf16.xpose.msk.msra.mxu1 %vm6224_vm0, %v5327_v40 }
 0x3d3   :  { %5335 = vmatprep.subr.msk.bf16.mxu1 %vm6224_vm0, %v5333_v46  ;;  %v5357_v9 = vpack.c.bf16 %v5535_v5, %v5534_v6  ;;  %v5363_v17 = vpack.c.bf16 %v5540_v15, %v5539_v16 }
 0x3d4   :  { %v1325_v21 = vpop.permute.xlu0 %1324  ;;  %v1323_v23 = vpop.permute.xlu1 %1322 }
 0x3d5   :  { %v1366_v54 = vsel %vm1364_vm7, %v6200_v31, %v1325_v21  ;;  %v1365_v55 = vsel %vm1364_vm7, %v6193_v30, %v1323_v23 }
 0x3d8   :  { %v1331_v22 = vpop.permute.xlu0 %1330  ;;  %v1329_v24 = vpop.permute.xlu1 %1328 }
 0x3d9   :  { %v1368_v57 = vsel %vm271_vm15, %v1366_v54, %v1331_v22  ;;  %v1367_v33 = vsel %vm271_vm15, %v1365_v55, %v1329_v24 }
 0x3da   :  { %5338 = vmatpush3.bf16.xpose.msk.msra.mxu1 %vm6224_vm0, %v5333_v46 }
 0x3db   :  { %5341 = vmatprep.subr.msk.bf16.mxu1 %vm6224_vm0, %v5339_v51 }
 0x3dc   :  { %v1337_v25 = vpop.permute.xlu0 %1336  ;;  %v1335_v26 = vpop.permute.xlu1 %1334 }
 0x3dd   :  { %v1371_v36 = vsel %vm1369_vm1, %v1368_v57, %v1337_v25  ;;  %v1370_v38 = vsel %vm1369_vm1, %v1367_v33, %v1335_v26  ;;  %vm1835_vm1 = vcmp.ge.s32.totalorder %v5891_v8, 96 }
 0x3e0   :  { %v1343_v27 = vpop.permute.xlu0 %1342  ;;  %v1341_v29 = vpop.permute.xlu1 %1340 }
 0x3e2   :  { %5344 = vmatpush3.bf16.xpose.msk.msra.mxu1 %vm6224_vm0, %v5339_v51 }
 0x3e3   :  { %5347 = vmatprep.subr.msk.bf16.mxu1 %vm6224_vm0, %v5345_v62 }
 0x3e4   :  { %v1349_v32 = vpop.permute.xlu0 %1348  ;;  %v1347_v35 = vpop.permute.xlu1 %1346 }
 0x3e8   :  { %v1355_v41 = vpop.permute.xlu0 %1354  ;;  %v1353_v45 = vpop.permute.xlu1 %1352 }
 0x3ea   :  { %5350 = vmatpush3.bf16.xpose.msk.msra.mxu1 %vm6224_vm0, %v5345_v62 }
 0x3eb   :  { %5353 = vmatprep.subr.msk.bf16.mxu1 %vm6224_vm0, %v5351_v3 }
 0x3ec   :  { %v1361_v30 = vpop.permute.xlu0 %1360  ;;  %v1359_v49 = vpop.permute.xlu1 %1358 }
 0x3f2   :  { %5356 = vmatpush3.bf16.xpose.msk.msra.mxu1 %vm6224_vm0, %v5351_v3 }
 0x3f3   :  { %5359 = vmatprep.subr.msk.bf16.mxu1 %vm6224_vm0, %v5357_v9 }
 0x3fa   :  { %5362 = vmatpush3.bf16.xpose.msk.msra.mxu1 %vm6224_vm0, %v5357_v9 }
 0x3fb   :  { %5365 = vmatprep.subr.msk.bf16.mxu1 %vm6224_vm0, %v5363_v17 }
 0x402   :  { %5368 = vmatpush3.bf16.xpose.msk.msra.mxu1 %vm6224_vm0, %v5363_v17  ;;  %vm1372_vm0 = vcmask 523264  }
 0x403   :  { %5256 = vmatprep.subr.bf16.mxu1 %v5816_v63  ;;  %v1374_v40 = vsel %vm1372_vm0, %v1371_v36, %v1343_v27  ;;  %v1373_v42 = vsel %vm1372_vm0, %v1370_v38, %v1341_v29  ;;  %vm1852_vm0 = vcmp.lt.s32.totalorder %v5891_v8, 112 }
 0x404   :  { %v1377_v46 = vsel %vm1375_vm8, %v1374_v40, %v1349_v32  ;;  %v1376_v31 = vsel %vm1375_vm8, %v1373_v42, %v1347_v35  ;;  %vm1865_vm8 = vmand %vm1835_vm1, %vm1852_vm0 }
 0x405   :  { %v1380_v47 = vsel %vm1378_vm9, %v1377_v46, %v1355_v41  ;;  %v1379_v48 = vsel %vm1378_vm9, %v1376_v31, %v1353_v45  ;;  %vm5393_vm9 = vmpackc.low %vm1865_vm8, %vm1865_vm8 }
 0x406   :  { %v1383_v51 = vsel %vm1381_vm10, %v1380_v47, %v1361_v30  ;;  %v1382_v60 = vsel %vm1381_vm10, %v1379_v48, %v1359_v49  ;;  %5394 = vmatprep.subr.msk.bf16.mxu0 %vm5393_vm9, %v5827_v19  ;;  %vm1885_vm10 = vcmp.ge.s32.totalorder %v5891_v8, 112 }
 0x407   :  { %5396 = vmatpush3.bf16.msk.msra.mxu0 %vm5393_vm9, %v5827_v19  ;;  %vm5397_vm11 = vmpackc.low %vm1885_vm10, %vm1885_vm10 }
 0x408   :  { %5398 = vmatprep.subr.msk.bf16.mxu0 %vm5397_vm11, %v5827_v19 }
 0x409   :  { %5184 = vmatmul.mubr.msk.f32.vlgmr.msra.gmra.mrb[8].mxu1 %vm271_vm15, %v385_v18 }
 0x40a   :  { %5260 = vmatprep.mubr.msk.bf16.mxu1 %vm5817_vm14, %v5816_v63 }
 0x40b   :  { %5400 = vmatpush3.bf16.msk.msra.mxu0 %vm5397_vm11, %v5827_v19 }
 0x4dc   :  { %v5185_v53 = vpop.f32.mrb[8].mxu1 }
 0x4dd   :  { %v1542_v58 = vadd.f32 %v5185_v53, %v1383_v51  ;;  %v1536_v62 = vpop.f32.mrb[9].mxu1 }
 0x4de   :  { %v1537_v0 = vadd.f32 %v1536_v62, %v1382_v60 }
 0x4df   :  { %1547 = vmax.xlane.f32.xlu0 %v1542_v58 }
 0x4e0   :  { %1545 = vmax.xlane.f32.xlu1 %v1537_v0 }
 0x4f1   :  { %5547 = vrot.lane.b32.xlu1 %v6053_v39, %s5824_s17 }
 0x4f5   :  { %5542 = vrot.lane.b32.xlu0 %v6044_v37, %s5824_s17  ;;  %5552 = vrot.lane.b32.xlu1 %v6083_v50, %s5824_s17 }
 0x4f9   :  { %5557 = vrot.lane.b32.xlu0 %v6071_v43, %s5824_s17  ;;  %5562 = vrot.lane.b32.xlu1 %v6090_v52, %s5824_s17 }
 0x4fd   :  { %5567 = vrot.lane.b32.xlu0 %v6113_v56, %s5824_s17  ;;  %5572 = vrot.lane.b32.xlu1 %v6130_v59, %s5824_s17 }
 0x501   :  { %5577 = vrot.lane.b32.xlu0 %v6135_v61, %s5824_s17 }
 0x56c   :  { %v1548_v37 = vpop.xlane.xlu0 %1547 }
 0x56d   :  { %v1550_v39 = vsub.f32 %v1542_v58, %v1548_v37  ;;  %v1546_v43 = vpop.xlane.xlu1 %1545 }
 0x56e   :  { %v1549_v50 = vsub.f32 %v1537_v0, %v1546_v43 }
 0x56f   :  { %v1553_v52 = vmul.f32 1.442695, %v1550_v39 }
 0x570   :  { %v1551_v1 = vmul.f32 1.442695, %v1549_v50  ;;  %v5543_v2 = vpop.permute.xlu0 %5542  ;;  %v5625_v50 = vld [vmem:[%s7043_s3 + $0x20] sm:$0xff]  }
 0x571   :  { %v5545_v3 = vunpack.i.h.bf16 %v5543_v2  ;;  %v5544_v56 = vunpack.i.l.bf16 %v5543_v2  ;;  %v5548_v4 = vpop.permute.xlu1 %5547  ;;  %5257 = vmatpush3.bf16.msra.mxu1 %v5625_v50 }
 0x572   :  { %5759 = vpow2.f32 %v1551_v1  ;;  %v5550_v59 = vunpack.i.h.bf16 %v5548_v4  ;;  %v5549_v5 = vunpack.i.l.bf16 %v5548_v4  ;;  %5258 = vmatprep.subr.bf16.mxu1 %v5816_v63 }
 0x573   :  { %5761 = vpow2.f32 %v1553_v52  ;;  %v1305_v6 = vmul.f32 %v5545_v3, %v6160_v34  ;;  %v1304_v9 = vmul.f32 %v5544_v56, %v6158_v28 }
 0x574   :  { %v1307_v61 = vmul.f32 %v5550_v59, %v6160_v34  ;;  %v1306_v14 = vmul.f32 %v5549_v5, %v6158_v28  ;;  %v5558_v15 = vpop.permute.xlu0 %5557 }
 0x575   :  { %v5560_v16 = vunpack.i.h.bf16 %v5558_v15  ;;  %v5559_v17 = vunpack.i.l.bf16 %v5558_v15  ;;  %v5553_v18 = vpop.permute.xlu1 %5552  ;;  %v5581_v19 = vpack.i.bf16 %v1305_v6, %v1304_v9 }
 0x576   :  { %v5555_v21 = vunpack.i.h.bf16 %v5553_v18  ;;  %v5554_v23 = vunpack.i.l.bf16 %v5553_v18  ;;  %v5586_v22 = vpack.i.bf16 %v1307_v61, %v1306_v14 }
 0x577   :  { %v1311_v24 = vmul.f32 %v5560_v16, %v6160_v34  ;;  %v1310_v25 = vmul.f32 %v5559_v17, %v6158_v28  ;;  %5582 = vrot.lane.b32.xlu1 %v5581_v19, %s5824_s17 }
 0x578   :  { %v1309_v26 = vmul.f32 %v5555_v21, %v6160_v34  ;;  %v1308_v27 = vmul.f32 %v5554_v23, %v6158_v28  ;;  %v5568_v29 = vpop.permute.xlu0 %5567  ;;  %5587 = vrot.lane.b32.xlu0 %v5586_v22, %s5824_s17 }
 0x579   :  { %v5570_v54 = vunpack.i.h.bf16 %v5568_v29  ;;  %v5569_v55 = vunpack.i.l.bf16 %v5568_v29  ;;  %v5563_v57 = vpop.permute.xlu1 %5562  ;;  %v5596_v32 = vpack.i.bf16 %v1311_v24, %v1310_v25 }
 0x57a   :  { %v5565_v33 = vunpack.i.h.bf16 %v5563_v57  ;;  %v5564_v35 = vunpack.i.l.bf16 %v5563_v57  ;;  %v5591_v36 = vpack.i.bf16 %v1309_v26, %v1308_v27 }
 0x57b   :  { %v1315_v38 = vmul.f32 %v5570_v54, %v6160_v34  ;;  %v1314_v40 = vmul.f32 %v5569_v55, %v6158_v28 }
 0x57c   :  { %v6333_v41 = vpop.eup %5759  ;;  %v1313_v42 = vmul.f32 %v5565_v33, %v6160_v34  ;;  %v1312_v45 = vmul.f32 %v5564_v35, %v6158_v28  ;;  %v5578_v46 = vpop.permute.xlu0 %5577  ;;  %5592 = vrot.lane.b32.xlu1 %v5591_v36, %s5824_s17  ;;  %5597 = vrot.lane.b32.xlu0 %v5596_v32, %s5824_s17 }
 0x57d   :  { %v6339_v31 = vpop.eup %5761  ;;  %v5580_v47 = vunpack.i.h.bf16 %v5578_v46  ;;  %v5579_v30 = vunpack.i.l.bf16 %v5578_v46  ;;  %5218 = vmatprep.mubr.f32.mxu0 %v6333_v41  ;;  %v5573_v48 = vpop.permute.xlu1 %5572  ;;  %v5606_v49 = vpack.i.bf16 %v1315_v38, %v1314_v40 }
 0x57e   :  { %v5575_v51 = vunpack.i.h.bf16 %v5573_v48  ;;  %v5574_v53 = vunpack.i.l.bf16 %v5573_v48  ;;  %5219 = vmatmul.mubr.f32.vlgmr.msra.gmra.mrb[4].mxu0 %v6339_v31  ;;  %v5601_v58 = vpack.i.bf16 %v1313_v42, %v1312_v45 }
 0x57f   :  { %v1319_v60 = vmul.f32 %v5580_v47, %v6160_v34  ;;  %v1318_v62 = vmul.f32 %v5579_v30, %v6158_v28  ;;  %v5626_v30 = vld [vmem:[%s7043_s3 + $0x28] sm:$0xff]  }
 0x580   :  { %v1317_v0 = vmul.f32 %v5575_v51, %v6160_v34  ;;  %v1316_v37 = vmul.f32 %v5574_v53, %v6158_v28  ;;  %5602 = vrot.lane.b32.xlu1 %v5601_v58, %s5824_s17  ;;  %5607 = vrot.lane.b32.xlu0 %v5606_v49, %s5824_s17 }
 0x581   :  { %v5616_v39 = vpack.i.bf16 %v1319_v60, %v1318_v62  ;;  %5259 = vmatpush3.bf16.msra.mxu1 %v5626_v30 }
 0x582   :  { %v5611_v43 = vpack.i.bf16 %v1317_v0, %v1316_v37 }
 0x584   :  { %5612 = vrot.lane.b32.xlu1 %v5611_v43, %s5824_s17  ;;  %5617 = vrot.lane.b32.xlu0 %v5616_v39, %s5824_s17 }
 0x5e9   :  { %v5583_v34 = vpop.permute.xlu1 %5582 }
 0x5ea   :  { %v5585_v52 = vunpack.i.h.bf16 %v5583_v34  ;;  %v5584_v28 = vunpack.i.l.bf16 %v5583_v34  ;;  %v5588_v1 = vpop.permute.xlu0 %5587 }
 0x5eb   :  { %v5590_v2 = vunpack.i.h.bf16 %v5588_v1  ;;  %v5589_v3 = vunpack.i.l.bf16 %v5588_v1 }
 0x5ec   :  { %v5401_v56 = vpack.c.bf16 %v5585_v52, %v5584_v28 }
 0x5ed   :  { %v5405_v4 = vpack.c.bf16 %v5590_v2, %v5589_v3 }
 0x5ee   :  { %5402 = vmatprep.subr.bf16.mxu0 %v5401_v56  ;;  %v5593_v59 = vpop.permute.xlu1 %5592  ;;  %v5598_v9 = vpop.permute.xlu0 %5597 }
 0x5ef   :  { %v5595_v5 = vunpack.i.h.bf16 %v5593_v59  ;;  %v5594_v6 = vunpack.i.l.bf16 %v5593_v59  ;;  %5404 = vmatpush3.bf16.msra.mxu0 %v5401_v56  ;;  %v5600_v14 = vunpack.i.h.bf16 %v5598_v9  ;;  %v5599_v15 = vunpack.i.l.bf16 %v5598_v9 }
 0x5f0   :  { %5406 = vmatprep.subr.bf16.mxu0 %v5405_v4 }
 0x5f1   :  { %v5409_v61 = vpack.c.bf16 %v5595_v5, %v5594_v6  ;;  %v5413_v17 = vpack.c.bf16 %v5600_v14, %v5599_v15  ;;  %v2274_v5 = vld [vmem:[%s7044_s4 + $0x40] sm:$0xff]  ;;  %v2267_v6 = vld [vmem:[%s7044_s4 + $0x8] sm:$0xff] }
 0x5f2   :  { %v5603_v16 = vpop.permute.xlu1 %5602  ;;  %v5608_v21 = vpop.permute.xlu0 %5607 }
 0x5f3   :  { %5408 = vmatpush3.bf16.msra.mxu0 %v5405_v4  ;;  %v5605_v18 = vunpack.i.h.bf16 %v5603_v16  ;;  %v5604_v19 = vunpack.i.l.bf16 %v5603_v16  ;;  %v5610_v22 = vunpack.i.h.bf16 %v5608_v21  ;;  %v5609_v24 = vunpack.i.l.bf16 %v5608_v21 }
 0x5f4   :  { %5410 = vmatprep.subr.bf16.mxu0 %v5409_v61 }
 0x5f5   :  { %v5417_v23 = vpack.c.bf16 %v5605_v18, %v5604_v19  ;;  %v5421_v26 = vpack.c.bf16 %v5610_v22, %v5609_v24  ;;  %v2290_v18 = vld [vmem:[%s7044_s4 + $0xc0] sm:$0xff]  ;;  %v2283_v19 = vld [vmem:[%s7044_s4 + $0x88] sm:$0xff] }
 0x5f6   :  { %v5613_v25 = vpop.permute.xlu1 %5612  ;;  %v5618_v54 = vpop.permute.xlu0 %5617  ;;  %v2291_v22 = vld [vmem:[%s7044_s4 + $0xc8] sm:$0xff] }
 0x5f7   :  { %5412 = vmatpush3.bf16.msra.mxu0 %v5409_v61  ;;  %v5615_v27 = vunpack.i.h.bf16 %v5613_v25  ;;  %v5614_v29 = vunpack.i.l.bf16 %v5613_v25  ;;  %v5620_v57 = vunpack.i.h.bf16 %v5618_v54  ;;  %v5619_v32 = vunpack.i.l.bf16 %v5618_v54  ;;  %v2275_v61 = vld [vmem:[%s7044_s4 + $0x48] sm:$0xff] }
 0x5f8   :  { %5414 = vmatprep.subr.bf16.mxu0 %v5413_v17  ;;  %v4671_v15 = vcombine.low %v2267_v6, %v2275_v61  ;;  %v4672_v16 = vcombine.high %v2267_v6, %v2275_v61  ;;  %v4687_v24 = vcombine.low %v2283_v19, %v2291_v22  ;;  %v4688_v25 = vcombine.high %v2283_v19, %v2291_v22 }
 0x5f9   :  { %v5425_v55 = vpack.c.bf16 %v5615_v27, %v5614_v29  ;;  %v5429_v33 = vpack.c.bf16 %v5620_v57, %v5619_v32  ;;  %v2276_v27 = vld [vmem:[%s7044_s4 + $0x50] sm:$0xff]  ;;  %v2269_v29 = vld [vmem:[%s7044_s4 + $0x18] sm:$0xff] }
 0x5fa   :  { %v2277_v57 = vld [vmem:[%s7044_s4 + $0x58] sm:$0xff] }
 0x5fb   :  { %5416 = vmatpush3.bf16.msra.mxu0 %v5413_v17  ;;  %v2282_v17 = vld [vmem:[%s7044_s4 + $0x80] sm:$0xff]  ;;  %v4675_v32 = vcombine.low %v2269_v29, %v2277_v57 }
 0x5fc   :  { %5418 = vmatprep.subr.bf16.mxu0 %v5417_v23  ;;  %v4685_v21 = vcombine.low %v2282_v17, %v2290_v18 }
 0x5ff   :  { %5420 = vmatpush3.bf16.msra.mxu0 %v5417_v23  ;;  %v4686_v23 = vcombine.high %v2282_v17, %v2290_v18  ;;  %v2273_v17 = vld [vmem:[%s7044_s4 + $0x38] sm:$0xff] }
 0x600   :  { %5422 = vmatprep.subr.bf16.mxu0 %v5421_v26  ;;  %v2281_v18 = vld [vmem:[%s7044_s4 + $0x78] sm:$0xff] }
 0x601   :  { %v4684_v22 = vcombine.high %v2273_v17, %v2281_v18 }
 0x603   :  { %5424 = vmatpush3.bf16.msra.mxu0 %v5421_v26  ;;  %v2268_v26 = vld [vmem:[%s7044_s4 + $0x10] sm:$0xff] }
 0x604   :  { %5426 = vmatprep.subr.bf16.mxu0 %v5425_v55  ;;  %v4673_v54 = vcombine.low %v2268_v26, %v2276_v27 }
 0x607   :  { %5428 = vmatpush3.bf16.msra.mxu0 %v5425_v55  ;;  %v4674_v55 = vcombine.high %v2268_v26, %v2276_v27  ;;  %v2289_v26 = vld [vmem:[%s7044_s4 + $0xb8] sm:$0xff] }
 0x608   :  { %5430 = vmatprep.subr.bf16.mxu0 %v5429_v33  ;;  %v2297_v27 = vld [vmem:[%s7044_s4 + $0xf8] sm:$0xff] }
 0x60b   :  { %5432 = vmatpush3.bf16.msra.mxu0 %v5429_v33  ;;  %v4676_v33 = vcombine.high %v2269_v29, %v2277_v57  ;;  %v4700_v57 = vcombine.high %v2289_v26, %v2297_v27 }
 0x60c   :  { %2593 = vmatprep.subr.bf16.mxu0 %v4672_v16  ;;  %v2280_v16 = vld [vmem:[%s7044_s4 + $0x70] sm:$0xff] }
 0x651   :  { %v5220_v35 = vpop.f32.mrb[4].mxu0 }
 0x652   :  { %v2011_v36 = vmax.f32 %v5220_v35, 1e-30  ;;  %v2001_v38 = vpop.f32.mrb[5].mxu0 }
 0x653   :  { %v2010_v40 = vmax.f32 %v2001_v38, 1e-30 }
 0x654   :  { %5763 = vrcp.f32 %v2011_v36 }
 0x655   :  { %5765 = vrcp.f32 %v2010_v40 }
 0x65e   :  { %v5764_v42 = vpop.eup %5763 }
 0x65f   :  { %v5766_v45 = vpop.eup %5765  ;;  %v2015_v47 = vmul.f32 %v5764_v42, %v6339_v31 }
 0x660   :  { %v2013_v46 = vmul.f32 %v5766_v45, %v6333_v41  ;;  %v4663_v41 = vld [vmem:[%s7046_s6 + $0x2] ss:$0 sm:$0xff] }
 0x662   :  { %5253 = vmatprep.mubr.f32.mxu0 %v2013_v46 }
 0x663   :  { %5254 = vmatmul.mubr.f32.vlgmr.msra.gmra.mrb[6].mxu0 %v2015_v47  ;;  %v4667_v47 = vld [vmem:[%s7046_s6 + $0x3] ss:$0 sm:$0xff] }
 0x664   :  { %2625 = vmatprep.mubr.bf16.mxu0 %v5819_v44  ;;  %2594 = vmatpush1.bf16.msra.mxu0 %v4671_v15  ;;  %v2272_v15 = vld [vmem:[%s7044_s4 + $0x30] sm:$0xff] }
 0x665   :  { %2595 = vmatprep.subr.bf16.mxu0 %v4688_v25  ;;  %v2296_v25 = vld [vmem:[%s7044_s4 + $0xf0] sm:$0xff]  ;;  %v4681_v29 = vcombine.low %v2272_v15, %v2280_v16 }
 0x668   :  { %2596 = vmatpush1.bf16.msra.mxu0 %v4687_v24  ;;  %v2288_v24 = vld [vmem:[%s7044_s4 + $0xb0] sm:$0xff] }
 0x669   :  { %2679 = vmatprep.subr.bf16.mxu0 %v4676_v33  ;;  %v4699_v33 = vcombine.low %v2289_v26, %v2297_v27 }
 0x736   :  { %v5255_v48 = vpop.f32.mrb[6].mxu0 }
 0x737   :  { %v2146_v49 = vpop.f32.mrb[7].mxu0 }
 0x738   :  { %v2160_v51 = vpack.c.bf16 %v5255_v48, %v2146_v49 }
 0x73a   :  { %5261 = vmatmul.mubr.msk.bf16.vlgmr.msra.gmra.mrb[12].mxu1 %vm271_vm15, %v2160_v51 }
 0x73b   :  { %2582 = vmatprep.mubr.bf16.mxu1 %v5819_v44 }
 0x80d   :  { %v2214_v31 = vpop.f32.mrb[12].mxu1 }
 0x80e   :  { %v2215_v53 = vadd.f32 %v4663_v41, %v2214_v31  ;;  %v5262_v58 = vpop.f32.mrb[13].mxu1 }
 0x80f   :  { %v2217_v60 = vpop.f32.mrb[14].mxu1  ;;  %v2292_v58 = vld [vmem:[%s7044_s4 + $0xd0] sm:$0xff] }
 0x810   :  { %v2218_v62 = vadd.f32 %v4663_v41, %v2217_v60  ;;  %v5263_v0 = vpop.f32.mrb[15].mxu1  ;;  %v2225_v37 = vadd.f32 %v2215_v53, %v6148_v10  ;;  %v4668_v41 = vld [vmem:[%s7046_s6 + $0x4] ss:$0 sm:$0xff]  ;;  %v2284_v53 = vld [vmem:[%s7044_s4 + $0x90] sm:$0xff]  ;;  %v2285_v60 = vld [vmem:[%s7044_s4 + $0x98] sm:$0xff] }
 0x812   :  { %v2227_v39 = vsel %vm271_vm15, %v2225_v37, 0.0  ;;  %v2226_v43 = vadd.f32 %v2218_v62, %v6150_v12  ;;  %v2266_v12 = vld [vmem:[%s7044_s4] sm:$0xff]  ;;  %v2293_v62 = vld [vmem:[%s7044_s4 + $0xd8] sm:$0xff] }
 0x813   :  { %2228 = vadd.xlane.f32.xlu1 %v2227_v39  ;;  %v4670_v9 = vcombine.high %v2266_v12, %v2274_v5  ;;  %v4669_v14 = vcombine.low %v2266_v12, %v2274_v5  ;;  %v2287_v12 = vld [vmem:[%s7044_s4 + $0xa8] sm:$0xff] }
 0x814   :  { %v2230_v50 = vsel %vm271_vm15, %v2226_v43, 0.0  ;;  %v2295_v5 = vld [vmem:[%s7044_s4 + $0xe8] sm:$0xff] }
 0x815   :  { %2231 = vadd.xlane.f32.xlu0 %v2230_v50  ;;  %2550 = vmatprep.subr.bf16.mxu1 %v4670_v9  ;;  %v4692_v50 = vcombine.high %v2285_v60, %v2293_v62 }
 0x816   :  { %2551 = vmatpush1.bf16.msra.mxu1 %v4669_v14  ;;  %v4696_v14 = vcombine.high %v2287_v12, %v2295_v5 }
 0x817   :  { %2552 = vmatprep.subr.bf16.mxu1 %v4686_v23  ;;  %v4682_v23 = vcombine.high %v2272_v15, %v2280_v16 }
 0x81a   :  { %2553 = vmatpush1.bf16.msra.mxu1 %v4685_v21  ;;  %v4695_v21 = vcombine.low %v2287_v12, %v2295_v5  ;;  %v5659_v12 = vld [vmem:[%s7045_s5 + $0x140] sm:$0xff]  }
 0x81b   :  { %2636 = vmatprep.subr.bf16.mxu1 %v4674_v55  ;;  %v4698_v55 = vcombine.high %v2288_v24, %v2296_v25  ;;  %v5660_v5 = vld [vmem:[%s7045_s5 + $0x1c0] sm:$0xff]  }
 0x8a0   :  { %v2229_v34 = vpop.xlane.xlu1 %2228 }
 0x8a1   :  { %v2234_v52 = vmul.f32 0.03125, %v2229_v34  ;;  %v2270_v34 = vld [vmem:[%s7044_s4 + $0x20] sm:$0xff] }
 0x8a2   :  { %v2232_v28 = vpop.xlane.xlu0 %2231 }
 0x8a3   :  { %v2236_v1 = vsub.f32 %v2225_v37, %v2234_v52  ;;  %v2235_v2 = vmul.f32 0.03125, %v2232_v28  ;;  %v2278_v52 = vld [vmem:[%s7044_s4 + $0x60] sm:$0xff]  ;;  %v2271_v28 = vld [vmem:[%s7044_s4 + $0x28] sm:$0xff] }
 0x8a4   :  { %v4677_v6 = vcombine.low %v2270_v34, %v2278_v52 }
 0x8a5   :  { %v2237_v3 = vsub.f32 %v2226_v43, %v2235_v2  ;;  %v2238_v56 = vmul.f32 %v2236_v1, %v2236_v1  ;;  %v4690_v43 = vcombine.high %v2284_v53, %v2292_v58  ;;  %v4689_v2 = vcombine.low %v2284_v53, %v2292_v58  ;;  %v5642_v53 = vld [vmem:[%s7045_s5 + $0x98] sm:$0xff]   ;;  %v5643_v58 = vld [vmem:[%s7045_s5 + $0x60] sm:$0xff]  }
 0x8a7   :  { %v2240_v4 = vsel %vm271_vm15, %v2238_v56, 0.0  ;;  %v2239_v59 = vmul.f32 %v2237_v3, %v2237_v3  ;;  %v4678_v56 = vcombine.high %v2270_v34, %v2278_v52  ;;  %v5649_v34 = vld [vmem:[%s7045_s5 + $0x28] sm:$0xff]  }
 0x8a8   :  { %2241 = vadd.xlane.f32.xlu0 %v2240_v4  ;;  %v5650_v52 = vld [vmem:[%s7045_s5 + $0xa8] sm:$0xff]  }
 0x8a9   :  { %v2243_v10 = vsel %vm271_vm15, %v2239_v59, 0.0  ;;  %v2286_v59 = vld [vmem:[%s7044_s4 + $0xa0] sm:$0xff] }
 0x8aa   :  { %2244 = vadd.xlane.f32.xlu1 %v2243_v10  ;;  %v2294_v10 = vld [vmem:[%s7044_s4 + $0xe0] sm:$0xff] }
 0x8ab   :  { %v4694_v61 = vcombine.high %v2286_v59, %v2294_v10  ;;  %v4693_v19 = vcombine.low %v2286_v59, %v2294_v10  ;;  %v5657_v59 = vld [vmem:[%s7045_s5 + $0x38] sm:$0xff]  }
 0x8ac   :  { %v5658_v10 = vld [vmem:[%s7045_s5 + $0xb8] sm:$0xff]  }
 0x935   :  { %v2242_v35 = vpop.xlane.xlu0 %2241 }
 0x936   :  { %v2246_v36 = vmul.f32 0.03125, %v2242_v35  ;;  %v5627_v35 = vld [vmem:[%s7045_s5 + $0x40] sm:$0xff]  }
 0x937   :  { %v2245_v38 = vpop.xlane.xlu1 %2244 }
 0x938   :  { %v2248_v40 = vadd.f32 1e-05, %v2246_v36  ;;  %v2247_v42 = vmul.f32 0.03125, %v2245_v38  ;;  %v5628_v36 = vld [vmem:[%s7045_s5 + $0xc0] sm:$0xff]  }
 0x939   :  { %v5629_v38 = vld [vmem:[%s7045_s5] sm:$0xff]  }
 0x93a   :  { %5767 = vrsqrt.f32 %v2248_v40  ;;  %v2249_v45 = vadd.f32 1e-05, %v2247_v42  ;;  %v5630_v40 = vld [vmem:[%s7045_s5 + $0x80] sm:$0xff]   ;;  %v5631_v42 = vld [vmem:[%s7045_s5 + $0x48] sm:$0xff]  }
 0x93c   :  { %5769 = vrsqrt.f32 %v2249_v45  ;;  %v5633_v45 = vld [vmem:[%s7045_s5 + $0x8] sm:$0xff]  }
 0x944   :  { %v5768_v46 = vpop.eup %5767 }
 0x945   :  { %v2252_v30 = vmul.f32 %v5768_v46, %v2236_v1  ;;  %v2279_v1 = vld [vmem:[%s7044_s4 + $0x68] sm:$0xff] }
 0x946   :  { %v5770_v48 = vpop.eup %5769  ;;  %v4680_v4 = vcombine.high %v2271_v28, %v2279_v1  ;;  %v4679_v9 = vcombine.low %v2271_v28, %v2279_v1  ;;  %v5634_v46 = vld [vmem:[%s7045_s5 + $0x88] sm:$0xff]   ;;  %v5651_v28 = vld [vmem:[%s7045_s5 + $0x70] sm:$0xff]  }
 0x947   :  { %v2258_v49 = vmul.f32 %v4667_v47, %v2252_v30  ;;  %v2253_v51 = vmul.f32 %v5770_v48, %v2237_v3  ;;  %v4691_v3 = vcombine.low %v2285_v60, %v2293_v62  ;;  %v5636_v30 = vld [vmem:[%s7045_s5 + $0xd0] sm:$0xff]   ;;  %v5644_v60 = vld [vmem:[%s7045_s5 + $0xe0] sm:$0xff]  }
 0x948   :  { %v5637_v48 = vld [vmem:[%s7045_s5 + $0x10] sm:$0xff]   ;;  %v5645_v62 = vld [vmem:[%s7045_s5 + $0x20] sm:$0xff]  }
 0x949   :  { %v2259_v31 = vmul.f32 %v4667_v47, %v2253_v51  ;;  %v6426_v0 = vadd.f32 %v4668_v41, %v2258_v49  ;;  %v5635_v47 = vld [vmem:[%s7045_s5 + $0x50] sm:$0xff]   ;;  %v5639_v51 = vld [vmem:[%s7045_s5 + $0x58] sm:$0xff]  }
 0x94a   :  { %v5638_v49 = vld [vmem:[%s7045_s5 + $0x90] sm:$0xff]  }
 0x94b   :  { %v6428_v37 = vadd.f32 %v4668_v41, %v2259_v31  ;;  %v5640_v41 = vld [vmem:[%s7045_s5 + $0xd8] sm:$0xff]   ;;  %v5652_v1 = vld [vmem:[%s7045_s5 + $0xf0] sm:$0xff]  }
 0x94c   :  { %v5641_v31 = vld [vmem:[%s7045_s5 + $0x18] sm:$0xff]  }
 0x94d   :  { %v6432_v39 = vpack.c.bf16 %v6428_v37, %v6426_v0 }
 0x94f   :  { %4701 = vmatmul.mubr.msk.bf16.vlgmr.msra.gmra.mrb[16].mxu1 %vm271_vm15, %v6432_v39  ;;  %4702 = vmatmul.mubr.msk.bf16.vlgmr.msra.gmra.mrb[8].mxu0 %vm271_vm15, %v6432_v39 }
 0x950   :  { %2637 = vmatpush1.bf16.msra.mxu1 %v4673_v54  ;;  %2680 = vmatpush1.bf16.msra.mxu0 %v4675_v32  ;;  %v4683_v54 = vcombine.low %v2273_v17, %v2281_v18  ;;  %v4697_v32 = vcombine.low %v2288_v24, %v2296_v25  ;;  %v2300_v17 = vld [vmem:[%s7044_s4 + $0x110] sm:$0x11]  ;;  %v2301_v18 = vld [vmem:[%s7044_s4 + $0x118] sm:$0x11] }
 0x951   :  { %2638 = vmatprep.subr.bf16.mxu1 %v4690_v43  ;;  %2681 = vmatprep.subr.bf16.mxu0 %v4692_v50  ;;  %v5647_v43 = vld [vmem:[%s7045_s5 + $0x68] sm:$0xff]   ;;  %v2310_v24 = vunpack.c.l.bf16 %v2300_v17  ;;  %v2312_v25 = vunpack.c.l.bf16 %v2301_v18  ;;  %v2311_v26 = vunpack.c.h.bf16 %v2300_v17  ;;  %v2313_v27 = vunpack.c.h.bf16 %v2301_v18 }
 0x952   :  { %2668 = vmatprep.mubr.bf16.mxu1 %v5819_v44  ;;  %2711 = vmatprep.mubr.bf16.mxu0 %v5819_v44  ;;  %v5648_v50 = vld [vmem:[%s7045_s5 + $0xe8] sm:$0xff]  }
 0x953   :  { %v5663_v17 = vld [vmem:[%s7045_s5 + $0x148] sm:$0xff]  }
 0x954   :  { %2639 = vmatpush1.bf16.msra.mxu1 %v4689_v2  ;;  %2682 = vmatpush1.bf16.msra.mxu0 %v4691_v3  ;;  %v5653_v2 = vld [vmem:[%s7045_s5 + $0x30] sm:$0xff]   ;;  %v5664_v18 = vld [vmem:[%s7045_s5 + $0x1c8] sm:$0xff]  }
 0x955   :  { %2722 = vmatprep.subr.bf16.mxu1 %v4678_v56  ;;  %2765 = vmatprep.subr.bf16.mxu0 %v4680_v4  ;;  %v5654_v3 = vld [vmem:[%s7045_s5 + $0xb0] sm:$0xff]   ;;  %v5655_v56 = vld [vmem:[%s7045_s5 + $0x78] sm:$0xff]  }
 0x956   :  { %v5656_v4 = vld [vmem:[%s7045_s5 + $0xf8] sm:$0xff]  }
 0x957   :  { %4703 = vmatmul.mubr.msk.bf16.vlgmr.msra.gmra.mrb[20].mxu1 %vm271_vm15, %v6432_v39  ;;  %4704 = vmatmul.mubr.msk.bf16.vlgmr.msra.gmra.mrb[12].mxu0 %vm271_vm15, %v6432_v39 }
 0x958   :  { %2723 = vmatpush1.bf16.msra.mxu1 %v4677_v6  ;;  %2766 = vmatpush1.bf16.msra.mxu0 %v4679_v9  ;;  %v2298_v6 = vld [vmem:[%s7044_s4 + $0x100] sm:$0x11]  ;;  %v2299_v9 = vld [vmem:[%s7044_s4 + $0x108] sm:$0x11] }
 0x959   :  { %2724 = vmatprep.subr.bf16.mxu1 %v4694_v61  ;;  %2767 = vmatprep.subr.bf16.mxu0 %v4696_v14  ;;  %v2306_v61 = vunpack.c.l.bf16 %v2298_v6  ;;  %v2308_v14 = vunpack.c.l.bf16 %v2299_v9  ;;  %v2307_v15 = vunpack.c.h.bf16 %v2298_v6  ;;  %v2309_v16 = vunpack.c.h.bf16 %v2299_v9  ;;  %v5662_v6 = vld [vmem:[%s7045_s5 + $0x180] sm:$0xff]  }
 0x95a   :  { %2754 = vmatprep.mubr.bf16.mxu1 %v5819_v44  ;;  %2797 = vmatprep.mubr.bf16.mxu0 %v5819_v44 }
 0x95c   :  { %2725 = vmatpush1.bf16.msra.mxu1 %v4693_v19  ;;  %2768 = vmatpush1.bf16.msra.mxu0 %v4695_v21  ;;  %v2326_v19 = vrot.slane %v2306_v61, %v5914_v20  ;;  %v2334_v21 = vrot.slane %v2308_v14, %v5914_v20 }
 0x95d   :  { %2808 = vmatprep.subr.bf16.mxu1 %v4682_v23  ;;  %2851 = vmatprep.subr.bf16.mxu0 %v4684_v22  ;;  %v2330_v23 = vrot.slane %v2307_v15, %v5914_v20  ;;  %v2338_v22 = vrot.slane %v2309_v16, %v5914_v20 }
 0x95f   :  { %4705 = vmatmul.mubr.msk.bf16.vlgmr.msra.gmra.mrb[24].mxu1 %vm271_vm15, %v6432_v39  ;;  %4706 = vmatmul.mubr.msk.bf16.vlgmr.msra.gmra.mrb[16].mxu0 %vm271_vm15, %v6432_v39 }
 0x960   :  { %2809 = vmatpush1.bf16.msra.mxu1 %v4681_v29  ;;  %2852 = vmatpush1.bf16.msra.mxu0 %v4683_v54 }
 0x961   :  { %2810 = vmatprep.subr.bf16.mxu1 %v4698_v55  ;;  %2853 = vmatprep.subr.bf16.mxu0 %v4700_v57 }
 0x962   :  { %2840 = vmatprep.mubr.bf16.mxu1 %v5819_v44  ;;  %2883 = vmatprep.mubr.bf16.mxu0 %v5819_v44  ;;  %v5632_v44 = vld [vmem:[%s7045_s5 + $0xc8] sm:$0xff]  }
 0x964   :  { %2811 = vmatpush1.bf16.msra.mxu1 %v4697_v32  ;;  %2854 = vmatpush1.bf16.msra.mxu0 %v4699_v33 }
 0x965   :  { %4948 = vmatprep.subr.bf16.mxu1 %v5627_v35  ;;  %4970 = vmatprep.subr.bf16.mxu0 %v5628_v36  ;;  %v2302_v35 = vld [vmem:[%s7044_s4 + $0x120] sm:$0x11]  ;;  %v6628_v36 = vld [vmem:[%s7044_s4 + $0x128] sm:$0x11] }
 0x966   :  { %v2317_v9 = vunpack.c.h.bf16 %v6628_v36 }
 0x967   :  { %4707 = vmatmul.mubr.msk.bf16.vlgmr.msra.gmra.mrb[28].mxu1 %vm271_vm15, %v6432_v39  ;;  %4708 = vmatmul.mubr.msk.bf16.vlgmr.msra.gmra.mrb[20].mxu0 %vm271_vm15, %v6432_v39  ;;  %v5646_v39 = vld [vmem:[%s7045_s5 + $0xa0] sm:$0xff]  }
 0x968   :  { %4949 = vmatpush3.bf16.msra.mxu1 %v5629_v38  ;;  %4971 = vmatpush3.bf16.msra.mxu0 %v5630_v40 }
 0x969   :  { %4950 = vmatprep.subr.bf16.mxu1 %v5631_v42  ;;  %4972 = vmatprep.subr.bf16.mxu0 %v5632_v44 }
 0x96c   :  { %4951 = vmatpush3.bf16.msra.mxu1 %v5633_v45  ;;  %4973 = vmatpush3.bf16.msra.mxu0 %v5634_v46  ;;  %v2342_v45 = vrot.slane %v2310_v24, %v5914_v20  ;;  %v2350_v46 = vrot.slane %v2312_v25, %v5914_v20 }
 0x96d   :  { %4952 = vmatprep.subr.bf16.mxu1 %v5635_v47  ;;  %4974 = vmatprep.subr.bf16.mxu0 %v5636_v30 }
 0x970   :  { %4953 = vmatpush3.bf16.msra.mxu1 %v5637_v48  ;;  %4975 = vmatpush3.bf16.msra.mxu0 %v5638_v49 }
 0x971   :  { %4954 = vmatprep.subr.bf16.mxu1 %v5639_v51  ;;  %4976 = vmatprep.subr.bf16.mxu0 %v5640_v41  ;;  %v2346_v51 = vrot.slane %v2311_v26, %v5914_v20  ;;  %v2354_v41 = vrot.slane %v2313_v27, %v5914_v20 }
 0x974   :  { %4955 = vmatpush3.bf16.msra.mxu1 %v5641_v31  ;;  %4977 = vmatpush3.bf16.msra.mxu0 %v5642_v53 }
 0x975   :  { %4956 = vmatprep.subr.bf16.mxu1 %v5643_v58  ;;  %4978 = vmatprep.subr.bf16.mxu0 %v5644_v60  ;;  %v2314_v58 = vunpack.c.l.bf16 %v2302_v35  ;;  %v2316_v60 = vunpack.c.l.bf16 %v6628_v36  ;;  %v5666_v36 = vld [vmem:[%s7045_s5 + $0x188] sm:$0xff]  }
 0x977   :  { %v2366_v26 = vrot.slane %v2316_v60, %v5914_v20 }
 0x978   :  { %4957 = vmatpush3.bf16.msra.mxu1 %v5645_v62  ;;  %4979 = vmatpush3.bf16.msra.mxu0 %v5646_v39 }
 0x979   :  { %4958 = vmatprep.subr.bf16.mxu1 %v5647_v43  ;;  %4980 = vmatprep.subr.bf16.mxu0 %v5648_v50 }
 0x97c   :  { %4959 = vmatpush3.bf16.msra.mxu1 %v5649_v34  ;;  %4981 = vmatpush3.bf16.msra.mxu0 %v5650_v52 }
 0x97d   :  { %4960 = vmatprep.subr.bf16.mxu1 %v5651_v28  ;;  %4982 = vmatprep.subr.bf16.mxu0 %v5652_v1 }
 0x980   :  { %4961 = vmatpush3.bf16.msra.mxu1 %v5653_v2  ;;  %4983 = vmatpush3.bf16.msra.mxu0 %v5654_v3 }
 0x981   :  { %4962 = vmatprep.subr.bf16.mxu1 %v5655_v56  ;;  %4984 = vmatprep.subr.bf16.mxu0 %v5656_v4  ;;  %v2315_v56 = vunpack.c.h.bf16 %v2302_v35  ;;  %v5665_v35 = vld [vmem:[%s7045_s5 + $0x108] sm:$0xff]  }
 0x984   :  { %4963 = vmatpush3.bf16.msra.mxu1 %v5657_v59  ;;  %4985 = vmatpush3.bf16.msra.mxu0 %v5658_v10 }
 0x985   :  { %4992 = vmatprep.subr.bf16.mxu1 %v5659_v12  ;;  %5014 = vmatprep.subr.bf16.mxu0 %v5660_v5  ;;  %v5661_v5 = vld [vmem:[%s7045_s5 + $0x100] sm:$0xff]  }
 0xa22   :  { %v2584_v29 = vpop.f32.mrb[16].mxu1  ;;  %v2627_v54 = vpop.f32.mrb[8].mxu0 }
 0xa23   :  { %v2585_v55 = vadd.f32 %v2584_v29, %v2326_v19  ;;  %v2628_v57 = vadd.f32 %v2627_v54, %v2334_v21  ;;  %v2586_v32 = vpop.f32.mrb[17].mxu1  ;;  %v2629_v33 = vpop.f32.mrb[9].mxu0 }
 0xa24   :  { %v2587_v38 = vadd.f32 %v2586_v32, %v2330_v23  ;;  %v2630_v40 = vadd.f32 %v2629_v33, %v2338_v22  ;;  %v2588_v42 = vpop.f32.mrb[18].mxu1  ;;  %v2631_v44 = vpop.f32.mrb[10].mxu0 }
 0xa25   :  { %v2589_v47 = vadd.f32 %v2588_v42, %v2326_v19  ;;  %v2632_v30 = vadd.f32 %v2631_v44, %v2334_v21  ;;  %v2590_v48 = vpop.f32.mrb[19].mxu1  ;;  %v2633_v49 = vpop.f32.mrb[11].mxu0  ;;  %v2894_v62 = vmax.f32 %v2585_v55, 0.0  ;;  %v2896_v39 = vmax.f32 %v2628_v57, 0.0  ;;  %v6654_v21 = vld [vmem:[%s7044_s4 + $0x130] sm:$0x11] }
 0xa26   :  { %v2591_v31 = vadd.f32 %v2590_v48, %v2330_v23  ;;  %v2634_v53 = vadd.f32 %v2633_v49, %v2338_v22  ;;  %v2895_v34 = vmax.f32 %v2587_v38, 0.0  ;;  %v2897_v52 = vmax.f32 %v2630_v40, 0.0  ;;  %v2305_v42 = vld [vmem:[%s7044_s4 + $0x138] sm:$0x11]  ;;  %v5668_v48 = vld [vmem:[%s7045_s5 + $0x1d0] sm:$0xff]   ;;  %s5789_s4 = scalar_lea.vmem %s4608_s28, 32 }
 0xa27   :  { %v2910_v43 = vmax.f32 %v2589_v47, 0.0  ;;  %v2912_v50 = vmax.f32 %v2632_v30, 0.0  ;;  %v6649_v19 = vrot.slane %v2314_v58, %v5914_v20  ;;  %v2362_v57 = vrot.slane %v2315_v56, %v5914_v20  ;;  %v5667_v30 = vld [vmem:[%s7045_s5 + $0x150] sm:$0xff]   ;;  %p5790_p5 = scmp.ne.s32.totalorder %s4608_s28, %s5789_s4  ;;  %p5795_p7 = scmp.lt.s32.totalorder %s5789_s4, %s5789_s4 }
 0xa28   :  { %v2911_v28 = vmax.f32 %v2591_v31, 0.0  ;;  %v2913_v1 = vmax.f32 %v2634_v53, 0.0  ;;  %v2370_v38 = vrot.slane %v2317_v9, %v5914_v20  ;;  %v2318_v40 = vunpack.c.l.bf16 %v6654_v21 }
 0xa29   :  { %v2927_v2 = vpack.c.bf16 %v2910_v43, %v2894_v62  ;;  %v2929_v3 = vpack.c.bf16 %v2912_v50, %v2896_v39  ;;  %v2320_v60 = vunpack.c.l.bf16 %v2305_v42  ;;  %v2319_v62 = vunpack.c.h.bf16 %v6654_v21  ;;  %p5796_p8 = por %p5795_p7, %p5794_p6 }
 0xa2a   :  { %v2928_v4 = vpack.c.bf16 %v2911_v28, %v2895_v34  ;;  %v2930_v59 = vpack.c.bf16 %v2913_v1, %v2897_v52  ;;  %v2670_v10 = vpop.f32.mrb[20].mxu1  ;;  %v2713_v12 = vpop.f32.mrb[12].mxu0  ;;  %v5669_v52 = vld [vmem:[%s7045_s5 + $0x110] sm:$0xff]   ;;  %v2321_v1 = vunpack.c.h.bf16 %v2305_v42 }
 0xa2b   :  { %v2671_v61 = vadd.f32 %v2670_v10, %v2342_v45  ;;  %v2714_v14 = vadd.f32 %v2713_v12, %v2350_v46  ;;  %v2672_v15 = vpop.f32.mrb[21].mxu1  ;;  %v2715_v16 = vpop.f32.mrb[13].mxu0  ;;  %v5670_v28 = vld [vmem:[%s7045_s5 + $0x190] sm:$0xff]   ;;  %v5672_v10 = vld [vmem:[%s7045_s5 + $0x1d8] sm:$0xff]   ;;  %v2378_v21 = vrot.slane %v2319_v62, %v5914_v20  ;;  %p5797_p9 = pnand %p5796_p8, %p5790_p5 }
 0xa2c   :  { %v2673_v23 = vadd.f32 %v2672_v15, %v2346_v51  ;;  %v2716_v22 = vadd.f32 %v2715_v16, %v2354_v41  ;;  %v2674_v24 = vpop.f32.mrb[22].mxu1  ;;  %v2717_v25 = vpop.f32.mrb[14].mxu0  ;;  %4003 = vmatprep.mubr.bf16.mxu1 %v2928_v4  ;;  %4044 = vmatprep.mubr.bf16.mxu0 %v2930_v59  ;;  %v5671_v59 = vld [vmem:[%s7045_s5 + $0x158] sm:$0xff]  }
 0xa2d   :  { %v2675_v27 = vadd.f32 %v2674_v24, %v2342_v45  ;;  %v2718_v29 = vadd.f32 %v2717_v25, %v2350_v46  ;;  %v2676_v54 = vpop.f32.mrb[23].mxu1  ;;  %v2719_v55 = vpop.f32.mrb[15].mxu0  ;;  %4004 = vmatmul.mubr.bf16.vlgmr.msra.gmra.mrb[32].mxu1 %v2927_v2  ;;  %4045 = vmatmul.mubr.bf16.vlgmr.msra.gmra.mrb[24].mxu0 %v2929_v3  ;;  %v2898_v44 = vmax.f32 %v2671_v61, 0.0  ;;  %v2900_v45 = vmax.f32 %v2714_v14, 0.0  ;;  %v5673_v24 = vld [vmem:[%s7045_s5 + $0x118] sm:$0xff]  }
 0xa2e   :  { %v2677_v32 = vadd.f32 %v2676_v54, %v2346_v51  ;;  %v2720_v33 = vadd.f32 %v2719_v55, %v2354_v41  ;;  %4993 = vmatpush3.bf16.msra.mxu1 %v5661_v5  ;;  %5015 = vmatpush3.bf16.msra.mxu0 %v5662_v6  ;;  %v2899_v49 = vmax.f32 %v2673_v23, 0.0  ;;  %v2901_v51 = vmax.f32 %v2716_v22, 0.0  ;;  %v5674_v25 = vld [vmem:[%s7045_s5 + $0x198] sm:$0xff]   ;;  %v5675_v55 = vld [vmem:[%s7045_s5 + $0x160] sm:$0xff]  }
 0xa2f   :  { %v2914_v46 = vmax.f32 %v2675_v27, 0.0  ;;  %v2916_v47 = vmax.f32 %v2718_v29, 0.0  ;;  %4994 = vmatprep.subr.bf16.mxu1 %v5663_v17  ;;  %5016 = vmatprep.subr.bf16.mxu0 %v5664_v18  ;;  %v2374_v61 = vrot.slane %v2318_v40, %v5914_v20  ;;  %v2382_v18 = vrot.slane %v2320_v60, %v5914_v20 }
 0xa30   :  { %v2915_v41 = vmax.f32 %v2677_v32, 0.0  ;;  %v2917_v31 = vmax.f32 %v2720_v33, 0.0 }
 0xa31   :  { %v6675_v53 = vpack.c.bf16 %v2914_v46, %v2898_v44  ;;  %v6677_v58 = vpack.c.bf16 %v2916_v47, %v2900_v45  ;;  %v5677_v46 = vld [vmem:[%s7045_s5 + $0x120] sm:$0xff]  }
 0xa32   :  { %v2932_v39 = vpack.c.bf16 %v2915_v41, %v2899_v49  ;;  %v2934_v43 = vpack.c.bf16 %v2917_v31, %v2901_v51  ;;  %4995 = vmatpush3.bf16.msra.mxu1 %v5665_v35  ;;  %5017 = vmatpush3.bf16.msra.mxu0 %v5666_v36  ;;  %v2756_v50 = vpop.f32.mrb[24].mxu1  ;;  %v2799_v34 = vpop.f32.mrb[16].mxu0  ;;  %v5678_v47 = vld [vmem:[%s7045_s5 + $0x1a0] sm:$0xff]   ;;  %v5679_v41 = vld [vmem:[%s7045_s5 + $0x168] sm:$0xff]  }
 0xa33   :  { %v2757_v2 = vadd.f32 %v2756_v50, %v6649_v19  ;;  %v2800_v3 = vadd.f32 %v2799_v34, %v2366_v26  ;;  %v2758_v56 = vpop.f32.mrb[25].mxu1  ;;  %v2801_v4 = vpop.f32.mrb[17].mxu0  ;;  %4996 = vmatprep.subr.bf16.mxu1 %v5667_v30  ;;  %5018 = vmatprep.subr.bf16.mxu0 %v5668_v48  ;;  %v5680_v31 = vld [vmem:[%s7045_s5 + $0x1e8] sm:$0xff]  }
 0xa34   :  { %v2759_v12 = vadd.f32 %v2758_v56, %v2362_v57  ;;  %v2802_v5 = vadd.f32 %v2801_v4, %v2370_v38  ;;  %v2760_v6 = vpop.f32.mrb[26].mxu1  ;;  %v2803_v9 = vpop.f32.mrb[18].mxu0  ;;  %4085 = vmatprep.mubr.bf16.mxu1 %v2932_v39  ;;  %4126 = vmatprep.mubr.bf16.mxu0 %v2934_v43  ;;  %v5682_v56 = vld [vmem:[%s7045_s5 + $0x1a8] sm:$0xff]  }
 0xa35   :  { %v2761_v14 = vadd.f32 %v2760_v6, %v6649_v19  ;;  %v2804_v15 = vadd.f32 %v2803_v9, %v2366_v26  ;;  %v2762_v16 = vpop.f32.mrb[27].mxu1  ;;  %v2805_v17 = vpop.f32.mrb[19].mxu0  ;;  %v2386_v19 = vrot.slane %v2321_v1, %v5914_v20  ;;  %v2902_v26 = vmax.f32 %v2757_v2, 0.0  ;;  %v5684_v6 = vld [vmem:[%s7045_s5 + $0x1f0] sm:$0xff]  }
 0xa36   :  { %v2763_v23 = vadd.f32 %v2762_v16, %v2362_v57  ;;  %v2806_v22 = vadd.f32 %v2805_v17, %v2370_v38  ;;  %4997 = vmatpush3.bf16.msra.mxu1 %v5669_v52  ;;  %5019 = vmatpush3.bf16.msra.mxu0 %v5670_v28  ;;  %v2904_v27 = vmax.f32 %v2800_v3, 0.0  ;;  %v5676_v57 = vld [vmem:[%s7045_s5 + $0x1e0] sm:$0xff]   ;;  %v2903_v32 = vmax.f32 %v2759_v12, 0.0  ;;  %v5681_v3 = vld [vmem:[%s7045_s5 + $0x128] sm:$0xff]  }
 0xa37   :  { %v2918_v29 = vmax.f32 %v2761_v14, 0.0  ;;  %v2920_v54 = vmax.f32 %v2804_v15, 0.0  ;;  %4998 = vmatprep.subr.bf16.mxu1 %v5671_v59  ;;  %5020 = vmatprep.subr.bf16.mxu0 %v5672_v10  ;;  %v2905_v33 = vmax.f32 %v2802_v5, 0.0  ;;  %v5683_v5 = vld [vmem:[%s7045_s5 + $0x170] sm:$0xff]  }
 0xa38   :  { %v2919_v35 = vmax.f32 %v2763_v23, 0.0  ;;  %v2921_v36 = vmax.f32 %v2806_v22, 0.0  ;;  %v5685_v23 = vld [vmem:[%s7045_s5 + $0x130] sm:$0xff]  }
 0xa39   :  { %v6710_v38 = vpack.c.bf16 %v2918_v29, %v2902_v26  ;;  %v6712_v20 = vpack.c.bf16 %v2920_v54, %v2904_v27  ;;  %v5686_v22 = vld [vmem:[%s7045_s5 + $0x1b0] sm:$0xff]   ;;  %v5690_v26 = vld [vmem:[%s7045_s5 + $0x1b8] sm:$0xff]   ;;  %v5691_v27 = vld [vmem:[%s7045_s5 + $0x240] sm:$0xff]  }
 0xa3a   :  { %v6714_v40 = vpack.c.bf16 %v2919_v35, %v2903_v32  ;;  %v6716_v42 = vpack.c.bf16 %v2921_v36, %v2905_v33  ;;  %4999 = vmatpush3.bf16.msra.mxu1 %v5673_v24  ;;  %5021 = vmatpush3.bf16.msra.mxu0 %v5674_v25  ;;  %v2842_v44 = vpop.f32.mrb[28].mxu1  ;;  %v2885_v45 = vpop.f32.mrb[20].mxu0  ;;  %v5687_v24 = vld [vmem:[%s7045_s5 + $0x178] sm:$0xff]   ;;  %v5692_v29 = vld [vmem:[%s7045_s5 + $0x2c0] sm:$0xff]   ;;  %v5696_v32 = vld [vmem:[%s7045_s5 + $0x2c8] sm:$0xff]  }
 0xa3b   :  { %v2843_v30 = vadd.f32 %v2842_v44, %v2374_v61  ;;  %v2886_v48 = vadd.f32 %v2885_v45, %v2382_v18  ;;  %v2844_v49 = vpop.f32.mrb[29].mxu1  ;;  %v2887_v51 = vpop.f32.mrb[21].mxu0  ;;  %5000 = vmatprep.subr.bf16.mxu1 %v5675_v55  ;;  %5022 = vmatprep.subr.bf16.mxu0 %v5676_v57  ;;  %v5688_v25 = vld [vmem:[%s7045_s5 + $0x1f8] sm:$0xff]   ;;  %v5693_v54 = vld [vmem:[%s7045_s5 + $0x200] sm:$0xff]   ;;  %v5695_v57 = vld [vmem:[%s7045_s5 + $0x248] sm:$0xff]  }
 0xa3c   :  { %v2845_v60 = vadd.f32 %v2844_v49, %v2378_v21  ;;  %v2888_v62 = vadd.f32 %v2887_v51, %v2386_v19  ;;  %v2846_v39 = vpop.f32.mrb[30].mxu1  ;;  %v2889_v43 = vpop.f32.mrb[22].mxu0  ;;  %v5694_v55 = vld [vmem:[%s7045_s5 + $0x280] sm:$0xff]   ;;  %v5697_v33 = vld [vmem:[%s7045_s5 + $0x208] sm:$0xff]   ;;  %v5701_v36 = vld [vmem:[%s7045_s5 + $0x210] sm:$0xff]  }
 0xa3d   :  { %v2847_v50 = vadd.f32 %v2846_v39, %v2374_v61  ;;  %v2890_v34 = vadd.f32 %v2889_v43, %v2382_v18  ;;  %v2848_v52 = vpop.f32.mrb[31].mxu1  ;;  %v2891_v28 = vpop.f32.mrb[23].mxu0  ;;  %v2906_v4 = vmax.f32 %v2843_v30, 0.0  ;;  %v2908_v59 = vmax.f32 %v2886_v48, 0.0  ;;  %v5698_v35 = vld [vmem:[%s7045_s5 + $0x288] sm:$0xff]   ;;  %v5704_v44 = vld [vmem:[%s7045_s5 + $0x2d8] sm:$0xff]  }
 0xa3e   :  { %v2849_v1 = vadd.f32 %v2848_v52, %v2378_v21  ;;  %v2892_v2 = vadd.f32 %v2891_v28, %v2386_v19  ;;  %5001 = vmatpush3.bf16.msra.mxu1 %v5677_v46  ;;  %5023 = vmatpush3.bf16.msra.mxu0 %v5678_v47  ;;  %v2907_v9 = vmax.f32 %v2845_v60, 0.0  ;;  %v2909_v61 = vmax.f32 %v2888_v62, 0.0  ;;  %v5689_v19 = vld [vmem:[%s7045_s5 + $0x138] sm:$0xff]   ;;  %v5707_v47 = vld [vmem:[%s7045_s5 + $0x260] sm:$0xff]   ;;  %v5711_v51 = vld [vmem:[%s7045_s5 + $0x268] sm:$0xff]  }
 0xa3f   :  { %v2922_v10 = vmax.f32 %v2847_v50, 0.0  ;;  %v2924_v12 = vmax.f32 %v2890_v34, 0.0  ;;  %5002 = vmatprep.subr.bf16.mxu1 %v5679_v41  ;;  %5024 = vmatprep.subr.bf16.mxu0 %v5680_v31  ;;  %v5705_v45 = vld [vmem:[%s7045_s5 + $0x218] sm:$0xff]   ;;  %v5708_v30 = vld [vmem:[%s7045_s5 + $0x2e0] sm:$0xff]   ;;  %v5712_v41 = vld [vmem:[%s7045_s5 + $0x2e8] sm:$0xff]  }
 0xa40   :  { %v2923_v14 = vmax.f32 %v2849_v1, 0.0  ;;  %v2925_v15 = vmax.f32 %v2892_v2, 0.0  ;;  %v5706_v46 = vld [vmem:[%s7045_s5 + $0x298] sm:$0xff]   ;;  %v5709_v48 = vld [vmem:[%s7045_s5 + $0x220] sm:$0xff]   ;;  %v5713_v31 = vld [vmem:[%s7045_s5 + $0x228] sm:$0xff]  }
 0xa41   :  { %v6742_v16 = vpack.c.bf16 %v2922_v10, %v2906_v4  ;;  %v6744_v17 = vpack.c.bf16 %v2924_v12, %v2908_v59  ;;  %v5710_v49 = vld [vmem:[%s7045_s5 + $0x2a0] sm:$0xff]   ;;  %v5714_v60 = vld [vmem:[%s7045_s5 + $0x2a8] sm:$0xff]   ;;  %v5715_v62 = vld [vmem:[%s7045_s5 + $0x270] sm:$0xff]  }
 0xa42   :  { %v6746_v18 = vpack.c.bf16 %v2923_v14, %v2907_v9  ;;  %v6748_v21 = vpack.c.bf16 %v2925_v15, %v2909_v61  ;;  %5003 = vmatpush3.bf16.msra.mxu1 %v5681_v3  ;;  %5025 = vmatpush3.bf16.msra.mxu0 %v5682_v56  ;;  %v5716_v39 = vld [vmem:[%s7045_s5 + $0x2f0] sm:$0xff]   ;;  %v5719_v34 = vld [vmem:[%s7045_s5 + $0x278] sm:$0xff]   ;;  %v5723_v2 = vld [vmem:[%s7045_s5 + $0x340] sm:$0xff]  }
 0xa43   :  { %5004 = vmatprep.subr.bf16.mxu1 %v5683_v5  ;;  %5026 = vmatprep.subr.bf16.mxu0 %v5684_v6  ;;  %v5717_v43 = vld [vmem:[%s7045_s5 + $0x230] sm:$0xff]   ;;  %v5720_v52 = vld [vmem:[%s7045_s5 + $0x2f8] sm:$0xff]   ;;  %v5724_v3 = vld [vmem:[%s7045_s5 + $0x3c0] sm:$0xff]  }
 0xa44   :  { %v5718_v50 = vld [vmem:[%s7045_s5 + $0x2b0] sm:$0xff]   ;;  %v5721_v28 = vld [vmem:[%s7045_s5 + $0x238] sm:$0xff]   ;;  %v5725_v56 = vld [vmem:[%s7045_s5 + $0x300] sm:$0xff]  }
 0xa45   :  { %v5722_v1 = vld [vmem:[%s7045_s5 + $0x2b8] sm:$0xff]   ;;  %v5726_v4 = vld [vmem:[%s7045_s5 + $0x380] sm:$0xff]   ;;  %v5727_v59 = vld [vmem:[%s7045_s5 + $0x348] sm:$0xff]  }
 0xa46   :  { %5005 = vmatpush3.bf16.msra.mxu1 %v5685_v23  ;;  %5027 = vmatpush3.bf16.msra.mxu0 %v5686_v22  ;;  %v5728_v10 = vld [vmem:[%s7045_s5 + $0x3c8] sm:$0xff]   ;;  %v5733_v6 = vld [vmem:[%s7045_s5 + $0x310] sm:$0xff]   ;;  %v5735_v61 = vld [vmem:[%s7045_s5 + $0x358] sm:$0xff]  }
 0xa47   :  { %5006 = vmatprep.subr.bf16.mxu1 %v5687_v24  ;;  %5028 = vmatprep.subr.bf16.mxu0 %v5688_v25  ;;  %v5729_v12 = vld [vmem:[%s7045_s5 + $0x308] sm:$0xff]   ;;  %v5734_v9 = vld [vmem:[%s7045_s5 + $0x390] sm:$0xff]   ;;  %v5736_v14 = vld [vmem:[%s7045_s5 + $0x3d8] sm:$0xff]  }
 0xa48   :  { %v5730_v5 = vld [vmem:[%s7045_s5 + $0x388] sm:$0xff]   ;;  %v5737_v15 = vld [vmem:[%s7045_s5 + $0x318] sm:$0xff]   ;;  %v5740_v23 = vld [vmem:[%s7045_s5 + $0x3e0] sm:$0xff]  }
 0xa49   :  { %v5741_v22 = vld [vmem:[%s7045_s5 + $0x320] sm:$0xff]   ;;  %v5743_v25 = vld [vmem:[%s7045_s5 + $0x368] sm:$0xff]  }
 0xa4a   :  { %5007 = vmatpush3.bf16.msra.mxu1 %v5689_v19  ;;  %5029 = vmatpush3.bf16.msra.mxu0 %v5690_v26  ;;  %v5742_v24 = vld [vmem:[%s7045_s5 + $0x3a0] sm:$0xff]   ;;  %v5744_v19 = vld [vmem:[%s7045_s5 + $0x3e8] sm:$0xff]  }
 0xa4b   :  { %5036 = vmatprep.subr.bf16.mxu1 %v5691_v27  ;;  %5058 = vmatprep.subr.bf16.mxu0 %v5692_v29  ;;  %v5745_v26 = vld [vmem:[%s7045_s5 + $0x328] sm:$0xff]   ;;  %v5747_v29 = vld [vmem:[%s7045_s5 + $0x370] sm:$0xff]  }
 0xa4c   :  { %v5746_v27 = vld [vmem:[%s7045_s5 + $0x3a8] sm:$0xff]  }
 0xa4d   :  { %4086 = vmatmul.mubr.bf16.vlgmr.msra.gmra.mrb[36].mxu1 %v6675_v53  ;;  %4127 = vmatmul.mubr.bf16.vlgmr.msra.gmra.mrb[28].mxu0 %v6677_v58  ;;  %v5699_v53 = vld [vmem:[%s7045_s5 + $0x250] sm:$0xff]  }
 0xa4e   :  { %5037 = vmatpush3.bf16.msra.mxu1 %v5693_v54  ;;  %4167 = vmatprep.mubr.bf16.mxu1 %v6714_v40  ;;  %v5700_v58 = vld [vmem:[%s7045_s5 + $0x2d0] sm:$0xff]  }
 0xa4f   :  { %5059 = vmatpush3.bf16.msra.mxu0 %v5694_v55  ;;  %4208 = vmatprep.mubr.bf16.mxu0 %v6716_v42  ;;  %v5702_v40 = vld [vmem:[%s7045_s5 + $0x290] sm:$0xff]   ;;  %v5703_v42 = vld [vmem:[%s7045_s5 + $0x258] sm:$0xff]  }
 0xa50   :  { %5038 = vmatprep.subr.bf16.mxu1 %v5695_v57  ;;  %5060 = vmatprep.subr.bf16.mxu0 %v5696_v32  ;;  %v5748_v54 = vld [vmem:[%s7045_s5 + $0x3f0] sm:$0xff]   ;;  %v5751_v32 = vld [vmem:[%s7045_s5 + $0x378] sm:$0xff]  }
 0xa51   :  { %v5749_v55 = vld [vmem:[%s7045_s5 + $0x330] sm:$0xff]  }
 0xa52   :  { %5039 = vmatpush3.bf16.msra.mxu1 %v5697_v33  ;;  %v5750_v57 = vld [vmem:[%s7045_s5 + $0x3b0] sm:$0xff]   ;;  %v5752_v33 = vld [vmem:[%s7045_s5 + $0x3f8] sm:$0xff]  }
 0xa53   :  { %5061 = vmatpush3.bf16.msra.mxu0 %v5698_v35  ;;  %5040 = vmatprep.subr.bf16.mxu1 %v5699_v53  ;;  %v5753_v35 = vld [vmem:[%s7045_s5 + $0x338] sm:$0xff]  }
 0xa54   :  { %5062 = vmatprep.subr.bf16.mxu0 %v5700_v58  ;;  %v5754_v53 = vld [vmem:[%s7045_s5 + $0x3b8] sm:$0xff]  }
 0xa56   :  { %5041 = vmatpush3.bf16.msra.mxu1 %v5701_v36 }
 0xa57   :  { %5063 = vmatpush3.bf16.msra.mxu0 %v5702_v40  ;;  %5042 = vmatprep.subr.bf16.mxu1 %v5703_v42  ;;  %v4709_v40 = vld [vmem:[%s7046_s6 + $0x7] ss:$0 sm:$0xff] }
 0xa58   :  { %5064 = vmatprep.subr.bf16.mxu0 %v5704_v44 }
 0xa5a   :  { %5043 = vmatpush3.bf16.msra.mxu1 %v5705_v45 }
 0xa5b   :  { %5065 = vmatpush3.bf16.msra.mxu0 %v5706_v46  ;;  %5044 = vmatprep.subr.bf16.mxu1 %v5707_v47 }
 0xa5c   :  { %5066 = vmatprep.subr.bf16.mxu0 %v5708_v30 }
 0xa5e   :  { %5045 = vmatpush3.bf16.msra.mxu1 %v5709_v48 }
 0xa5f   :  { %5067 = vmatpush3.bf16.msra.mxu0 %v5710_v49  ;;  %5046 = vmatprep.subr.bf16.mxu1 %v5711_v51 }
 0xa60   :  { %5068 = vmatprep.subr.bf16.mxu0 %v5712_v41 }
 0xa62   :  { %5047 = vmatpush3.bf16.msra.mxu1 %v5713_v31 }
 0xa63   :  { %5069 = vmatpush3.bf16.msra.mxu0 %v5714_v60  ;;  %5048 = vmatprep.subr.bf16.mxu1 %v5715_v62 }
 0xa64   :  { %5070 = vmatprep.subr.bf16.mxu0 %v5716_v39 }
 0xa66   :  { %5049 = vmatpush3.bf16.msra.mxu1 %v5717_v43 }
 0xa67   :  { %5071 = vmatpush3.bf16.msra.mxu0 %v5718_v50  ;;  %5050 = vmatprep.subr.bf16.mxu1 %v5719_v34 }
 0xa68   :  { %5072 = vmatprep.subr.bf16.mxu0 %v5720_v52 }
 0xa6a   :  { %5051 = vmatpush3.bf16.msra.mxu1 %v5721_v28 }
 0xa6b   :  { %5073 = vmatpush3.bf16.msra.mxu0 %v5722_v1  ;;  %5080 = vmatprep.subr.bf16.mxu1 %v5723_v2 }
 0xa6c   :  { %5102 = vmatprep.subr.bf16.mxu0 %v5724_v3 }
 0xa6d   :  { %4168 = vmatmul.mubr.bf16.vlgmr.msra.gmra.mrb[40].mxu1 %v6710_v38  ;;  %v5731_v38 = vld [vmem:[%s7045_s5 + $0x350] sm:$0xff]  }
 0xa6e   :  { %4209 = vmatmul.mubr.bf16.vlgmr.msra.gmra.mrb[32].mxu0 %v6712_v20  ;;  %5081 = vmatpush3.bf16.msra.mxu1 %v5725_v56  ;;  %v5732_v20 = vld [vmem:[%s7045_s5 + $0x3d0] sm:$0xff]  }
 0xa6f   :  { %4249 = vmatprep.mubr.bf16.mxu1 %v6746_v18  ;;  %5103 = vmatpush3.bf16.msra.mxu0 %v5726_v4  ;;  %v5738_v18 = vld [vmem:[%s7045_s5 + $0x398] sm:$0xff]  }
 0xa70   :  { %4290 = vmatprep.mubr.bf16.mxu0 %v6748_v21  ;;  %5082 = vmatprep.subr.bf16.mxu1 %v5727_v59  ;;  %v5739_v21 = vld [vmem:[%s7045_s5 + $0x360] sm:$0xff]  }
 0xa71   :  { %5104 = vmatprep.subr.bf16.mxu0 %v5728_v10 }
 0xa72   :  { %5083 = vmatpush3.bf16.msra.mxu1 %v5729_v12 }
 0xa73   :  { %5105 = vmatpush3.bf16.msra.mxu0 %v5730_v5  ;;  %5084 = vmatprep.subr.bf16.mxu1 %v5731_v38 }
 0xa74   :  { %5106 = vmatprep.subr.bf16.mxu0 %v5732_v20 }
 0xa76   :  { %5085 = vmatpush3.bf16.msra.mxu1 %v5733_v6 }
 0xa77   :  { %5107 = vmatpush3.bf16.msra.mxu0 %v5734_v9  ;;  %5086 = vmatprep.subr.bf16.mxu1 %v5735_v61 }
 0xa78   :  { %5108 = vmatprep.subr.bf16.mxu0 %v5736_v14 }
 0xa7a   :  { %5087 = vmatpush3.bf16.msra.mxu1 %v5737_v15 }
 0xa7b   :  { %5109 = vmatpush3.bf16.msra.mxu0 %v5738_v18  ;;  %5088 = vmatprep.subr.bf16.mxu1 %v5739_v21 }
 0xa7c   :  { %5110 = vmatprep.subr.bf16.mxu0 %v5740_v23 }
 0xa7e   :  { %5089 = vmatpush3.bf16.msra.mxu1 %v5741_v22 }
 0xa7f   :  { %5111 = vmatpush3.bf16.msra.mxu0 %v5742_v24  ;;  %5090 = vmatprep.subr.bf16.mxu1 %v5743_v25 }
 0xa80   :  { %5112 = vmatprep.subr.bf16.mxu0 %v5744_v19 }
 0xa82   :  { %5091 = vmatpush3.bf16.msra.mxu1 %v5745_v26 }
 0xa83   :  { %5113 = vmatpush3.bf16.msra.mxu0 %v5746_v27  ;;  %5092 = vmatprep.subr.bf16.mxu1 %v5747_v29 }
 0xa84   :  { %5114 = vmatprep.subr.bf16.mxu0 %v5748_v54 }
 0xa86   :  { %5093 = vmatpush3.bf16.msra.mxu1 %v5749_v55 }
 0xa87   :  { %5115 = vmatpush3.bf16.msra.mxu0 %v5750_v57  ;;  %5094 = vmatprep.subr.bf16.mxu1 %v5751_v32 }
 0xa88   :  { %5116 = vmatprep.subr.bf16.mxu0 %v5752_v33 }
 0xa8a   :  { %5095 = vmatpush3.bf16.msra.mxu1 %v5753_v35 }
 0xa8b   :  { %5117 = vmatpush3.bf16.msra.mxu0 %v5754_v53 }
 0xa8d   :  { %4250 = vmatmul.mubr.bf16.vlgmr.msra.gmra.mrb[44].mxu1 %v6742_v16 }
 0xa8e   :  { %4291 = vmatmul.mubr.bf16.vlgmr.msra.gmra.mrb[36].mxu0 %v6744_v17  ;;  %5268 = vmatprep.mubr.msk.f32.mxu1 %vm5817_vm14, %v5816_v63 }
 0xa8f   :  { %5279 = vmatprep.mubr.msk.f32.mxu0 %vm5817_vm14, %v5816_v63 }
 0xb00   :  { %v4964_v58 = vpop.f32.mrb[32].mxu1  ;;  %v4986_v36 = vpop.f32.mrb[24].mxu0 }
 0xb01   :  { %v4965_v42 = vpop.f32.mrb[33].mxu1  ;;  %v4987_v44 = vpop.f32.mrb[25].mxu0 }
 0xb02   :  { %v4966_v45 = vadd.f32 %v4965_v42, %v4964_v58  ;;  %v4988_v46 = vadd.f32 %v4987_v44, %v4986_v36  ;;  %v4967_v47 = vpop.f32.mrb[34].mxu1  ;;  %v4989_v16 = vpop.f32.mrb[26].mxu0 }
 0xb03   :  { %v4968_v30 = vpop.f32.mrb[35].mxu1  ;;  %v4990_v17 = vpop.f32.mrb[27].mxu0 }
 0xb04   :  { %v4006_v48 = vadd.f32 %v4966_v45, %v4709_v40  ;;  %v4969_v49 = vadd.f32 %v4968_v30, %v4967_v47  ;;  %v4991_v51 = vadd.f32 %v4990_v17, %v4989_v16 }
 0xb06   :  { %v4047_v41 = vadd.f32 %v4988_v46, %v4006_v48  ;;  %v4009_v31 = vadd.f32 %v4969_v49, %v4709_v40 }
 0xb08   :  { %v4050_v60 = vadd.f32 %v4991_v51, %v4009_v31 }
 0xb20   :  { %v5008_v62 = vpop.f32.mrb[36].mxu1  ;;  %v5030_v39 = vpop.f32.mrb[28].mxu0 }
 0xb21   :  { %v5009_v43 = vpop.f32.mrb[37].mxu1  ;;  %v5031_v50 = vpop.f32.mrb[29].mxu0 }
 0xb22   :  { %v5010_v34 = vadd.f32 %v5009_v43, %v5008_v62  ;;  %v5032_v52 = vadd.f32 %v5031_v50, %v5030_v39  ;;  %v5011_v28 = vpop.f32.mrb[38].mxu1  ;;  %v5033_v1 = vpop.f32.mrb[30].mxu0 }
 0xb23   :  { %v5012_v2 = vpop.f32.mrb[39].mxu1  ;;  %v5034_v3 = vpop.f32.mrb[31].mxu0 }
 0xb24   :  { %v4088_v56 = vadd.f32 %v5010_v34, %v4047_v41  ;;  %v5013_v4 = vadd.f32 %v5012_v2, %v5011_v28  ;;  %v5035_v59 = vadd.f32 %v5034_v3, %v5033_v1  ;;  %v5828_v34 = vmov 0.0|0.0   ;;  %v4433_v1 = vld [vmem:[%s7046_s6 + $0x20] sm:$0xff]  ;;  %v4434_v2 = vld [vmem:[%s7046_s6 + $0x28] sm:$0xff] }
 0xb25   :  { %5433 = vmatprep.subr.bf16.mxu1 %v5828_v34  ;;  %5436 = vmatprep.subr.bf16.mxu0 %v5828_v34  ;;  %v5440_v3 = vpack.c.bf16 %v4434_v2, %v4433_v1 }
 0xb26   :  { %v4129_v10 = vadd.f32 %v5032_v52, %v4088_v56  ;;  %v4091_v12 = vadd.f32 %v5013_v4, %v4050_v60  ;;  %v4432_v52 = vld [vmem:[%s7046_s6 + $0x18] sm:$0xff]  ;;  %v4340_v56 = vsel %vm4339_vm12, %v6002_v11, 0 }
 0xb28   :  { %v4132_v5 = vadd.f32 %v5035_v59, %v4091_v12  ;;  %v4342_v59 = vsel %vm4341_vm13, %v6009_v13, %v4340_v56 }
 0xb40   :  { %v5052_v38 = vpop.f32.mrb[40].mxu1 }
 0xb41   :  { %v5074_v20 = vpop.f32.mrb[32].mxu0  ;;  %v5053_v6 = vpop.f32.mrb[41].mxu1 }
 0xb42   :  { %v5054_v9 = vadd.f32 %v5053_v6, %v5052_v38  ;;  %v5075_v61 = vpop.f32.mrb[33].mxu0  ;;  %v5055_v14 = vpop.f32.mrb[42].mxu1 }
 0xb43   :  { %v5076_v15 = vadd.f32 %v5075_v61, %v5074_v20  ;;  %v5077_v18 = vpop.f32.mrb[34].mxu0  ;;  %v5056_v21 = vpop.f32.mrb[43].mxu1  ;;  %v4354_v20 = vcvt.s32.f32 %v4342_v59  ;;  %v4343_v61 = vmul.u32 8, %v5889_v7 }
 0xb44   :  { %v4170_v23 = vadd.f32 %v5054_v9, %v4129_v10  ;;  %v5057_v22 = vadd.f32 %v5056_v21, %v5055_v14  ;;  %v5078_v24 = vpop.f32.mrb[35].mxu0  ;;  %v4345_v9 = vadd.s32 1, %v5889_v7 }
 0xb45   :  { %v5079_v25 = vadd.f32 %v5078_v24, %v5077_v18  ;;  %v4355_v14 = vmax.f32 %v4354_v20, 1.0  ;;  %v4349_v11 = vsub.s32 %v5891_v8, %v4343_v61  ;;  %vm4344_vm2 = vcmp.ge.s32.totalorder %v5891_v8, %v4343_v61  ;;  %v4838_v18 = vld [vmem:[%s7046_s6 + $0x5] ss:$0 sm:$0xff]  ;;  %v4839_v24 = vld [vmem:[%s7046_s6 + $0x6] ss:$0 sm:$0xff] }
 0xb46   :  { %v4211_v19 = vadd.f32 %v5076_v15, %v4170_v23  ;;  %v4173_v26 = vadd.f32 %v5057_v22, %v4132_v5  ;;  %v4346_v15 = vmul.u32 8, %v4345_v9 }
 0xb47   :  { %vm4350_vm4 = vcmp.lt.s32.totalorder %v4349_v11, %v4342_v59 }
 0xb48   :  { %v4214_v27 = vadd.f32 %v5079_v25, %v4173_v26  ;;  %vm4347_vm3 = vcmp.lt.s32.totalorder %v5891_v8, %v4346_v15 }
 0xb49   :  { %vm4348_vm5 = vmand %vm4344_vm2, %vm4347_vm3 }
 0xb4a   :  { %vm4351_vm6 = vmand %vm4348_vm5, %vm4350_vm4 }
 0xb60   :  { %v5096_v29 = vpop.f32.mrb[44].mxu1 }
 0xb61   :  { %v5118_v54 = vpop.f32.mrb[36].mxu0  ;;  %v5097_v55 = vpop.f32.mrb[45].mxu1 }
 0xb62   :  { %v5098_v57 = vadd.f32 %v5097_v55, %v5096_v29  ;;  %v5119_v32 = vpop.f32.mrb[37].mxu0  ;;  %v5099_v33 = vpop.f32.mrb[46].mxu1 }
 0xb63   :  { %v5120_v35 = vadd.f32 %v5119_v32, %v5118_v54  ;;  %v5121_v53 = vpop.f32.mrb[38].mxu0  ;;  %v5100_v58 = vpop.f32.mrb[47].mxu1  ;;  %v4436_v32 = vld [vmem:[%s7046_s6 + $0x30] sm:$0xff] }
 0xb64   :  { %v4252_v36 = vadd.f32 %v5098_v57, %v4211_v19  ;;  %v5101_v40 = vadd.f32 %v5100_v58, %v5099_v33  ;;  %v5122_v42 = vpop.f32.mrb[39].mxu0  ;;  %v4437_v33 = vld [vmem:[%s7046_s6 + $0x38] sm:$0xff] }
 0xb65   :  { %v5123_v44 = vadd.f32 %v5122_v42, %v5121_v53  ;;  %v4842_v53 = vld [vmem:[%s7046_s6 + $0x8] ss:$0 sm:$0xff] }
 0xb66   :  { %v4293_v45 = vadd.f32 %v5120_v35, %v4252_v36  ;;  %v4255_v46 = vadd.f32 %v5101_v40, %v4214_v27  ;;  %v4840_v27 = vsel %vm4351_vm6, 1.0, %v5816_v63  ;;  %v5443_v35 = vpack.c.bf16 %v4437_v33, %v4436_v32  ;;  %v4844_v40 = vld [vmem:[%s7046_s6 + $0x9] ss:$0 sm:$0xff] }
 0xb68   :  { %v4296_v47 = vadd.f32 %v5123_v44, %v4255_v46  ;;  %v4299_v16 = vadd.f32 %v4293_v45, %v6426_v0 }
 0xb6a   :  { %v4301_v30 = vsel %vm271_vm15, %v4299_v16, 0.0  ;;  %v4300_v17 = vadd.f32 %v4296_v47, %v6428_v37  ;;  %v4431_v37 = vld [vmem:[%s7046_s6 + $0x10] sm:$0xff] }
 0xb6b   :  { %4302 = vadd.xlane.f32.xlu0 %v4301_v30  ;;  %v5437_v28 = vpack.c.bf16 %v4432_v52, %v4431_v37 }
 0xb6c   :  { %v4304_v48 = vsel %vm271_vm15, %v4300_v17, 0.0 }
 0xb6d   :  { %4305 = vadd.xlane.f32.xlu1 %v4304_v48  ;;  %5438 = vmatpush3.bf16.msra.mxu0 %v5437_v28 }
 0xb6e   :  { %5439 = vmatprep.subr.bf16.mxu0 %v5828_v34 }
 0xb71   :  { %5441 = vmatpush3.bf16.msra.mxu0 %v5440_v3 }
 0xbf8   :  { %v4303_v49 = vpop.xlane.xlu0 %4302 }
 0xbf9   :  { %v4307_v51 = vmul.f32 0.03125, %v4303_v49 }
 0xbfa   :  { %v4306_v41 = vpop.xlane.xlu1 %4305 }
 0xbfb   :  { %v4309_v31 = vsub.f32 %v4299_v16, %v4307_v51  ;;  %v4308_v60 = vmul.f32 0.03125, %v4306_v41 }
 0xbfd   :  { %v4310_v62 = vsub.f32 %v4300_v17, %v4308_v60  ;;  %v4311_v39 = vmul.f32 %v4309_v31, %v4309_v31 }
 0xbff   :  { %v4313_v43 = vsel %vm271_vm15, %v4311_v39, 0.0  ;;  %v4312_v50 = vmul.f32 %v4310_v62, %v4310_v62 }
 0xc00   :  { %4314 = vadd.xlane.f32.xlu0 %v4313_v43 }
 0xc01   :  { %v4316_v0 = vsel %vm271_vm15, %v4312_v50, 0.0 }
 0xc02   :  { %4317 = vadd.xlane.f32.xlu1 %v4316_v0 }
 0xc8d   :  { %v4315_v4 = vpop.xlane.xlu0 %4314 }
 0xc8e   :  { %v4319_v10 = vmul.f32 0.03125, %v4315_v4 }
 0xc8f   :  { %v4318_v12 = vpop.xlane.xlu1 %4317 }
 0xc90   :  { %v4321_v5 = vadd.f32 1e-05, %v4319_v10  ;;  %v4320_v38 = vmul.f32 0.03125, %v4318_v12 }
 0xc92   :  { %5771 = vrsqrt.f32 %v4321_v5  ;;  %v4322_v6 = vadd.f32 1e-05, %v4320_v38 }
 0xc94   :  { %5773 = vrsqrt.f32 %v4322_v6 }
 0xc95   :  { %5775 = vrcp.f32 %v4355_v14 }
 0xc9c   :  { %v5772_v13 = vpop.eup %5771 }
 0xc9d   :  { %v4325_v21 = vmul.f32 %v5772_v13, %v4309_v31 }
 0xc9e   :  { %v5774_v23 = vpop.eup %5773 }
 0xc9f   :  { %v4326_v22 = vmul.f32 %v5774_v23, %v4310_v62  ;;  %v4331_v7 = vmul.f32 %v4838_v18, %v4325_v21  ;;  %v5776_v19 = vpop.eup %5775 }
 0xca0   :  { %v4357_v54 = vmul.f32 %v5776_v19, %v4840_v27 }
 0xca1   :  { %v4332_v25 = vmul.f32 %v4838_v18, %v4326_v22  ;;  %v4337_v26 = vadd.f32 %v4839_v24, %v4331_v7 }
 0xca3   :  { %v4338_v8 = vadd.f32 %v4839_v24, %v4332_v25 }
 0xca5   :  { %v5434_v29 = vpack.c.bf16 %v4338_v8, %v4337_v26 }
 0xca7   :  { %5435 = vmatpush3.bf16.msra.mxu1 %v5434_v29 }
 0xca8   :  { %5442 = vmatprep.subr.bf16.mxu1 %v5828_v34 }
 0xcaa   :  { %5269 = vmatmul.mubr.msk.f32.vlgmr.msra.gmra.mrb[10].mxu1 %vm1364_vm7, %v4357_v54 }
 0xcab   :  { %5286 = vmatprep.mubr.msk.f32.mxu1 %vm5817_vm14, %v5816_v63  ;;  %5444 = vmatpush3.bf16.msra.mxu1 %v5443_v35  ;;  %vm4596_vm14 = vcmask 31744  }
 0xd7d   :  { %v4427_v55 = vpop.f32.mrb[10].mxu1 }
 0xd7e   :  { %5280 = vmatmul.mubr.msk.f32.vlgmr.msra.gmra.mrb[40].mxu0 %vm271_vm15, %v4427_v55  ;;  %v5270_v57 = vpop.f32.mrb[11].mxu1  ;;  %vm4598_vm15 = vcmask 162816  }
 0xe51   :  { %v4512_v58 = vpop.f32.mrb[40].mxu0 }
 0xe52   :  { %v4513_v63 = vadd.f32 %v4842_v53, %v4512_v58  ;;  %v5281_v36 = vpop.f32.mrb[41].mxu0 }
 0xe54   :  { %5287 = vmatmul.mubr.msk.f32.vlgmr.msra.gmra.mrb[48].mxu1 %vm1364_vm7, %v4513_v63  ;;  %4593 = vrot.lane.b32.xlu0 %v4513_v63, %s5829_s25 }
 0xec6   :  { %v4594_v46 = vpop.permute.xlu0 %4593 }
 0xf27   :  { %v4589_v42 = vpop.f32.mrb[48].mxu1 }
 0xf28   :  { %v4590_v44 = vadd.f32 %v4844_v40, %v4589_v42  ;;  %v5288_v45 = vpop.f32.mrb[49].mxu1 }
 0xf2a   :  { %v4597_v47 = vsel %vm4596_vm14, %v4590_v44, %v4594_v46 }
 0xf2b   :  { %v4599_v16 = vsel %vm4598_vm15, %v4597_v47, 0.0 }
 0xf2c   :  { %4600 = vst [vmem:[#allocation4] sm:$0x3] %v4599_v16 }
 0xf2d   :  { %5800 = shalt.err (!%p5797_p9)
}
 0xf2e   :  { %s5801_s30 = scalar_lea.hbm %s7047_s7, 32 }
 0xf2f   :  { %p5802_p10 = scmp.ne.s32.totalorder %s7047_s7, %s5801_s30  ;;  %p5805_p11 = scmp.lt.u32.totalorder %s5801_s30, %s7047_s7 }
 0xf31   :  { %p5807_p12 = pnand %p5805_p11, %p5802_p10 }
 0xf33   :  { %5810 = shalt.err (!%p5807_p12)
}
 0xf34   :  { %4610 = dma.vmem_to_hbm [thread:$0]  %s4608_s28, 32, %s7047_s7, [#allocation5]  }
 0xf35   :  { %5813 = dma.done.wait [#allocation5], 32  }
 0xf36   :  { %5814 = vsyncadd [#allocation5], 4294967264 }
 0xf37   :  { %4614 = vsyncpa [#allocation5], 1 }

</bundles_post_ra>
